<compile_context>
chip_gen: v6e
topology: v6e:2x2x1
jax: 0.10.0
libtpu: 0.0.40
codegen_flags: <defaults>
</compile_context>

<pallas_src>
import jax
import jax.numpy as jnp
from jax.experimental import pallas as pl
from jax.experimental.pallas import tpu as pltpu


def _lstm_linear_kernel(x_ref, wih_ref, whh_ref, b_ref, wlin_ref, blin_ref, out_ref):
    """Single-layer LSTM (+final Linear) with fused gate weights.

    x_ref    : (S, B, I)       time-major input, f32
    wih_ref  : (I, 4*HP)       fused input->gate weights, gate order [g|i|f|o], f32
    whh_ref  : (HP, 4*HP)      fused hidden->gate weights, same order, bf16
    b_ref    : (1, 4*HP)       b_ih + b_hh fused, same order, f32
    wlin_ref : (O, HP)         final linear weight (zero-padded cols beyond H), f32
    blin_ref : (1, O)          final linear bias, f32
    out_ref  : (B, O)
    """
    S, B, I = x_ref.shape
    HP = whh_ref.shape[0]

    wih = wih_ref[...]          # (I, 4*HP) — tiny, load once
    bias = b_ref[...]           # (1, 4*HP)
    wih_rows = [wih[i:i + 1, :] for i in range(I)]   # hoisted static slices

    h = jnp.zeros((B, HP), jnp.float32)
    c = jnp.zeros((B, HP), jnp.float32)

    # Fully-unrolled recurrence (S small & static): one fused bf16 (B,HP)@(HP,4HP)
    # MXU matmul per step, one tanh for g, one tanh-based sigmoid over [i|f|o].
    for t in range(S):
        pre = jnp.dot(h.astype(jnp.bfloat16), whh_ref[...],
                      preferred_element_type=jnp.float32)           # (B, 4*HP)
        pre = pre + bias
        x_t = x_ref[t].astype(jnp.float32)                          # (B, I), I tiny
        for i in range(I):
            pre = pre + x_t[:, i:i + 1] * wih_rows[i]               # VPU FMA, off chain

        g_g = jnp.tanh(pre[:, :HP])                                 # g first: earliest pop
        sig = 0.5 * jnp.tanh(0.5 * pre[:, HP:]) + 0.5               # [i|f|o], one EUP op/elem
        i_g = sig[:, :HP]
        f_g = sig[:, HP:2 * HP]
        o_g = sig[:, 2 * HP:]

        c = f_g * c + i_g * g_g
        h = o_g * jnp.tanh(c)

    # MXU-free epilogue: (B,HP)*(1,HP) multiply + lane reduction per output col.
    wlin = wlin_ref[...]                                            # (O, HP)
    O = wlin.shape[0]
    cols = [jnp.sum(h * wlin[o:o + 1, :], axis=-1, keepdims=True) for o in range(O)]
    pred = (cols[0] if O == 1 else jnp.concatenate(cols, axis=-1)) + blin_ref[...]
    out_ref[...] = pred.astype(out_ref.dtype)


def bitcoin_price_lstm_forward(x, packed_params):
    """x: (batch, seq, input_size) -> (batch, output_size)."""
    wih, whh, bias, wlin, blin = packed_params
    B, S, I = x.shape
    O = wlin.shape[0]

    x_tm = jnp.transpose(x, (1, 0, 2))  # (S, B, I) time-major for the kernel

    vmem = pl.BlockSpec(memory_space=pltpu.MemorySpace.VMEM)
    # Gridless call: total footprint (~0.2 MB params + activations) is far below
    # VMEM on every TPU generation, so no tiling / pipelining is needed.
    return pl.pallas_call(
        _lstm_linear_kernel,
        out_shape=jax.ShapeDtypeStruct((B, O), jnp.float32),
        in_specs=[vmem] * 6,
        out_specs=vmem,
    )(x_tm, wih, whh, bias, wlin, blin)


def init_params(key, input_size=1, hidden_size=50, output_size=1):
    """Deterministic uniform(-1/sqrt(H), 1/sqrt(H)) init, PyTorch layout/gate order."""
    k = 1.0 / jnp.sqrt(jnp.float32(hidden_size))
    keys = jax.random.split(key, 6)
    w_ih = jax.random.uniform(keys[0], (4 * hidden_size, input_size), jnp.float32, -k, k)
    w_hh = jax.random.uniform(keys[1], (4 * hidden_size, hidden_size), jnp.float32, -k, k)
    b_ih = jax.random.uniform(keys[2], (4 * hidden_size,), jnp.float32, -k, k)
    b_hh = jax.random.uniform(keys[3], (4 * hidden_size,), jnp.float32, -k, k)
    w_lin = jax.random.uniform(keys[4], (output_size, hidden_size), jnp.float32, -k, k)
    b_lin = jax.random.uniform(keys[5], (output_size,), jnp.float32, -k, k)
    return (w_ih, w_hh, b_ih, b_hh, w_lin, b_lin)


def _pack_params(params, lane=128):
    """Fuse gates column-wise, reorder to [g,i,f,o], zero-pad H to a lane multiple.

    w_hh is packed as bf16 (MXU operand); everything touched by the VPU stays f32.
    """
    w_ih, w_hh, b_ih, b_hh, w_lin, b_lin = params
    four_h, I = w_ih.shape
    H = four_h // 4
    O = w_lin.shape[0]
    HP = ((H + lane - 1) // lane) * lane
    G = 4 * HP

    b_sum = b_ih + b_hh
    # torch gate order is (i, f, g, o); kernel slots are (g, i, f, o).
    gate_order = (2, 0, 1, 3)

    wih_f = jnp.zeros((I, G), jnp.float32)
    whh_f = jnp.zeros((HP, G), jnp.float32)
    bias_f = jnp.zeros((1, G), jnp.float32)
    for slot, g in enumerate(gate_order):
        col = slot * HP
        wih_f = wih_f.at[:, col:col + H].set(w_ih[g * H:(g + 1) * H, :].T)
        whh_f = whh_f.at[:H, col:col + H].set(w_hh[g * H:(g + 1) * H, :].T)
        bias_f = bias_f.at[0, col:col + H].set(b_sum[g * H:(g + 1) * H])

    whh_f = whh_f.astype(jnp.bfloat16)
    wlin_f = jnp.zeros((O, HP), jnp.float32).at[:, :H].set(w_lin)
    blin_f = b_lin[None, :].astype(jnp.float32)
    return (wih_f, whh_f, bias_f, wlin_f, blin_f)


def _reference_forward(x, params):
    """Pure-JAX (f32) reference mirroring torch nn.LSTM + nn.Linear semantics."""
    w_ih, w_hh, b_ih, b_hh, w_lin, b_lin = params
    B, S, I = x.shape
    H = w_hh.shape[-1]
    h = jnp.zeros((B, H), jnp.float32)
    c = jnp.zeros((B, H), jnp.float32)
    for t in range(S):
        x_t = x[:, t, :]
        pre = x_t @ w_ih.T + h @ w_hh.T + b_ih + b_hh        # (B, 4H), torch order i,f,g,o
        i_g = jax.nn.sigmoid(pre[:, 0:H])
        f_g = jax.nn.sigmoid(pre[:, H:2 * H])
        g_g = jnp.tanh(pre[:, 2 * H:3 * H])
        o_g = jax.nn.sigmoid(pre[:, 3 * H:4 * H])
        c = f_g * c + i_g * g_g
        h = o_g * jnp.tanh(c)
    return h @ w_lin.T + b_lin


if __name__ == "__main__":
    key = jax.random.PRNGKey(0)
    k_x, k_p = jax.random.split(key)

    batch, seq, input_size, hidden, output_size = 8, 16, 1, 50, 1
    x = jax.random.uniform(k_x, (batch, seq, input_size), jnp.float32)  # scaled prices in [0,1]
    torch_params = init_params(k_p, input_size, hidden, output_size)
    packed = _pack_params(torch_params)

    out = bitcoin_price_lstm_forward(x, packed)
    out = jax.block_until_ready(out)

    ref = _reference_forward(x, torch_params)
    assert out.shape == (batch, output_size)
    # Tolerance loosened vs the pure-f32 reference because the recurrent matmul
    # operands are bf16 (accumulation stays f32).
    assert jnp.allclose(out, ref, atol=1e-2, rtol=1e-2), "mismatch vs reference"

    # TODO(synk): MinMaxScaler / inverse_transform is sklearn preprocessing outside the
    # module's forward(); not part of the kernel.
    print("KERNEL_OK")
</pallas_src>

<mosaic_0001>
module attributes {stable_mosaic.version = 11 : i64} {
  func.func @_lstm_linear_kernel(%arg0: memref<16x8x1xf32, #tpu.memory_space<vmem>>, %arg1: memref<1x512xf32, #tpu.memory_space<vmem>>, %arg2: memref<128x512xbf16, #tpu.memory_space<vmem>>, %arg3: memref<1x512xf32, #tpu.memory_space<vmem>>, %arg4: memref<1x128xf32, #tpu.memory_space<vmem>>, %arg5: memref<1x1xf32, #tpu.memory_space<vmem>>, %arg6: memref<8x1xf32, #tpu.memory_space<vmem>>) attributes {dimension_semantics = [], scalar_prefetch = 0 : i64, scratch_operands = 0 : i64, tpu.core_type = #tpu.core_type<tc>} {
    %c0 = arith.constant 0 : index
    %c0_0 = arith.constant 0 : index
    %0 = vector.load %arg1[%c0, %c0_0] : memref<1x512xf32, #tpu.memory_space<vmem>>, vector<1x512xf32>
    %c0_1 = arith.constant 0 : index
    %c0_2 = arith.constant 0 : index
    %1 = vector.load %arg3[%c0_1, %c0_2] : memref<1x512xf32, #tpu.memory_space<vmem>>, vector<1x512xf32>
    %cst = arith.constant 0.000000e+00 : f32
    %2 = vector.broadcast %cst : f32 to vector<8x128xf32>
    %cst_3 = arith.constant 0.000000e+00 : f32
    %3 = vector.broadcast %cst_3 : f32 to vector<8x128xf32>
    %4 = arith.truncf %2 : vector<8x128xf32> to vector<8x128xbf16>
    %c0_4 = arith.constant 0 : index
    %c0_5 = arith.constant 0 : index
    %5 = vector.load %arg2[%c0_4, %c0_5] : memref<128x512xbf16, #tpu.memory_space<vmem>>, vector<128x512xbf16>
    %cst_6 = arith.constant dense<0.000000e+00> : vector<8x512xf32>
    %6 = tpu.matmul %4, %5, %cst_6 {dimension_numbers = #tpu.dot_dimension_numbers<[1], [0], [0], [1], [0, 0, 1, 1], [], []>} : vector<8x128xbf16>, vector<128x512xbf16>, vector<8x512xf32> -> vector<8x512xf32>
    %7 = vector.broadcast %1 : vector<1x512xf32> to vector<8x512xf32>
    %8 = arith.addf %6, %7 : vector<8x512xf32>
    %c0_7 = arith.constant 0 : index
    %c0_8 = arith.constant 0 : index
    %c0_9 = arith.constant 0 : index
    %9 = vector.load %arg0[%c0_7, %c0_8, %c0_9] : memref<16x8x1xf32, #tpu.memory_space<vmem>>, vector<1x8x1xf32>
    %10 = vector.shape_cast %9 : vector<1x8x1xf32> to vector<8x1xf32>
    %11 = vector.broadcast %10 : vector<8x1xf32> to vector<8x512xf32>
    %12 = vector.broadcast %0 : vector<1x512xf32> to vector<8x512xf32>
    %13 = arith.mulf %11, %12 : vector<8x512xf32>
    %14 = arith.addf %8, %13 : vector<8x512xf32>
    %15 = vector.extract_strided_slice %14 {offsets = [0, 0], sizes = [8, 128], strides = [1, 1]} : vector<8x512xf32> to vector<8x128xf32>
    %16 = math.tanh %15 : vector<8x128xf32>
    %17 = vector.extract_strided_slice %14 {offsets = [0, 128], sizes = [8, 384], strides = [1, 1]} : vector<8x512xf32> to vector<8x384xf32>
    %cst_10 = arith.constant 5.000000e-01 : f32
    %18 = vector.broadcast %cst_10 : f32 to vector<8x384xf32>
    %19 = arith.mulf %18, %17 : vector<8x384xf32>
    %20 = math.tanh %19 : vector<8x384xf32>
    %cst_11 = arith.constant 5.000000e-01 : f32
    %21 = vector.broadcast %cst_11 : f32 to vector<8x384xf32>
    %22 = arith.mulf %21, %20 : vector<8x384xf32>
    %cst_12 = arith.constant 5.000000e-01 : f32
    %23 = vector.broadcast %cst_12 : f32 to vector<8x384xf32>
    %24 = arith.addf %22, %23 : vector<8x384xf32>
    %25 = vector.extract_strided_slice %24 {offsets = [0, 0], sizes = [8, 128], strides = [1, 1]} : vector<8x384xf32> to vector<8x128xf32>
    %26 = vector.extract_strided_slice %24 {offsets = [0, 128], sizes = [8, 128], strides = [1, 1]} : vector<8x384xf32> to vector<8x128xf32>
    %27 = vector.extract_strided_slice %24 {offsets = [0, 256], sizes = [8, 128], strides = [1, 1]} : vector<8x384xf32> to vector<8x128xf32>
    %28 = arith.mulf %26, %3 : vector<8x128xf32>
    %29 = arith.mulf %25, %16 : vector<8x128xf32>
    %30 = arith.addf %28, %29 : vector<8x128xf32>
    %31 = math.tanh %30 : vector<8x128xf32>
    %32 = arith.mulf %27, %31 : vector<8x128xf32>
    %33 = arith.truncf %32 : vector<8x128xf32> to vector<8x128xbf16>
    %c0_13 = arith.constant 0 : index
    %c0_14 = arith.constant 0 : index
    %34 = vector.load %arg2[%c0_13, %c0_14] : memref<128x512xbf16, #tpu.memory_space<vmem>>, vector<128x512xbf16>
    %cst_15 = arith.constant dense<0.000000e+00> : vector<8x512xf32>
    %35 = tpu.matmul %33, %34, %cst_15 {dimension_numbers = #tpu.dot_dimension_numbers<[1], [0], [0], [1], [0, 0, 1, 1], [], []>} : vector<8x128xbf16>, vector<128x512xbf16>, vector<8x512xf32> -> vector<8x512xf32>
    %36 = vector.broadcast %1 : vector<1x512xf32> to vector<8x512xf32>
    %37 = arith.addf %35, %36 : vector<8x512xf32>
    %c1 = arith.constant 1 : index
    %c0_16 = arith.constant 0 : index
    %c0_17 = arith.constant 0 : index
    %38 = vector.load %arg0[%c1, %c0_16, %c0_17] : memref<16x8x1xf32, #tpu.memory_space<vmem>>, vector<1x8x1xf32>
    %39 = vector.shape_cast %38 : vector<1x8x1xf32> to vector<8x1xf32>
    %40 = vector.broadcast %39 : vector<8x1xf32> to vector<8x512xf32>
    %41 = vector.broadcast %0 : vector<1x512xf32> to vector<8x512xf32>
    %42 = arith.mulf %40, %41 : vector<8x512xf32>
    %43 = arith.addf %37, %42 : vector<8x512xf32>
    %44 = vector.extract_strided_slice %43 {offsets = [0, 0], sizes = [8, 128], strides = [1, 1]} : vector<8x512xf32> to vector<8x128xf32>
    %45 = math.tanh %44 : vector<8x128xf32>
    %46 = vector.extract_strided_slice %43 {offsets = [0, 128], sizes = [8, 384], strides = [1, 1]} : vector<8x512xf32> to vector<8x384xf32>
    %cst_18 = arith.constant 5.000000e-01 : f32
    %47 = vector.broadcast %cst_18 : f32 to vector<8x384xf32>
    %48 = arith.mulf %47, %46 : vector<8x384xf32>
    %49 = math.tanh %48 : vector<8x384xf32>
    %cst_19 = arith.constant 5.000000e-01 : f32
    %50 = vector.broadcast %cst_19 : f32 to vector<8x384xf32>
    %51 = arith.mulf %50, %49 : vector<8x384xf32>
    %cst_20 = arith.constant 5.000000e-01 : f32
    %52 = vector.broadcast %cst_20 : f32 to vector<8x384xf32>
    %53 = arith.addf %51, %52 : vector<8x384xf32>
    %54 = vector.extract_strided_slice %53 {offsets = [0, 0], sizes = [8, 128], strides = [1, 1]} : vector<8x384xf32> to vector<8x128xf32>
    %55 = vector.extract_strided_slice %53 {offsets = [0, 128], sizes = [8, 128], strides = [1, 1]} : vector<8x384xf32> to vector<8x128xf32>
    %56 = vector.extract_strided_slice %53 {offsets = [0, 256], sizes = [8, 128], strides = [1, 1]} : vector<8x384xf32> to vector<8x128xf32>
    %57 = arith.mulf %55, %30 : vector<8x128xf32>
    %58 = arith.mulf %54, %45 : vector<8x128xf32>
    %59 = arith.addf %57, %58 : vector<8x128xf32>
    %60 = math.tanh %59 : vector<8x128xf32>
    %61 = arith.mulf %56, %60 : vector<8x128xf32>
    %62 = arith.truncf %61 : vector<8x128xf32> to vector<8x128xbf16>
    %c0_21 = arith.constant 0 : index
    %c0_22 = arith.constant 0 : index
    %63 = vector.load %arg2[%c0_21, %c0_22] : memref<128x512xbf16, #tpu.memory_space<vmem>>, vector<128x512xbf16>
    %cst_23 = arith.constant dense<0.000000e+00> : vector<8x512xf32>
    %64 = tpu.matmul %62, %63, %cst_23 {dimension_numbers = #tpu.dot_dimension_numbers<[1], [0], [0], [1], [0, 0, 1, 1], [], []>} : vector<8x128xbf16>, vector<128x512xbf16>, vector<8x512xf32> -> vector<8x512xf32>
    %65 = vector.broadcast %1 : vector<1x512xf32> to vector<8x512xf32>
    %66 = arith.addf %64, %65 : vector<8x512xf32>
    %c2 = arith.constant 2 : index
    %c0_24 = arith.constant 0 : index
    %c0_25 = arith.constant 0 : index
    %67 = vector.load %arg0[%c2, %c0_24, %c0_25] : memref<16x8x1xf32, #tpu.memory_space<vmem>>, vector<1x8x1xf32>
    %68 = vector.shape_cast %67 : vector<1x8x1xf32> to vector<8x1xf32>
    %69 = vector.broadcast %68 : vector<8x1xf32> to vector<8x512xf32>
    %70 = vector.broadcast %0 : vector<1x512xf32> to vector<8x512xf32>
    %71 = arith.mulf %69, %70 : vector<8x512xf32>
    %72 = arith.addf %66, %71 : vector<8x512xf32>
    %73 = vector.extract_strided_slice %72 {offsets = [0, 0], sizes = [8, 128], strides = [1, 1]} : vector<8x512xf32> to vector<8x128xf32>
    %74 = math.tanh %73 : vector<8x128xf32>
    %75 = vector.extract_strided_slice %72 {offsets = [0, 128], sizes = [8, 384], strides = [1, 1]} : vector<8x512xf32> to vector<8x384xf32>
    %cst_26 = arith.constant 5.000000e-01 : f32
    %76 = vector.broadcast %cst_26 : f32 to vector<8x384xf32>
    %77 = arith.mulf %76, %75 : vector<8x384xf32>
    %78 = math.tanh %77 : vector<8x384xf32>
    %cst_27 = arith.constant 5.000000e-01 : f32
    %79 = vector.broadcast %cst_27 : f32 to vector<8x384xf32>
    %80 = arith.mulf %79, %78 : vector<8x384xf32>
    %cst_28 = arith.constant 5.000000e-01 : f32
    %81 = vector.broadcast %cst_28 : f32 to vector<8x384xf32>
    %82 = arith.addf %80, %81 : vector<8x384xf32>
    %83 = vector.extract_strided_slice %82 {offsets = [0, 0], sizes = [8, 128], strides = [1, 1]} : vector<8x384xf32> to vector<8x128xf32>
    %84 = vector.extract_strided_slice %82 {offsets = [0, 128], sizes = [8, 128], strides = [1, 1]} : vector<8x384xf32> to vector<8x128xf32>
    %85 = vector.extract_strided_slice %82 {offsets = [0, 256], sizes = [8, 128], strides = [1, 1]} : vector<8x384xf32> to vector<8x128xf32>
    %86 = arith.mulf %84, %59 : vector<8x128xf32>
    %87 = arith.mulf %83, %74 : vector<8x128xf32>
    %88 = arith.addf %86, %87 : vector<8x128xf32>
    %89 = math.tanh %88 : vector<8x128xf32>
    %90 = arith.mulf %85, %89 : vector<8x128xf32>
    %91 = arith.truncf %90 : vector<8x128xf32> to vector<8x128xbf16>
    %c0_29 = arith.constant 0 : index
    %c0_30 = arith.constant 0 : index
    %92 = vector.load %arg2[%c0_29, %c0_30] : memref<128x512xbf16, #tpu.memory_space<vmem>>, vector<128x512xbf16>
    %cst_31 = arith.constant dense<0.000000e+00> : vector<8x512xf32>
    %93 = tpu.matmul %91, %92, %cst_31 {dimension_numbers = #tpu.dot_dimension_numbers<[1], [0], [0], [1], [0, 0, 1, 1], [], []>} : vector<8x128xbf16>, vector<128x512xbf16>, vector<8x512xf32> -> vector<8x512xf32>
    %94 = vector.broadcast %1 : vector<1x512xf32> to vector<8x512xf32>
    %95 = arith.addf %93, %94 : vector<8x512xf32>
    %c3 = arith.constant 3 : index
    %c0_32 = arith.constant 0 : index
    %c0_33 = arith.constant 0 : index
    %96 = vector.load %arg0[%c3, %c0_32, %c0_33] : memref<16x8x1xf32, #tpu.memory_space<vmem>>, vector<1x8x1xf32>
    %97 = vector.shape_cast %96 : vector<1x8x1xf32> to vector<8x1xf32>
    %98 = vector.broadcast %97 : vector<8x1xf32> to vector<8x512xf32>
    %99 = vector.broadcast %0 : vector<1x512xf32> to vector<8x512xf32>
    %100 = arith.mulf %98, %99 : vector<8x512xf32>
    %101 = arith.addf %95, %100 : vector<8x512xf32>
    %102 = vector.extract_strided_slice %101 {offsets = [0, 0], sizes = [8, 128], strides = [1, 1]} : vector<8x512xf32> to vector<8x128xf32>
    %103 = math.tanh %102 : vector<8x128xf32>
    %104 = vector.extract_strided_slice %101 {offsets = [0, 128], sizes = [8, 384], strides = [1, 1]} : vector<8x512xf32> to vector<8x384xf32>
    %cst_34 = arith.constant 5.000000e-01 : f32
    %105 = vector.broadcast %cst_34 : f32 to vector<8x384xf32>
    %106 = arith.mulf %105, %104 : vector<8x384xf32>
    %107 = math.tanh %106 : vector<8x384xf32>
    %cst_35 = arith.constant 5.000000e-01 : f32
    %108 = vector.broadcast %cst_35 : f32 to vector<8x384xf32>
    %109 = arith.mulf %108, %107 : vector<8x384xf32>
    %cst_36 = arith.constant 5.000000e-01 : f32
    %110 = vector.broadcast %cst_36 : f32 to vector<8x384xf32>
    %111 = arith.addf %109, %110 : vector<8x384xf32>
    %112 = vector.extract_strided_slice %111 {offsets = [0, 0], sizes = [8, 128], strides = [1, 1]} : vector<8x384xf32> to vector<8x128xf32>
    %113 = vector.extract_strided_slice %111 {offsets = [0, 128], sizes = [8, 128], strides = [1, 1]} : vector<8x384xf32> to vector<8x128xf32>
    %114 = vector.extract_strided_slice %111 {offsets = [0, 256], sizes = [8, 128], strides = [1, 1]} : vector<8x384xf32> to vector<8x128xf32>
    %115 = arith.mulf %113, %88 : vector<8x128xf32>
    %116 = arith.mulf %112, %103 : vector<8x128xf32>
    %117 = arith.addf %115, %116 : vector<8x128xf32>
    %118 = math.tanh %117 : vector<8x128xf32>
    %119 = arith.mulf %114, %118 : vector<8x128xf32>
    %120 = arith.truncf %119 : vector<8x128xf32> to vector<8x128xbf16>
    %c0_37 = arith.constant 0 : index
    %c0_38 = arith.constant 0 : index
    %121 = vector.load %arg2[%c0_37, %c0_38] : memref<128x512xbf16, #tpu.memory_space<vmem>>, vector<128x512xbf16>
    %cst_39 = arith.constant dense<0.000000e+00> : vector<8x512xf32>
    %122 = tpu.matmul %120, %121, %cst_39 {dimension_numbers = #tpu.dot_dimension_numbers<[1], [0], [0], [1], [0, 0, 1, 1], [], []>} : vector<8x128xbf16>, vector<128x512xbf16>, vector<8x512xf32> -> vector<8x512xf32>
    %123 = vector.broadcast %1 : vector<1x512xf32> to vector<8x512xf32>
    %124 = arith.addf %122, %123 : vector<8x512xf32>
    %c4 = arith.constant 4 : index
    %c0_40 = arith.constant 0 : index
    %c0_41 = arith.constant 0 : index
    %125 = vector.load %arg0[%c4, %c0_40, %c0_41] : memref<16x8x1xf32, #tpu.memory_space<vmem>>, vector<1x8x1xf32>
    %126 = vector.shape_cast %125 : vector<1x8x1xf32> to vector<8x1xf32>
    %127 = vector.broadcast %126 : vector<8x1xf32> to vector<8x512xf32>
    %128 = vector.broadcast %0 : vector<1x512xf32> to vector<8x512xf32>
    %129 = arith.mulf %127, %128 : vector<8x512xf32>
    %130 = arith.addf %124, %129 : vector<8x512xf32>
    %131 = vector.extract_strided_slice %130 {offsets = [0, 0], sizes = [8, 128], strides = [1, 1]} : vector<8x512xf32> to vector<8x128xf32>
    %132 = math.tanh %131 : vector<8x128xf32>
    %133 = vector.extract_strided_slice %130 {offsets = [0, 128], sizes = [8, 384], strides = [1, 1]} : vector<8x512xf32> to vector<8x384xf32>
    %cst_42 = arith.constant 5.000000e-01 : f32
    %134 = vector.broadcast %cst_42 : f32 to vector<8x384xf32>
    %135 = arith.mulf %134, %133 : vector<8x384xf32>
    %136 = math.tanh %135 : vector<8x384xf32>
    %cst_43 = arith.constant 5.000000e-01 : f32
    %137 = vector.broadcast %cst_43 : f32 to vector<8x384xf32>
    %138 = arith.mulf %137, %136 : vector<8x384xf32>
    %cst_44 = arith.constant 5.000000e-01 : f32
    %139 = vector.broadcast %cst_44 : f32 to vector<8x384xf32>
    %140 = arith.addf %138, %139 : vector<8x384xf32>
    %141 = vector.extract_strided_slice %140 {offsets = [0, 0], sizes = [8, 128], strides = [1, 1]} : vector<8x384xf32> to vector<8x128xf32>
    %142 = vector.extract_strided_slice %140 {offsets = [0, 128], sizes = [8, 128], strides = [1, 1]} : vector<8x384xf32> to vector<8x128xf32>
    %143 = vector.extract_strided_slice %140 {offsets = [0, 256], sizes = [8, 128], strides = [1, 1]} : vector<8x384xf32> to vector<8x128xf32>
    %144 = arith.mulf %142, %117 : vector<8x128xf32>
    %145 = arith.mulf %141, %132 : vector<8x128xf32>
    %146 = arith.addf %144, %145 : vector<8x128xf32>
    %147 = math.tanh %146 : vector<8x128xf32>
    %148 = arith.mulf %143, %147 : vector<8x128xf32>
    %149 = arith.truncf %148 : vector<8x128xf32> to vector<8x128xbf16>
    %c0_45 = arith.constant 0 : index
    %c0_46 = arith.constant 0 : index
    %150 = vector.load %arg2[%c0_45, %c0_46] : memref<128x512xbf16, #tpu.memory_space<vmem>>, vector<128x512xbf16>
    %cst_47 = arith.constant dense<0.000000e+00> : vector<8x512xf32>
    %151 = tpu.matmul %149, %150, %cst_47 {dimension_numbers = #tpu.dot_dimension_numbers<[1], [0], [0], [1], [0, 0, 1, 1], [], []>} : vector<8x128xbf16>, vector<128x512xbf16>, vector<8x512xf32> -> vector<8x512xf32>
    %152 = vector.broadcast %1 : vector<1x512xf32> to vector<8x512xf32>
    %153 = arith.addf %151, %152 : vector<8x512xf32>
    %c5 = arith.constant 5 : index
    %c0_48 = arith.constant 0 : index
    %c0_49 = arith.constant 0 : index
    %154 = vector.load %arg0[%c5, %c0_48, %c0_49] : memref<16x8x1xf32, #tpu.memory_space<vmem>>, vector<1x8x1xf32>
    %155 = vector.shape_cast %154 : vector<1x8x1xf32> to vector<8x1xf32>
    %156 = vector.broadcast %155 : vector<8x1xf32> to vector<8x512xf32>
    %157 = vector.broadcast %0 : vector<1x512xf32> to vector<8x512xf32>
    %158 = arith.mulf %156, %157 : vector<8x512xf32>
    %159 = arith.addf %153, %158 : vector<8x512xf32>
    %160 = vector.extract_strided_slice %159 {offsets = [0, 0], sizes = [8, 128], strides = [1, 1]} : vector<8x512xf32> to vector<8x128xf32>
    %161 = math.tanh %160 : vector<8x128xf32>
    %162 = vector.extract_strided_slice %159 {offsets = [0, 128], sizes = [8, 384], strides = [1, 1]} : vector<8x512xf32> to vector<8x384xf32>
    %cst_50 = arith.constant 5.000000e-01 : f32
    %163 = vector.broadcast %cst_50 : f32 to vector<8x384xf32>
    %164 = arith.mulf %163, %162 : vector<8x384xf32>
    %165 = math.tanh %164 : vector<8x384xf32>
    %cst_51 = arith.constant 5.000000e-01 : f32
    %166 = vector.broadcast %cst_51 : f32 to vector<8x384xf32>
    %167 = arith.mulf %166, %165 : vector<8x384xf32>
    %cst_52 = arith.constant 5.000000e-01 : f32
    %168 = vector.broadcast %cst_52 : f32 to vector<8x384xf32>
    %169 = arith.addf %167, %168 : vector<8x384xf32>
    %170 = vector.extract_strided_slice %169 {offsets = [0, 0], sizes = [8, 128], strides = [1, 1]} : vector<8x384xf32> to vector<8x128xf32>
    %171 = vector.extract_strided_slice %169 {offsets = [0, 128], sizes = [8, 128], strides = [1, 1]} : vector<8x384xf32> to vector<8x128xf32>
    %172 = vector.extract_strided_slice %169 {offsets = [0, 256], sizes = [8, 128], strides = [1, 1]} : vector<8x384xf32> to vector<8x128xf32>
    %173 = arith.mulf %171, %146 : vector<8x128xf32>
    %174 = arith.mulf %170, %161 : vector<8x128xf32>
    %175 = arith.addf %173, %174 : vector<8x128xf32>
    %176 = math.tanh %175 : vector<8x128xf32>
    %177 = arith.mulf %172, %176 : vector<8x128xf32>
    %178 = arith.truncf %177 : vector<8x128xf32> to vector<8x128xbf16>
    %c0_53 = arith.constant 0 : index
    %c0_54 = arith.constant 0 : index
    %179 = vector.load %arg2[%c0_53, %c0_54] : memref<128x512xbf16, #tpu.memory_space<vmem>>, vector<128x512xbf16>
    %cst_55 = arith.constant dense<0.000000e+00> : vector<8x512xf32>
    %180 = tpu.matmul %178, %179, %cst_55 {dimension_numbers = #tpu.dot_dimension_numbers<[1], [0], [0], [1], [0, 0, 1, 1], [], []>} : vector<8x128xbf16>, vector<128x512xbf16>, vector<8x512xf32> -> vector<8x512xf32>
    %181 = vector.broadcast %1 : vector<1x512xf32> to vector<8x512xf32>
    %182 = arith.addf %180, %181 : vector<8x512xf32>
    %c6 = arith.constant 6 : index
    %c0_56 = arith.constant 0 : index
    %c0_57 = arith.constant 0 : index
    %183 = vector.load %arg0[%c6, %c0_56, %c0_57] : memref<16x8x1xf32, #tpu.memory_space<vmem>>, vector<1x8x1xf32>
    %184 = vector.shape_cast %183 : vector<1x8x1xf32> to vector<8x1xf32>
    %185 = vector.broadcast %184 : vector<8x1xf32> to vector<8x512xf32>
    %186 = vector.broadcast %0 : vector<1x512xf32> to vector<8x512xf32>
    %187 = arith.mulf %185, %186 : vector<8x512xf32>
    %188 = arith.addf %182, %187 : vector<8x512xf32>
    %189 = vector.extract_strided_slice %188 {offsets = [0, 0], sizes = [8, 128], strides = [1, 1]} : vector<8x512xf32> to vector<8x128xf32>
    %190 = math.tanh %189 : vector<8x128xf32>
    %191 = vector.extract_strided_slice %188 {offsets = [0, 128], sizes = [8, 384], strides = [1, 1]} : vector<8x512xf32> to vector<8x384xf32>
    %cst_58 = arith.constant 5.000000e-01 : f32
    %192 = vector.broadcast %cst_58 : f32 to vector<8x384xf32>
    %193 = arith.mulf %192, %191 : vector<8x384xf32>
    %194 = math.tanh %193 : vector<8x384xf32>
    %cst_59 = arith.constant 5.000000e-01 : f32
    %195 = vector.broadcast %cst_59 : f32 to vector<8x384xf32>
    %196 = arith.mulf %195, %194 : vector<8x384xf32>
    %cst_60 = arith.constant 5.000000e-01 : f32
    %197 = vector.broadcast %cst_60 : f32 to vector<8x384xf32>
    %198 = arith.addf %196, %197 : vector<8x384xf32>
    %199 = vector.extract_strided_slice %198 {offsets = [0, 0], sizes = [8, 128], strides = [1, 1]} : vector<8x384xf32> to vector<8x128xf32>
    %200 = vector.extract_strided_slice %198 {offsets = [0, 128], sizes = [8, 128], strides = [1, 1]} : vector<8x384xf32> to vector<8x128xf32>
    %201 = vector.extract_strided_slice %198 {offsets = [0, 256], sizes = [8, 128], strides = [1, 1]} : vector<8x384xf32> to vector<8x128xf32>
    %202 = arith.mulf %200, %175 : vector<8x128xf32>
    %203 = arith.mulf %199, %190 : vector<8x128xf32>
    %204 = arith.addf %202, %203 : vector<8x128xf32>
    %205 = math.tanh %204 : vector<8x128xf32>
    %206 = arith.mulf %201, %205 : vector<8x128xf32>
    %207 = arith.truncf %206 : vector<8x128xf32> to vector<8x128xbf16>
    %c0_61 = arith.constant 0 : index
    %c0_62 = arith.constant 0 : index
    %208 = vector.load %arg2[%c0_61, %c0_62] : memref<128x512xbf16, #tpu.memory_space<vmem>>, vector<128x512xbf16>
    %cst_63 = arith.constant dense<0.000000e+00> : vector<8x512xf32>
    %209 = tpu.matmul %207, %208, %cst_63 {dimension_numbers = #tpu.dot_dimension_numbers<[1], [0], [0], [1], [0, 0, 1, 1], [], []>} : vector<8x128xbf16>, vector<128x512xbf16>, vector<8x512xf32> -> vector<8x512xf32>
    %210 = vector.broadcast %1 : vector<1x512xf32> to vector<8x512xf32>
    %211 = arith.addf %209, %210 : vector<8x512xf32>
    %c7 = arith.constant 7 : index
    %c0_64 = arith.constant 0 : index
    %c0_65 = arith.constant 0 : index
    %212 = vector.load %arg0[%c7, %c0_64, %c0_65] : memref<16x8x1xf32, #tpu.memory_space<vmem>>, vector<1x8x1xf32>
    %213 = vector.shape_cast %212 : vector<1x8x1xf32> to vector<8x1xf32>
    %214 = vector.broadcast %213 : vector<8x1xf32> to vector<8x512xf32>
    %215 = vector.broadcast %0 : vector<1x512xf32> to vector<8x512xf32>
    %216 = arith.mulf %214, %215 : vector<8x512xf32>
    %217 = arith.addf %211, %216 : vector<8x512xf32>
    %218 = vector.extract_strided_slice %217 {offsets = [0, 0], sizes = [8, 128], strides = [1, 1]} : vector<8x512xf32> to vector<8x128xf32>
    %219 = math.tanh %218 : vector<8x128xf32>
    %220 = vector.extract_strided_slice %217 {offsets = [0, 128], sizes = [8, 384], strides = [1, 1]} : vector<8x512xf32> to vector<8x384xf32>
    %cst_66 = arith.constant 5.000000e-01 : f32
    %221 = vector.broadcast %cst_66 : f32 to vector<8x384xf32>
    %222 = arith.mulf %221, %220 : vector<8x384xf32>
    %223 = math.tanh %222 : vector<8x384xf32>
    %cst_67 = arith.constant 5.000000e-01 : f32
    %224 = vector.broadcast %cst_67 : f32 to vector<8x384xf32>
    %225 = arith.mulf %224, %223 : vector<8x384xf32>
    %cst_68 = arith.constant 5.000000e-01 : f32
    %226 = vector.broadcast %cst_68 : f32 to vector<8x384xf32>
    %227 = arith.addf %225, %226 : vector<8x384xf32>
    %228 = vector.extract_strided_slice %227 {offsets = [0, 0], sizes = [8, 128], strides = [1, 1]} : vector<8x384xf32> to vector<8x128xf32>
    %229 = vector.extract_strided_slice %227 {offsets = [0, 128], sizes = [8, 128], strides = [1, 1]} : vector<8x384xf32> to vector<8x128xf32>
    %230 = vector.extract_strided_slice %227 {offsets = [0, 256], sizes = [8, 128], strides = [1, 1]} : vector<8x384xf32> to vector<8x128xf32>
    %231 = arith.mulf %229, %204 : vector<8x128xf32>
    %232 = arith.mulf %228, %219 : vector<8x128xf32>
    %233 = arith.addf %231, %232 : vector<8x128xf32>
    %234 = math.tanh %233 : vector<8x128xf32>
    %235 = arith.mulf %230, %234 : vector<8x128xf32>
    %236 = arith.truncf %235 : vector<8x128xf32> to vector<8x128xbf16>
    %c0_69 = arith.constant 0 : index
    %c0_70 = arith.constant 0 : index
    %237 = vector.load %arg2[%c0_69, %c0_70] : memref<128x512xbf16, #tpu.memory_space<vmem>>, vector<128x512xbf16>
    %cst_71 = arith.constant dense<0.000000e+00> : vector<8x512xf32>
    %238 = tpu.matmul %236, %237, %cst_71 {dimension_numbers = #tpu.dot_dimension_numbers<[1], [0], [0], [1], [0, 0, 1, 1], [], []>} : vector<8x128xbf16>, vector<128x512xbf16>, vector<8x512xf32> -> vector<8x512xf32>
    %239 = vector.broadcast %1 : vector<1x512xf32> to vector<8x512xf32>
    %240 = arith.addf %238, %239 : vector<8x512xf32>
    %c8 = arith.constant 8 : index
    %c0_72 = arith.constant 0 : index
    %c0_73 = arith.constant 0 : index
    %241 = vector.load %arg0[%c8, %c0_72, %c0_73] : memref<16x8x1xf32, #tpu.memory_space<vmem>>, vector<1x8x1xf32>
    %242 = vector.shape_cast %241 : vector<1x8x1xf32> to vector<8x1xf32>
    %243 = vector.broadcast %242 : vector<8x1xf32> to vector<8x512xf32>
    %244 = vector.broadcast %0 : vector<1x512xf32> to vector<8x512xf32>
    %245 = arith.mulf %243, %244 : vector<8x512xf32>
    %246 = arith.addf %240, %245 : vector<8x512xf32>
    %247 = vector.extract_strided_slice %246 {offsets = [0, 0], sizes = [8, 128], strides = [1, 1]} : vector<8x512xf32> to vector<8x128xf32>
    %248 = math.tanh %247 : vector<8x128xf32>
    %249 = vector.extract_strided_slice %246 {offsets = [0, 128], sizes = [8, 384], strides = [1, 1]} : vector<8x512xf32> to vector<8x384xf32>
    %cst_74 = arith.constant 5.000000e-01 : f32
    %250 = vector.broadcast %cst_74 : f32 to vector<8x384xf32>
    %251 = arith.mulf %250, %249 : vector<8x384xf32>
    %252 = math.tanh %251 : vector<8x384xf32>
    %cst_75 = arith.constant 5.000000e-01 : f32
    %253 = vector.broadcast %cst_75 : f32 to vector<8x384xf32>
    %254 = arith.mulf %253, %252 : vector<8x384xf32>
    %cst_76 = arith.constant 5.000000e-01 : f32
    %255 = vector.broadcast %cst_76 : f32 to vector<8x384xf32>
    %256 = arith.addf %254, %255 : vector<8x384xf32>
    %257 = vector.extract_strided_slice %256 {offsets = [0, 0], sizes = [8, 128], strides = [1, 1]} : vector<8x384xf32> to vector<8x128xf32>
    %258 = vector.extract_strided_slice %256 {offsets = [0, 128], sizes = [8, 128], strides = [1, 1]} : vector<8x384xf32> to vector<8x128xf32>
    %259 = vector.extract_strided_slice %256 {offsets = [0, 256], sizes = [8, 128], strides = [1, 1]} : vector<8x384xf32> to vector<8x128xf32>
    %260 = arith.mulf %258, %233 : vector<8x128xf32>
    %261 = arith.mulf %257, %248 : vector<8x128xf32>
    %262 = arith.addf %260, %261 : vector<8x128xf32>
    %263 = math.tanh %262 : vector<8x128xf32>
    %264 = arith.mulf %259, %263 : vector<8x128xf32>
    %265 = arith.truncf %264 : vector<8x128xf32> to vector<8x128xbf16>
    %c0_77 = arith.constant 0 : index
    %c0_78 = arith.constant 0 : index
    %266 = vector.load %arg2[%c0_77, %c0_78] : memref<128x512xbf16, #tpu.memory_space<vmem>>, vector<128x512xbf16>
    %cst_79 = arith.constant dense<0.000000e+00> : vector<8x512xf32>
    %267 = tpu.matmul %265, %266, %cst_79 {dimension_numbers = #tpu.dot_dimension_numbers<[1], [0], [0], [1], [0, 0, 1, 1], [], []>} : vector<8x128xbf16>, vector<128x512xbf16>, vector<8x512xf32> -> vector<8x512xf32>
    %268 = vector.broadcast %1 : vector<1x512xf32> to vector<8x512xf32>
    %269 = arith.addf %267, %268 : vector<8x512xf32>
    %c9 = arith.constant 9 : index
    %c0_80 = arith.constant 0 : index
    %c0_81 = arith.constant 0 : index
    %270 = vector.load %arg0[%c9, %c0_80, %c0_81] : memref<16x8x1xf32, #tpu.memory_space<vmem>>, vector<1x8x1xf32>
    %271 = vector.shape_cast %270 : vector<1x8x1xf32> to vector<8x1xf32>
    %272 = vector.broadcast %271 : vector<8x1xf32> to vector<8x512xf32>
    %273 = vector.broadcast %0 : vector<1x512xf32> to vector<8x512xf32>
    %274 = arith.mulf %272, %273 : vector<8x512xf32>
    %275 = arith.addf %269, %274 : vector<8x512xf32>
    %276 = vector.extract_strided_slice %275 {offsets = [0, 0], sizes = [8, 128], strides = [1, 1]} : vector<8x512xf32> to vector<8x128xf32>
    %277 = math.tanh %276 : vector<8x128xf32>
    %278 = vector.extract_strided_slice %275 {offsets = [0, 128], sizes = [8, 384], strides = [1, 1]} : vector<8x512xf32> to vector<8x384xf32>
    %cst_82 = arith.constant 5.000000e-01 : f32
    %279 = vector.broadcast %cst_82 : f32 to vector<8x384xf32>
    %280 = arith.mulf %279, %278 : vector<8x384xf32>
    %281 = math.tanh %280 : vector<8x384xf32>
    %cst_83 = arith.constant 5.000000e-01 : f32
    %282 = vector.broadcast %cst_83 : f32 to vector<8x384xf32>
    %283 = arith.mulf %282, %281 : vector<8x384xf32>
    %cst_84 = arith.constant 5.000000e-01 : f32
    %284 = vector.broadcast %cst_84 : f32 to vector<8x384xf32>
    %285 = arith.addf %283, %284 : vector<8x384xf32>
    %286 = vector.extract_strided_slice %285 {offsets = [0, 0], sizes = [8, 128], strides = [1, 1]} : vector<8x384xf32> to vector<8x128xf32>
    %287 = vector.extract_strided_slice %285 {offsets = [0, 128], sizes = [8, 128], strides = [1, 1]} : vector<8x384xf32> to vector<8x128xf32>
    %288 = vector.extract_strided_slice %285 {offsets = [0, 256], sizes = [8, 128], strides = [1, 1]} : vector<8x384xf32> to vector<8x128xf32>
    %289 = arith.mulf %287, %262 : vector<8x128xf32>
    %290 = arith.mulf %286, %277 : vector<8x128xf32>
    %291 = arith.addf %289, %290 : vector<8x128xf32>
    %292 = math.tanh %291 : vector<8x128xf32>
    %293 = arith.mulf %288, %292 : vector<8x128xf32>
    %294 = arith.truncf %293 : vector<8x128xf32> to vector<8x128xbf16>
    %c0_85 = arith.constant 0 : index
    %c0_86 = arith.constant 0 : index
    %295 = vector.load %arg2[%c0_85, %c0_86] : memref<128x512xbf16, #tpu.memory_space<vmem>>, vector<128x512xbf16>
    %cst_87 = arith.constant dense<0.000000e+00> : vector<8x512xf32>
    %296 = tpu.matmul %294, %295, %cst_87 {dimension_numbers = #tpu.dot_dimension_numbers<[1], [0], [0], [1], [0, 0, 1, 1], [], []>} : vector<8x128xbf16>, vector<128x512xbf16>, vector<8x512xf32> -> vector<8x512xf32>
    %297 = vector.broadcast %1 : vector<1x512xf32> to vector<8x512xf32>
    %298 = arith.addf %296, %297 : vector<8x512xf32>
    %c10 = arith.constant 10 : index
    %c0_88 = arith.constant 0 : index
    %c0_89 = arith.constant 0 : index
    %299 = vector.load %arg0[%c10, %c0_88, %c0_89] : memref<16x8x1xf32, #tpu.memory_space<vmem>>, vector<1x8x1xf32>
    %300 = vector.shape_cast %299 : vector<1x8x1xf32> to vector<8x1xf32>
    %301 = vector.broadcast %300 : vector<8x1xf32> to vector<8x512xf32>
    %302 = vector.broadcast %0 : vector<1x512xf32> to vector<8x512xf32>
    %303 = arith.mulf %301, %302 : vector<8x512xf32>
    %304 = arith.addf %298, %303 : vector<8x512xf32>
    %305 = vector.extract_strided_slice %304 {offsets = [0, 0], sizes = [8, 128], strides = [1, 1]} : vector<8x512xf32> to vector<8x128xf32>
    %306 = math.tanh %305 : vector<8x128xf32>
    %307 = vector.extract_strided_slice %304 {offsets = [0, 128], sizes = [8, 384], strides = [1, 1]} : vector<8x512xf32> to vector<8x384xf32>
    %cst_90 = arith.constant 5.000000e-01 : f32
    %308 = vector.broadcast %cst_90 : f32 to vector<8x384xf32>
    %309 = arith.mulf %308, %307 : vector<8x384xf32>
    %310 = math.tanh %309 : vector<8x384xf32>
    %cst_91 = arith.constant 5.000000e-01 : f32
    %311 = vector.broadcast %cst_91 : f32 to vector<8x384xf32>
    %312 = arith.mulf %311, %310 : vector<8x384xf32>
    %cst_92 = arith.constant 5.000000e-01 : f32
    %313 = vector.broadcast %cst_92 : f32 to vector<8x384xf32>
    %314 = arith.addf %312, %313 : vector<8x384xf32>
    %315 = vector.extract_strided_slice %314 {offsets = [0, 0], sizes = [8, 128], strides = [1, 1]} : vector<8x384xf32> to vector<8x128xf32>
    %316 = vector.extract_strided_slice %314 {offsets = [0, 128], sizes = [8, 128], strides = [1, 1]} : vector<8x384xf32> to vector<8x128xf32>
    %317 = vector.extract_strided_slice %314 {offsets = [0, 256], sizes = [8, 128], strides = [1, 1]} : vector<8x384xf32> to vector<8x128xf32>
    %318 = arith.mulf %316, %291 : vector<8x128xf32>
    %319 = arith.mulf %315, %306 : vector<8x128xf32>
    %320 = arith.addf %318, %319 : vector<8x128xf32>
    %321 = math.tanh %320 : vector<8x128xf32>
    %322 = arith.mulf %317, %321 : vector<8x128xf32>
    %323 = arith.truncf %322 : vector<8x128xf32> to vector<8x128xbf16>
    %c0_93 = arith.constant 0 : index
    %c0_94 = arith.constant 0 : index
    %324 = vector.load %arg2[%c0_93, %c0_94] : memref<128x512xbf16, #tpu.memory_space<vmem>>, vector<128x512xbf16>
    %cst_95 = arith.constant dense<0.000000e+00> : vector<8x512xf32>
    %325 = tpu.matmul %323, %324, %cst_95 {dimension_numbers = #tpu.dot_dimension_numbers<[1], [0], [0], [1], [0, 0, 1, 1], [], []>} : vector<8x128xbf16>, vector<128x512xbf16>, vector<8x512xf32> -> vector<8x512xf32>
    %326 = vector.broadcast %1 : vector<1x512xf32> to vector<8x512xf32>
    %327 = arith.addf %325, %326 : vector<8x512xf32>
    %c11 = arith.constant 11 : index
    %c0_96 = arith.constant 0 : index
    %c0_97 = arith.constant 0 : index
    %328 = vector.load %arg0[%c11, %c0_96, %c0_97] : memref<16x8x1xf32, #tpu.memory_space<vmem>>, vector<1x8x1xf32>
    %329 = vector.shape_cast %328 : vector<1x8x1xf32> to vector<8x1xf32>
    %330 = vector.broadcast %329 : vector<8x1xf32> to vector<8x512xf32>
    %331 = vector.broadcast %0 : vector<1x512xf32> to vector<8x512xf32>
    %332 = arith.mulf %330, %331 : vector<8x512xf32>
    %333 = arith.addf %327, %332 : vector<8x512xf32>
    %334 = vector.extract_strided_slice %333 {offsets = [0, 0], sizes = [8, 128], strides = [1, 1]} : vector<8x512xf32> to vector<8x128xf32>
    %335 = math.tanh %334 : vector<8x128xf32>
    %336 = vector.extract_strided_slice %333 {offsets = [0, 128], sizes = [8, 384], strides = [1, 1]} : vector<8x512xf32> to vector<8x384xf32>
    %cst_98 = arith.constant 5.000000e-01 : f32
    %337 = vector.broadcast %cst_98 : f32 to vector<8x384xf32>
    %338 = arith.mulf %337, %336 : vector<8x384xf32>
    %339 = math.tanh %338 : vector<8x384xf32>
    %cst_99 = arith.constant 5.000000e-01 : f32
    %340 = vector.broadcast %cst_99 : f32 to vector<8x384xf32>
    %341 = arith.mulf %340, %339 : vector<8x384xf32>
    %cst_100 = arith.constant 5.000000e-01 : f32
    %342 = vector.broadcast %cst_100 : f32 to vector<8x384xf32>
    %343 = arith.addf %341, %342 : vector<8x384xf32>
    %344 = vector.extract_strided_slice %343 {offsets = [0, 0], sizes = [8, 128], strides = [1, 1]} : vector<8x384xf32> to vector<8x128xf32>
    %345 = vector.extract_strided_slice %343 {offsets = [0, 128], sizes = [8, 128], strides = [1, 1]} : vector<8x384xf32> to vector<8x128xf32>
    %346 = vector.extract_strided_slice %343 {offsets = [0, 256], sizes = [8, 128], strides = [1, 1]} : vector<8x384xf32> to vector<8x128xf32>
    %347 = arith.mulf %345, %320 : vector<8x128xf32>
    %348 = arith.mulf %344, %335 : vector<8x128xf32>
    %349 = arith.addf %347, %348 : vector<8x128xf32>
    %350 = math.tanh %349 : vector<8x128xf32>
    %351 = arith.mulf %346, %350 : vector<8x128xf32>
    %352 = arith.truncf %351 : vector<8x128xf32> to vector<8x128xbf16>
    %c0_101 = arith.constant 0 : index
    %c0_102 = arith.constant 0 : index
    %353 = vector.load %arg2[%c0_101, %c0_102] : memref<128x512xbf16, #tpu.memory_space<vmem>>, vector<128x512xbf16>
    %cst_103 = arith.constant dense<0.000000e+00> : vector<8x512xf32>
    %354 = tpu.matmul %352, %353, %cst_103 {dimension_numbers = #tpu.dot_dimension_numbers<[1], [0], [0], [1], [0, 0, 1, 1], [], []>} : vector<8x128xbf16>, vector<128x512xbf16>, vector<8x512xf32> -> vector<8x512xf32>
    %355 = vector.broadcast %1 : vector<1x512xf32> to vector<8x512xf32>
    %356 = arith.addf %354, %355 : vector<8x512xf32>
    %c12 = arith.constant 12 : index
    %c0_104 = arith.constant 0 : index
    %c0_105 = arith.constant 0 : index
    %357 = vector.load %arg0[%c12, %c0_104, %c0_105] : memref<16x8x1xf32, #tpu.memory_space<vmem>>, vector<1x8x1xf32>
    %358 = vector.shape_cast %357 : vector<1x8x1xf32> to vector<8x1xf32>
    %359 = vector.broadcast %358 : vector<8x1xf32> to vector<8x512xf32>
    %360 = vector.broadcast %0 : vector<1x512xf32> to vector<8x512xf32>
    %361 = arith.mulf %359, %360 : vector<8x512xf32>
    %362 = arith.addf %356, %361 : vector<8x512xf32>
    %363 = vector.extract_strided_slice %362 {offsets = [0, 0], sizes = [8, 128], strides = [1, 1]} : vector<8x512xf32> to vector<8x128xf32>
    %364 = math.tanh %363 : vector<8x128xf32>
    %365 = vector.extract_strided_slice %362 {offsets = [0, 128], sizes = [8, 384], strides = [1, 1]} : vector<8x512xf32> to vector<8x384xf32>
    %cst_106 = arith.constant 5.000000e-01 : f32
    %366 = vector.broadcast %cst_106 : f32 to vector<8x384xf32>
    %367 = arith.mulf %366, %365 : vector<8x384xf32>
    %368 = math.tanh %367 : vector<8x384xf32>
    %cst_107 = arith.constant 5.000000e-01 : f32
    %369 = vector.broadcast %cst_107 : f32 to vector<8x384xf32>
    %370 = arith.mulf %369, %368 : vector<8x384xf32>
    %cst_108 = arith.constant 5.000000e-01 : f32
    %371 = vector.broadcast %cst_108 : f32 to vector<8x384xf32>
    %372 = arith.addf %370, %371 : vector<8x384xf32>
    %373 = vector.extract_strided_slice %372 {offsets = [0, 0], sizes = [8, 128], strides = [1, 1]} : vector<8x384xf32> to vector<8x128xf32>
    %374 = vector.extract_strided_slice %372 {offsets = [0, 128], sizes = [8, 128], strides = [1, 1]} : vector<8x384xf32> to vector<8x128xf32>
    %375 = vector.extract_strided_slice %372 {offsets = [0, 256], sizes = [8, 128], strides = [1, 1]} : vector<8x384xf32> to vector<8x128xf32>
    %376 = arith.mulf %374, %349 : vector<8x128xf32>
    %377 = arith.mulf %373, %364 : vector<8x128xf32>
    %378 = arith.addf %376, %377 : vector<8x128xf32>
    %379 = math.tanh %378 : vector<8x128xf32>
    %380 = arith.mulf %375, %379 : vector<8x128xf32>
    %381 = arith.truncf %380 : vector<8x128xf32> to vector<8x128xbf16>
    %c0_109 = arith.constant 0 : index
    %c0_110 = arith.constant 0 : index
    %382 = vector.load %arg2[%c0_109, %c0_110] : memref<128x512xbf16, #tpu.memory_space<vmem>>, vector<128x512xbf16>
    %cst_111 = arith.constant dense<0.000000e+00> : vector<8x512xf32>
    %383 = tpu.matmul %381, %382, %cst_111 {dimension_numbers = #tpu.dot_dimension_numbers<[1], [0], [0], [1], [0, 0, 1, 1], [], []>} : vector<8x128xbf16>, vector<128x512xbf16>, vector<8x512xf32> -> vector<8x512xf32>
    %384 = vector.broadcast %1 : vector<1x512xf32> to vector<8x512xf32>
    %385 = arith.addf %383, %384 : vector<8x512xf32>
    %c13 = arith.constant 13 : index
    %c0_112 = arith.constant 0 : index
    %c0_113 = arith.constant 0 : index
    %386 = vector.load %arg0[%c13, %c0_112, %c0_113] : memref<16x8x1xf32, #tpu.memory_space<vmem>>, vector<1x8x1xf32>
    %387 = vector.shape_cast %386 : vector<1x8x1xf32> to vector<8x1xf32>
    %388 = vector.broadcast %387 : vector<8x1xf32> to vector<8x512xf32>
    %389 = vector.broadcast %0 : vector<1x512xf32> to vector<8x512xf32>
    %390 = arith.mulf %388, %389 : vector<8x512xf32>
    %391 = arith.addf %385, %390 : vector<8x512xf32>
    %392 = vector.extract_strided_slice %391 {offsets = [0, 0], sizes = [8, 128], strides = [1, 1]} : vector<8x512xf32> to vector<8x128xf32>
    %393 = math.tanh %392 : vector<8x128xf32>
    %394 = vector.extract_strided_slice %391 {offsets = [0, 128], sizes = [8, 384], strides = [1, 1]} : vector<8x512xf32> to vector<8x384xf32>
    %cst_114 = arith.constant 5.000000e-01 : f32
    %395 = vector.broadcast %cst_114 : f32 to vector<8x384xf32>
    %396 = arith.mulf %395, %394 : vector<8x384xf32>
    %397 = math.tanh %396 : vector<8x384xf32>
    %cst_115 = arith.constant 5.000000e-01 : f32
    %398 = vector.broadcast %cst_115 : f32 to vector<8x384xf32>
    %399 = arith.mulf %398, %397 : vector<8x384xf32>
    %cst_116 = arith.constant 5.000000e-01 : f32
    %400 = vector.broadcast %cst_116 : f32 to vector<8x384xf32>
    %401 = arith.addf %399, %400 : vector<8x384xf32>
    %402 = vector.extract_strided_slice %401 {offsets = [0, 0], sizes = [8, 128], strides = [1, 1]} : vector<8x384xf32> to vector<8x128xf32>
    %403 = vector.extract_strided_slice %401 {offsets = [0, 128], sizes = [8, 128], strides = [1, 1]} : vector<8x384xf32> to vector<8x128xf32>
    %404 = vector.extract_strided_slice %401 {offsets = [0, 256], sizes = [8, 128], strides = [1, 1]} : vector<8x384xf32> to vector<8x128xf32>
    %405 = arith.mulf %403, %378 : vector<8x128xf32>
    %406 = arith.mulf %402, %393 : vector<8x128xf32>
    %407 = arith.addf %405, %406 : vector<8x128xf32>
    %408 = math.tanh %407 : vector<8x128xf32>
    %409 = arith.mulf %404, %408 : vector<8x128xf32>
    %410 = arith.truncf %409 : vector<8x128xf32> to vector<8x128xbf16>
    %c0_117 = arith.constant 0 : index
    %c0_118 = arith.constant 0 : index
    %411 = vector.load %arg2[%c0_117, %c0_118] : memref<128x512xbf16, #tpu.memory_space<vmem>>, vector<128x512xbf16>
    %cst_119 = arith.constant dense<0.000000e+00> : vector<8x512xf32>
    %412 = tpu.matmul %410, %411, %cst_119 {dimension_numbers = #tpu.dot_dimension_numbers<[1], [0], [0], [1], [0, 0, 1, 1], [], []>} : vector<8x128xbf16>, vector<128x512xbf16>, vector<8x512xf32> -> vector<8x512xf32>
    %413 = vector.broadcast %1 : vector<1x512xf32> to vector<8x512xf32>
    %414 = arith.addf %412, %413 : vector<8x512xf32>
    %c14 = arith.constant 14 : index
    %c0_120 = arith.constant 0 : index
    %c0_121 = arith.constant 0 : index
    %415 = vector.load %arg0[%c14, %c0_120, %c0_121] : memref<16x8x1xf32, #tpu.memory_space<vmem>>, vector<1x8x1xf32>
    %416 = vector.shape_cast %415 : vector<1x8x1xf32> to vector<8x1xf32>
    %417 = vector.broadcast %416 : vector<8x1xf32> to vector<8x512xf32>
    %418 = vector.broadcast %0 : vector<1x512xf32> to vector<8x512xf32>
    %419 = arith.mulf %417, %418 : vector<8x512xf32>
    %420 = arith.addf %414, %419 : vector<8x512xf32>
    %421 = vector.extract_strided_slice %420 {offsets = [0, 0], sizes = [8, 128], strides = [1, 1]} : vector<8x512xf32> to vector<8x128xf32>
    %422 = math.tanh %421 : vector<8x128xf32>
    %423 = vector.extract_strided_slice %420 {offsets = [0, 128], sizes = [8, 384], strides = [1, 1]} : vector<8x512xf32> to vector<8x384xf32>
    %cst_122 = arith.constant 5.000000e-01 : f32
    %424 = vector.broadcast %cst_122 : f32 to vector<8x384xf32>
    %425 = arith.mulf %424, %423 : vector<8x384xf32>
    %426 = math.tanh %425 : vector<8x384xf32>
    %cst_123 = arith.constant 5.000000e-01 : f32
    %427 = vector.broadcast %cst_123 : f32 to vector<8x384xf32>
    %428 = arith.mulf %427, %426 : vector<8x384xf32>
    %cst_124 = arith.constant 5.000000e-01 : f32
    %429 = vector.broadcast %cst_124 : f32 to vector<8x384xf32>
    %430 = arith.addf %428, %429 : vector<8x384xf32>
    %431 = vector.extract_strided_slice %430 {offsets = [0, 0], sizes = [8, 128], strides = [1, 1]} : vector<8x384xf32> to vector<8x128xf32>
    %432 = vector.extract_strided_slice %430 {offsets = [0, 128], sizes = [8, 128], strides = [1, 1]} : vector<8x384xf32> to vector<8x128xf32>
    %433 = vector.extract_strided_slice %430 {offsets = [0, 256], sizes = [8, 128], strides = [1, 1]} : vector<8x384xf32> to vector<8x128xf32>
    %434 = arith.mulf %432, %407 : vector<8x128xf32>
    %435 = arith.mulf %431, %422 : vector<8x128xf32>
    %436 = arith.addf %434, %435 : vector<8x128xf32>
    %437 = math.tanh %436 : vector<8x128xf32>
    %438 = arith.mulf %433, %437 : vector<8x128xf32>
    %439 = arith.truncf %438 : vector<8x128xf32> to vector<8x128xbf16>
    %c0_125 = arith.constant 0 : index
    %c0_126 = arith.constant 0 : index
    %440 = vector.load %arg2[%c0_125, %c0_126] : memref<128x512xbf16, #tpu.memory_space<vmem>>, vector<128x512xbf16>
    %cst_127 = arith.constant dense<0.000000e+00> : vector<8x512xf32>
    %441 = tpu.matmul %439, %440, %cst_127 {dimension_numbers = #tpu.dot_dimension_numbers<[1], [0], [0], [1], [0, 0, 1, 1], [], []>} : vector<8x128xbf16>, vector<128x512xbf16>, vector<8x512xf32> -> vector<8x512xf32>
    %442 = vector.broadcast %1 : vector<1x512xf32> to vector<8x512xf32>
    %443 = arith.addf %441, %442 : vector<8x512xf32>
    %c15 = arith.constant 15 : index
    %c0_128 = arith.constant 0 : index
    %c0_129 = arith.constant 0 : index
    %444 = vector.load %arg0[%c15, %c0_128, %c0_129] : memref<16x8x1xf32, #tpu.memory_space<vmem>>, vector<1x8x1xf32>
    %445 = vector.shape_cast %444 : vector<1x8x1xf32> to vector<8x1xf32>
    %446 = vector.broadcast %445 : vector<8x1xf32> to vector<8x512xf32>
    %447 = vector.broadcast %0 : vector<1x512xf32> to vector<8x512xf32>
    %448 = arith.mulf %446, %447 : vector<8x512xf32>
    %449 = arith.addf %443, %448 : vector<8x512xf32>
    %450 = vector.extract_strided_slice %449 {offsets = [0, 0], sizes = [8, 128], strides = [1, 1]} : vector<8x512xf32> to vector<8x128xf32>
    %451 = math.tanh %450 : vector<8x128xf32>
    %452 = vector.extract_strided_slice %449 {offsets = [0, 128], sizes = [8, 384], strides = [1, 1]} : vector<8x512xf32> to vector<8x384xf32>
    %cst_130 = arith.constant 5.000000e-01 : f32
    %453 = vector.broadcast %cst_130 : f32 to vector<8x384xf32>
    %454 = arith.mulf %453, %452 : vector<8x384xf32>
    %455 = math.tanh %454 : vector<8x384xf32>
    %cst_131 = arith.constant 5.000000e-01 : f32
    %456 = vector.broadcast %cst_131 : f32 to vector<8x384xf32>
    %457 = arith.mulf %456, %455 : vector<8x384xf32>
    %cst_132 = arith.constant 5.000000e-01 : f32
    %458 = vector.broadcast %cst_132 : f32 to vector<8x384xf32>
    %459 = arith.addf %457, %458 : vector<8x384xf32>
    %460 = vector.extract_strided_slice %459 {offsets = [0, 0], sizes = [8, 128], strides = [1, 1]} : vector<8x384xf32> to vector<8x128xf32>
    %461 = vector.extract_strided_slice %459 {offsets = [0, 128], sizes = [8, 128], strides = [1, 1]} : vector<8x384xf32> to vector<8x128xf32>
    %462 = vector.extract_strided_slice %459 {offsets = [0, 256], sizes = [8, 128], strides = [1, 1]} : vector<8x384xf32> to vector<8x128xf32>
    %463 = arith.mulf %461, %436 : vector<8x128xf32>
    %464 = arith.mulf %460, %451 : vector<8x128xf32>
    %465 = arith.addf %463, %464 : vector<8x128xf32>
    %466 = math.tanh %465 : vector<8x128xf32>
    %467 = arith.mulf %462, %466 : vector<8x128xf32>
    %c0_133 = arith.constant 0 : index
    %c0_134 = arith.constant 0 : index
    %468 = vector.load %arg4[%c0_133, %c0_134] : memref<1x128xf32, #tpu.memory_space<vmem>>, vector<1x128xf32>
    %469 = vector.broadcast %468 : vector<1x128xf32> to vector<8x128xf32>
    %470 = arith.mulf %467, %469 : vector<8x128xf32>
    %cst_135 = arith.constant dense<0.000000e+00> : vector<8xf32>
    %471 = vector.multi_reduction <add>, %470, %cst_135 [1] : vector<8x128xf32> to vector<8xf32>
    %472 = vector.shape_cast %471 : vector<8xf32> to vector<8x1xf32>
    %c0_136 = arith.constant 0 : index
    %c0_137 = arith.constant 0 : index
    %473 = vector.load %arg5[%c0_136, %c0_137] : memref<1x1xf32, #tpu.memory_space<vmem>>, vector<1x1xf32>
    %474 = vector.broadcast %473 : vector<1x1xf32> to vector<8x1xf32>
    %475 = arith.addf %472, %474 : vector<8x1xf32>
    %c0_138 = arith.constant 0 : index
    %c0_139 = arith.constant 0 : index
    %476 = vector.load %arg6[%c0_138, %c0_139] : memref<8x1xf32, #tpu.memory_space<vmem>>, vector<8x1xf32>
    tpu.vector_store %arg6[%c0_138, %c0_139], %475 {strides = array<i32>} : memref<8x1xf32, #tpu.memory_space<vmem>>, vector<8x1xf32>,
    return
  }
}

</mosaic_0001>

<bundles_post_ra>
// kernel: tpu_custom_call.1
= control target key start
LH: loop header
LB: loop body
LE: loop exit
PB: predicated region body
PF: predicated region fallthrough
CT: control target
= control target key end

     0   :  { %s3549_s0 = inlined_call_operand.vmem [shape: f32[16,8,1], index: 0, kind: input, shape index: {}]   ;;  %s3550_s1 = inlined_call_operand.vmem [shape: f32[1,512], index: 1, kind: input, shape index: {}]   ;;  %s3551_s2 = inlined_call_operand.hbm [shape: bf16[128,512], index: 2, kind: input, shape index: {}]   ;;  %s3552_s3 = inlined_call_operand.vmem [shape: f32[1,512], index: 3, kind: input, shape index: {}]   ;;  %s3553_s4 = inlined_call_operand.vmem [shape: f32[1,128], index: 4, kind: input, shape index: {}]   ;;  %s3554_s5 = inlined_call_operand.<no memory space> [shape: f32[1,1], index: 5, kind: input, shape index: {}]   ;;  %s3555_s6 = inlined_call_operand.vmem [shape: f32[8,1], index: 6, kind: output, shape index: {}]  }
   0x1   :  { %v11_v0 = vstv %s3554_s5 }
   0x2   :  { %12 = vst [vmem:[#allocation2] sm:$0x1] %v11_v0 }
   0x3   :  { %13 = vsyncpa [#allocation4], 0  ;;  %s2504_s23 = smov [#allocation3]  }
   0x4   :  { %s23_s24 = sshll.u32 %s2504_s23, 4  ;;  %s24_s24 = int_to_ptr.vmem [resolvable:$true] %s23_s24 }
   0x5   :  { %s2490_s25 = scalar_lea.vmem %s24_s24, 4096  ;;  %p2495_p1 = scmp.lt.s32.totalorder %s24_s24, %s24_s24 }
   0x6   :  { %p2491_p0 = scmp.ne.s32.totalorder %s24_s24, %s2490_s25  ;;  %p2496_p2 = scmp.lt.s32.totalorder %s2490_s25, %s2490_s25 }
   0x8   :  { %p2497_p3 = por %p2496_p2, %p2495_p1 }
   0xa   :  { %p2498_p4 = pnand %p2497_p3, %p2491_p0 }
   0xc   :  { %2501 = shalt.err (!%p2498_p4)
}
   0xd   :  { %s2505_s26 = smov 256   ;;  %s2506_s27 = smov 16  }
   0xe   :  { %29 = dma.hbm_to_vmem [thread:$0]  %s3551_s2, 4096, %s24_s24, [#allocation4], %s2505_s26, %s2505_s26, %s2506_s27  }
   0xf   :  { %2502 = dma.done.wait [#allocation4], 4096  }
  0x10   :  { %2503 = vsyncadd [#allocation4], 4294963200  ;;  %v2507_v1 = vmov 0   ;;  %v2553_v2 = vld [vmem:[#allocation3 + $0xe4] ss:$16 sps:$4 sm:$0xff]   ;;  %v75_v42 = vlaneseq  ;;  %vm2148_vm0 = vcmask 7168  }
  0x11   :  { %287 = vmatprep.mubr.bf16.mxu0 %v2507_v1  ;;  %328 = vmatprep.mubr.bf16.mxu1 %v2507_v1  ;;  %v2555_v3 = vld [vmem:[#allocation3 + $0xec] ss:$16 sps:$4 sm:$0xff]   ;;  %v2558_v4 = vld [vmem:[#allocation3 + $0xe0] ss:$16 sps:$4 sm:$0xff]   ;;  %v2560_v5 = vld [vmem:[#allocation3 + $0xe8] ss:$16 sps:$4 sm:$0xff]  }
  0x12   :  { %2208 = vset.pattern.permute.xlu0 %v2507_v1  ;;  %2209 = vset.pattern.permute.xlu1 %v2507_v1  ;;  %v2563_v6 = vld [vmem:[#allocation3 + $0xc4] ss:$16 sps:$4 sm:$0xff]   ;;  %v2567_v7 = vld [vmem:[#allocation3 + $0xcc] ss:$16 sps:$4 sm:$0xff]   ;;  %v2569_v8 = vld [vmem:[#allocation3 + $0xc0] ss:$16 sps:$4 sm:$0xff]  }
  0x13   :  { %255 = vmatprep.subr.bf16.mxu0 %v2553_v2  ;;  %296 = vmatprep.subr.bf16.mxu1 %v2555_v3  ;;  %v2572_v9 = vld [vmem:[#allocation3 + $0xc8] ss:$16 sps:$4 sm:$0xff]   ;;  %v2575_v10 = vld [vmem:[#allocation3 + $0xa4] ss:$16 sps:$4 sm:$0xff]   ;;  %v2577_v11 = vld [vmem:[#allocation3 + $0xac] ss:$16 sps:$4 sm:$0xff]  }
  0x14   :  { %256 = vmatpush1.bf16.msra.mxu0 %v2558_v4  ;;  %297 = vmatpush1.bf16.msra.mxu1 %v2560_v5  ;;  %v2579_v12 = vld [vmem:[#allocation3 + $0xa0] ss:$16 sps:$4 sm:$0xff]   ;;  %v2581_v13 = vld [vmem:[#allocation3 + $0xa8] ss:$16 sps:$4 sm:$0xff]   ;;  %v2585_v14 = vld [vmem:[#allocation3 + $0x84] ss:$16 sps:$4 sm:$0xff]  }
  0x15   :  { %257 = vmatprep.subr.bf16.mxu0 %v2563_v6  ;;  %298 = vmatprep.subr.bf16.mxu1 %v2567_v7  ;;  %v2589_v15 = vld [vmem:[#allocation3 + $0x8c] ss:$16 sps:$4 sm:$0xff]   ;;  %v2591_v16 = vld [vmem:[#allocation3 + $0x80] ss:$16 sps:$4 sm:$0xff]   ;;  %v2595_v17 = vld [vmem:[#allocation3 + $0x88] ss:$16 sps:$4 sm:$0xff]  }
  0x16   :  { %v2597_v18 = vld [vmem:[#allocation3 + $0x64] ss:$16 sps:$4 sm:$0xff]   ;;  %v2601_v19 = vld [vmem:[#allocation3 + $0x6c] ss:$16 sps:$4 sm:$0xff]   ;;  %v2603_v20 = vld [vmem:[#allocation3 + $0x60] ss:$16 sps:$4 sm:$0xff]  }
  0x17   :  { %v2605_v21 = vld [vmem:[#allocation3 + $0x68] ss:$16 sps:$4 sm:$0xff]   ;;  %v2609_v22 = vld [vmem:[#allocation3 + $0x44] ss:$16 sps:$4 sm:$0xff]   ;;  %v2613_v23 = vld [vmem:[#allocation3 + $0x4c] ss:$16 sps:$4 sm:$0xff]  }
  0x18   :  { %258 = vmatpush1.bf16.msra.mxu0 %v2569_v8  ;;  %299 = vmatpush1.bf16.msra.mxu1 %v2572_v9  ;;  %v2617_v24 = vld [vmem:[#allocation3 + $0x40] ss:$16 sps:$4 sm:$0xff]   ;;  %v2619_v25 = vld [vmem:[#allocation3 + $0x48] ss:$16 sps:$4 sm:$0xff]   ;;  %v2623_v26 = vld [vmem:[#allocation3 + $0x24] ss:$16 sps:$4 sm:$0xff]  }
  0x19   :  { %259 = vmatprep.subr.bf16.mxu0 %v2575_v10  ;;  %300 = vmatprep.subr.bf16.mxu1 %v2577_v11  ;;  %v2625_v27 = vld [vmem:[#allocation3 + $0x2c] ss:$16 sps:$4 sm:$0xff]   ;;  %v2635_v30 = vld [vmem:[#allocation3 + $0x20] ss:$16 sps:$4 sm:$0xff]   ;;  %v2637_v31 = vld [vmem:[#allocation3 + $0x28] ss:$16 sps:$4 sm:$0xff]  }
  0x1a   :  { %v337_v28 = vld [vmem:[%s3549_s0] sm:$0xff]  ;;  %v2187_v29 = vld [vmem:[%s3549_s0 + $0x8] sm:$0xff]  ;;  %v2192_v37 = vld [vmem:[%s3549_s0 + $0x30] sm:$0xff]  ;;  %v76_v43 = vshrl.u32 %v75_v42, 7 }
  0x1b   :  { %340 = vperm.xlu0 %2208, %v337_v28   ;;  %v2641_v32 = vld [vmem:[#allocation3 + $0x4] ss:$16 sps:$4 sm:$0xff]   ;;  %v2643_v33 = vld [vmem:[#allocation3 + $0xc] ss:$16 sps:$4 sm:$0xff]   ;;  %v2650_v35 = vld [vmem:[#allocation3] ss:$16 sps:$4 sm:$0xff]  }
  0x1c   :  { %260 = vmatpush1.bf16.msra.mxu0 %v2579_v12  ;;  %301 = vmatpush1.bf16.msra.mxu1 %v2581_v13  ;;  %v2190_v34 = vld [vmem:[%s3549_s0 + $0x20] sm:$0xff]  ;;  %v2652_v36 = vld [vmem:[#allocation3 + $0x8] ss:$16 sps:$4 sm:$0xff]   ;;  %v2196_v39 = vld [vmem:[%s3549_s0 + $0x50] sm:$0xff]  ;;  %v85_v44 = vsub.s32 2, %v76_v43  ;;  %v81_v45 = vsub.s32 1, %v76_v43 }
  0x1d   :  { %261 = vmatprep.subr.bf16.mxu0 %v2585_v14  ;;  %302 = vmatprep.subr.bf16.mxu1 %v2589_v15  ;;  %v2194_v38 = vld [vmem:[%s3549_s0 + $0x40] sm:$0xff]  ;;  %v2200_v41 = vld [vmem:[%s3549_s0 + $0x70] sm:$0xff]  ;;  %v77_v49 = vsub.s32 0, %v76_v43  ;;  %v89_v28 = vsub.s32 3, %v76_v43 }
  0x1e   :  { %v2198_v40 = vld [vmem:[%s3549_s0 + $0x60] sm:$0xff] }
  0x1f   :  { %477 = vperm.xlu0 %2208, %v2187_v29   ;;  %v40_v46 = vld [vmem:[%s3550_s1] sm:$0xf] }
  0x20   :  { %262 = vmatpush1.bf16.msra.mxu0 %v2591_v16  ;;  %303 = vmatpush1.bf16.msra.mxu1 %v2595_v17  ;;  %v2714_v47 = vrot.slane %v40_v46, %v85_v44  ;;  %v41_v48 = vld [vmem:[%s3552_s3] sm:$0xf]  ;;  %v2721_v51 = vrot.slane %v40_v46, %v81_v45  ;;  %v2728_v58 = vrot.slane %v40_v46, %v77_v49 }
  0x21   :  { %263 = vmatprep.subr.bf16.mxu0 %v2597_v18  ;;  %304 = vmatprep.subr.bf16.mxu1 %v2601_v19  ;;  %v2719_v50 = vrot.slane %v41_v48, %v85_v44  ;;  %v2724_v54 = vrot.slane %v41_v48, %v81_v45  ;;  %v2726_v57 = vrot.slane %v41_v48, %v77_v49 }
  0x22   :  { %v2735_v45 = vrot.slane %v41_v48, %v89_v28  ;;  %v2737_v49 = vrot.slane %v40_v46, %v89_v28 }
  0x23   :  { %825 = vperm.xlu0 %2208, %v2190_v34  }
  0x24   :  { %264 = vmatpush1.bf16.msra.mxu0 %v2603_v20  ;;  %305 = vmatpush1.bf16.msra.mxu1 %v2605_v21 }
  0x25   :  { %265 = vmatprep.subr.bf16.mxu0 %v2609_v22  ;;  %306 = vmatprep.subr.bf16.mxu1 %v2613_v23 }
  0x27   :  { %1057 = vperm.xlu0 %2208, %v2192_v37  }
  0x28   :  { %266 = vmatpush1.bf16.msra.mxu0 %v2617_v24  ;;  %307 = vmatpush1.bf16.msra.mxu1 %v2619_v25 }
  0x29   :  { %267 = vmatprep.subr.bf16.mxu0 %v2623_v26  ;;  %308 = vmatprep.subr.bf16.mxu1 %v2625_v27 }
  0x2b   :  { %1289 = vperm.xlu0 %2208, %v2194_v38  }
  0x2c   :  { %268 = vmatpush1.bf16.msra.mxu0 %v2635_v30  ;;  %309 = vmatpush1.bf16.msra.mxu1 %v2637_v31 }
  0x2d   :  { %269 = vmatprep.subr.bf16.mxu0 %v2641_v32  ;;  %310 = vmatprep.subr.bf16.mxu1 %v2643_v33 }
  0x2f   :  { %1521 = vperm.xlu0 %2208, %v2196_v39  }
  0x30   :  { %270 = vmatpush1.bf16.msra.mxu0 %v2650_v35  ;;  %311 = vmatpush1.bf16.msra.mxu1 %v2652_v36 }
  0x31   :  { %391 = vmatprep.subr.bf16.mxu0 %v2553_v2  ;;  %432 = vmatprep.subr.bf16.mxu1 %v2555_v3 }
  0x33   :  { %288 = vmatmul.mubr.bf16.vlgmr.msra.gmra.mxu0 %v2507_v1  ;;  %329 = vmatmul.mubr.bf16.vlgmr.msra.gmra.mxu1 %v2507_v1 }
  0x34   :  { %392 = vmatpush1.bf16.msra.mxu0 %v2558_v4  ;;  %433 = vmatpush1.bf16.msra.mxu1 %v2560_v5 }
  0x35   :  { %393 = vmatprep.subr.bf16.mxu0 %v2563_v6  ;;  %434 = vmatprep.subr.bf16.mxu1 %v2567_v7 }
  0x36   :  { %423 = vmatprep.mubr.bf16.mxu0 %v2507_v1  ;;  %464 = vmatprep.mubr.bf16.mxu1 %v2507_v1 }
  0x37   :  { %1753 = vperm.xlu0 %2208, %v2198_v40  }
  0x38   :  { %394 = vmatpush1.bf16.msra.mxu0 %v2569_v8  ;;  %435 = vmatpush1.bf16.msra.mxu1 %v2572_v9 }
  0x39   :  { %395 = vmatprep.subr.bf16.mxu0 %v2575_v10  ;;  %436 = vmatprep.subr.bf16.mxu1 %v2577_v11 }
  0x3b   :  { %1985 = vperm.xlu0 %2208, %v2200_v41  }
  0x3c   :  { %396 = vmatpush1.bf16.msra.mxu0 %v2579_v12  ;;  %437 = vmatpush1.bf16.msra.mxu1 %v2581_v13 }
  0x3d   :  { %397 = vmatprep.subr.bf16.mxu0 %v2585_v14  ;;  %438 = vmatprep.subr.bf16.mxu1 %v2589_v15 }
  0x40   :  { %398 = vmatpush1.bf16.msra.mxu0 %v2591_v16  ;;  %439 = vmatpush1.bf16.msra.mxu1 %v2595_v17 }
  0x41   :  { %399 = vmatprep.subr.bf16.mxu0 %v2597_v18  ;;  %440 = vmatprep.subr.bf16.mxu1 %v2601_v19 }
  0x44   :  { %400 = vmatpush1.bf16.msra.mxu0 %v2603_v20  ;;  %441 = vmatpush1.bf16.msra.mxu1 %v2605_v21 }
  0x45   :  { %401 = vmatprep.subr.bf16.mxu0 %v2609_v22  ;;  %442 = vmatprep.subr.bf16.mxu1 %v2613_v23 }
  0x48   :  { %402 = vmatpush1.bf16.msra.mxu0 %v2617_v24  ;;  %443 = vmatpush1.bf16.msra.mxu1 %v2619_v25 }
  0x49   :  { %403 = vmatprep.subr.bf16.mxu0 %v2623_v26  ;;  %444 = vmatprep.subr.bf16.mxu1 %v2625_v27 }
  0x4c   :  { %404 = vmatpush1.bf16.msra.mxu0 %v2635_v30  ;;  %445 = vmatpush1.bf16.msra.mxu1 %v2637_v31 }
  0x4d   :  { %405 = vmatprep.subr.bf16.mxu0 %v2641_v32  ;;  %446 = vmatprep.subr.bf16.mxu1 %v2643_v33 }
  0x50   :  { %406 = vmatpush1.bf16.msra.mxu0 %v2650_v35  ;;  %447 = vmatpush1.bf16.msra.mxu1 %v2652_v36 }
  0x51   :  { %507 = vmatprep.subr.bf16.mxu0 %v2553_v2  ;;  %548 = vmatprep.subr.bf16.mxu1 %v2555_v3 }
  0x96   :  { %v341_v52 = vpop.permute.xlu0 %340 }
  0x97   :  { %v366_v53 = vmul.f32 %v2714_v47, %v341_v52  ;;  %v365_v60 = vmul.f32 %v2721_v51, %v341_v52  ;;  %v364_v38 = vmul.f32 %v2728_v58, %v341_v52 }
  0xf3   :  { %v289_v55 = vpop.f32.mrf.mxu0  ;;  %v330_v56 = vpop.f32.mrf.mxu1 }
  0xf4   :  { %v331_v59 = vadd.f32 %v330_v56, %v2719_v50  ;;  %v290_v37 = vadd.f32 %v289_v55, %v2726_v57  ;;  %v367_v56 = vmul.f32 %v2737_v49, %v341_v52 }
  0xf5   :  { %v291_v61 = vpop.f32.mrf.mxu0  ;;  %v332_v62 = vpop.f32.mrf.mxu1 }
  0xf6   :  { %v370_v63 = vadd.f32 %v366_v53, %v331_v59  ;;  %v292_v0 = vadd.f32 %v291_v61, %v2724_v54  ;;  %v368_v53 = vadd.f32 %v364_v38, %v290_v37  ;;  %v333_v43 = vadd.f32 %v332_v62, %v2735_v45 }
  0xf7   :  { %v293_v29 = vpop.f32.mrf.mxu0  ;;  %v334_v34 = vpop.f32.mrf.mxu1 }
  0xf8   :  { %v374_v39 = vmul.f32 0.5, %v370_v63  ;;  %v369_v40 = vadd.f32 %v365_v60, %v292_v0  ;;  %v371_v55 = vadd.f32 %v367_v56, %v333_v43  ;;  %v2193_v43 = vld [vmem:[%s3549_s0 + $0x38] sm:$0xff]  ;;  %v2195_v56 = vld [vmem:[%s3549_s0 + $0x48] sm:$0xff] }
  0xf9   :  { %v294_v41 = vpop.f32.mrf.mxu0  ;;  %v335_v42 = vpop.f32.mrf.mxu1 }
  0xfa   :  { %2258 = vtanh.f32 %v374_v39  ;;  %v373_v44 = vmul.f32 0.5, %v369_v40  ;;  %v375_v59 = vmul.f32 0.5, %v371_v55  ;;  %v2188_v42 = vld [vmem:[%s3549_s0 + $0x10] sm:$0xff]  ;;  %v2197_v55 = vld [vmem:[%s3549_s0 + $0x58] sm:$0xff] }
  0xfb   :  { %593 = vperm.xlu1 %2209, %v2188_v42  }
  0xfc   :  { %2260 = vtanh.f32 %v373_v44  ;;  %v2189_v44 = vld [vmem:[%s3549_s0 + $0x18] sm:$0xff] }
  0xfd   :  { %2262 = vtanh.f32 %v368_v53  ;;  %v2191_v53 = vld [vmem:[%s3549_s0 + $0x28] sm:$0xff] }
  0xfe   :  { %2264 = vtanh.f32 %v375_v59  ;;  %v2199_v59 = vld [vmem:[%s3549_s0 + $0x68] sm:$0xff] }
  0xff   :  { %709 = vperm.xlu1 %2209, %v2189_v44  }
 0x103   :  { %941 = vperm.xlu1 %2209, %v2191_v53  }
 0x107   :  { %v2259_v61 = vpop.eup %2258  ;;  %1173 = vperm.xlu1 %2209, %v2193_v43  }
 0x108   :  { %v380_v63 = vmul.f32 0.5, %v2259_v61  ;;  %v2201_v61 = vld [vmem:[%s3549_s0 + $0x78] sm:$0xff] }
 0x109   :  { %v2261_v60 = vpop.eup %2260 }
 0x10a   :  { %v383_v0 = vadd.f32 0.5, %v380_v63  ;;  %v379_v29 = vmul.f32 0.5, %v2261_v60  ;;  %v2263_v39 = vpop.eup %2262  ;;  %v478_v63 = vpop.permute.xlu0 %477 }
 0x10b   :  { %v2265_v62 = vpop.eup %2264  ;;  %1405 = vperm.xlu1 %2209, %v2195_v56   ;;  %v480_v43 = vmul.f32 %v478_v63, %v2728_v58 }
 0x10c   :  { %v385_v34 = vmul.f32 0.0, %v383_v0  ;;  %v382_v48 = vadd.f32 0.5, %v379_v29  ;;  %v381_v37 = vmul.f32 0.5, %v2265_v62 }
 0x10e   :  { %v386_v46 = vmul.f32 %v2263_v39, %v382_v48  ;;  %v384_v52 = vadd.f32 0.5, %v381_v37  ;;  %v481_v37 = vmul.f32 %v478_v63, %v2721_v51 }
 0x10f   :  { %1637 = vperm.xlu1 %2209, %v2197_v55  }
 0x110   :  { %v2741_v28 = vadd.f32 %v386_v46, %v385_v34  ;;  %v482_v34 = vmul.f32 %v478_v63, %v2714_v47 }
 0x112   :  { %2266 = vtanh.f32 %v2741_v28 }
 0x113   :  { %1869 = vperm.xlu1 %2209, %v2199_v59  }
 0x117   :  { %2101 = vperm.xlu1 %2209, %v2201_v61   ;;  %v483_v61 = vmul.f32 %v478_v63, %v2737_v49 }
 0x11f   :  { %v2267_v38 = vpop.eup %2266 }
 0x120   :  { %v389_v40 = vmul.f32 %v2267_v38, %v384_v52 }
 0x122   :  { %v390_v41 = vpack.c.bf16 %v389_v40, %v389_v40 }
 0x124   :  { %424 = vmatmul.mubr.bf16.vlgmr.msra.gmra.mxu0 %v390_v41  ;;  %465 = vmatmul.mubr.bf16.vlgmr.msra.gmra.mxu1 %v390_v41 }
 0x125   :  { %508 = vmatpush1.bf16.msra.mxu0 %v2558_v4  ;;  %549 = vmatpush1.bf16.msra.mxu1 %v2560_v5 }
 0x126   :  { %509 = vmatprep.subr.bf16.mxu0 %v2563_v6  ;;  %550 = vmatprep.subr.bf16.mxu1 %v2567_v7 }
 0x127   :  { %539 = vmatprep.mubr.bf16.mxu0 %v2507_v1  ;;  %580 = vmatprep.mubr.bf16.mxu1 %v2507_v1 }
 0x129   :  { %510 = vmatpush1.bf16.msra.mxu0 %v2569_v8  ;;  %551 = vmatpush1.bf16.msra.mxu1 %v2572_v9 }
 0x12a   :  { %511 = vmatprep.subr.bf16.mxu0 %v2575_v10  ;;  %552 = vmatprep.subr.bf16.mxu1 %v2577_v11 }
 0x12d   :  { %512 = vmatpush1.bf16.msra.mxu0 %v2579_v12  ;;  %553 = vmatpush1.bf16.msra.mxu1 %v2581_v13 }
 0x12e   :  { %513 = vmatprep.subr.bf16.mxu0 %v2585_v14  ;;  %554 = vmatprep.subr.bf16.mxu1 %v2589_v15 }
 0x131   :  { %514 = vmatpush1.bf16.msra.mxu0 %v2591_v16  ;;  %555 = vmatpush1.bf16.msra.mxu1 %v2595_v17 }
 0x132   :  { %515 = vmatprep.subr.bf16.mxu0 %v2597_v18  ;;  %556 = vmatprep.subr.bf16.mxu1 %v2601_v19 }
 0x135   :  { %516 = vmatpush1.bf16.msra.mxu0 %v2603_v20  ;;  %557 = vmatpush1.bf16.msra.mxu1 %v2605_v21 }
 0x136   :  { %517 = vmatprep.subr.bf16.mxu0 %v2609_v22  ;;  %558 = vmatprep.subr.bf16.mxu1 %v2613_v23 }
 0x139   :  { %518 = vmatpush1.bf16.msra.mxu0 %v2617_v24  ;;  %559 = vmatpush1.bf16.msra.mxu1 %v2619_v25 }
 0x13a   :  { %519 = vmatprep.subr.bf16.mxu0 %v2623_v26  ;;  %560 = vmatprep.subr.bf16.mxu1 %v2625_v27 }
 0x13d   :  { %520 = vmatpush1.bf16.msra.mxu0 %v2635_v30  ;;  %561 = vmatpush1.bf16.msra.mxu1 %v2637_v31 }
 0x13e   :  { %521 = vmatprep.subr.bf16.mxu0 %v2641_v32  ;;  %562 = vmatprep.subr.bf16.mxu1 %v2643_v33 }
 0x141   :  { %522 = vmatpush1.bf16.msra.mxu0 %v2650_v35  ;;  %563 = vmatpush1.bf16.msra.mxu1 %v2652_v36 }
 0x142   :  { %623 = vmatprep.subr.bf16.mxu0 %v2553_v2  ;;  %664 = vmatprep.subr.bf16.mxu1 %v2555_v3 }
 0x1e4   :  { %v425_v60 = vpop.f32.mrf.mxu0  ;;  %v466_v0 = vpop.f32.mrf.mxu1 }
 0x1e5   :  { %v467_v29 = vadd.f32 %v466_v0, %v2719_v50  ;;  %v426_v40 = vadd.f32 %v425_v60, %v2726_v57 }
 0x1e6   :  { %v427_v48 = vpop.f32.mrf.mxu0  ;;  %v468_v39 = vpop.f32.mrf.mxu1 }
 0x1e7   :  { %v486_v46 = vadd.f32 %v482_v34, %v467_v29  ;;  %v428_v62 = vadd.f32 %v427_v48, %v2724_v54  ;;  %v484_v55 = vadd.f32 %v480_v43, %v426_v40  ;;  %v469_v59 = vadd.f32 %v468_v39, %v2735_v45 }
 0x1e8   :  { %v429_v52 = vpop.f32.mrf.mxu0  ;;  %v470_v38 = vpop.f32.mrf.mxu1 }
 0x1e9   :  { %v490_v41 = vmul.f32 0.5, %v486_v46  ;;  %v485_v42 = vadd.f32 %v481_v37, %v428_v62  ;;  %v487_v0 = vadd.f32 %v483_v61, %v469_v59 }
 0x1ea   :  { %v430_v44 = vpop.f32.mrf.mxu0  ;;  %v471_v53 = vpop.f32.mrf.mxu1 }
 0x1eb   :  { %2268 = vtanh.f32 %v490_v41  ;;  %v489_v56 = vmul.f32 0.5, %v485_v42  ;;  %v491_v29 = vmul.f32 0.5, %v487_v0 }
 0x1ed   :  { %2270 = vtanh.f32 %v489_v56 }
 0x1ee   :  { %2272 = vtanh.f32 %v484_v55 }
 0x1ef   :  { %2274 = vtanh.f32 %v491_v29 }
 0x1f8   :  { %v2269_v34 = vpop.eup %2268 }
 0x1f9   :  { %v496_v48 = vmul.f32 0.5, %v2269_v34 }
 0x1fa   :  { %v2271_v60 = vpop.eup %2270 }
 0x1fb   :  { %v499_v46 = vadd.f32 0.5, %v496_v48  ;;  %v495_v62 = vmul.f32 0.5, %v2271_v60  ;;  %v2273_v52 = vpop.eup %2272 }
 0x1fc   :  { %v2275_v39 = vpop.eup %2274 }
 0x1fd   :  { %v498_v37 = vadd.f32 0.5, %v495_v62  ;;  %v501_v38 = vmul.f32 %v499_v46, %v2741_v28  ;;  %v497_v42 = vmul.f32 0.5, %v2275_v39  ;;  %v594_v28 = vpop.permute.xlu1 %593 }
 0x1fe   :  { %v598_v56 = vmul.f32 %v594_v28, %v2714_v47  ;;  %v597_v0 = vmul.f32 %v594_v28, %v2721_v51 }
 0x1ff   :  { %v502_v41 = vmul.f32 %v2273_v52, %v498_v37  ;;  %v500_v63 = vadd.f32 0.5, %v497_v42  ;;  %v596_v52 = vmul.f32 %v594_v28, %v2728_v58 }
 0x201   :  { %v2811_v40 = vadd.f32 %v502_v41, %v501_v38 }
 0x203   :  { %2276 = vtanh.f32 %v2811_v40 }
 0x210   :  { %v2277_v44 = vpop.eup %2276 }
 0x211   :  { %v505_v53 = vmul.f32 %v2277_v44, %v500_v63 }
 0x213   :  { %v506_v43 = vpack.c.bf16 %v505_v53, %v505_v53 }
 0x215   :  { %540 = vmatmul.mubr.bf16.vlgmr.msra.gmra.mxu0 %v506_v43  ;;  %581 = vmatmul.mubr.bf16.vlgmr.msra.gmra.mxu1 %v506_v43  ;;  %v599_v43 = vmul.f32 %v594_v28, %v2737_v49 }
 0x216   :  { %624 = vmatpush1.bf16.msra.mxu0 %v2558_v4  ;;  %665 = vmatpush1.bf16.msra.mxu1 %v2560_v5 }
 0x217   :  { %625 = vmatprep.subr.bf16.mxu0 %v2563_v6  ;;  %666 = vmatprep.subr.bf16.mxu1 %v2567_v7 }
 0x218   :  { %655 = vmatprep.mubr.bf16.mxu0 %v2507_v1  ;;  %696 = vmatprep.mubr.bf16.mxu1 %v2507_v1 }
 0x21a   :  { %626 = vmatpush1.bf16.msra.mxu0 %v2569_v8  ;;  %667 = vmatpush1.bf16.msra.mxu1 %v2572_v9 }
 0x21b   :  { %627 = vmatprep.subr.bf16.mxu0 %v2575_v10  ;;  %668 = vmatprep.subr.bf16.mxu1 %v2577_v11 }
 0x21e   :  { %628 = vmatpush1.bf16.msra.mxu0 %v2579_v12  ;;  %669 = vmatpush1.bf16.msra.mxu1 %v2581_v13 }
 0x21f   :  { %629 = vmatprep.subr.bf16.mxu0 %v2585_v14  ;;  %670 = vmatprep.subr.bf16.mxu1 %v2589_v15 }
 0x222   :  { %630 = vmatpush1.bf16.msra.mxu0 %v2591_v16  ;;  %671 = vmatpush1.bf16.msra.mxu1 %v2595_v17 }
 0x223   :  { %631 = vmatprep.subr.bf16.mxu0 %v2597_v18  ;;  %672 = vmatprep.subr.bf16.mxu1 %v2601_v19 }
 0x226   :  { %632 = vmatpush1.bf16.msra.mxu0 %v2603_v20  ;;  %673 = vmatpush1.bf16.msra.mxu1 %v2605_v21 }
 0x227   :  { %633 = vmatprep.subr.bf16.mxu0 %v2609_v22  ;;  %674 = vmatprep.subr.bf16.mxu1 %v2613_v23 }
 0x22a   :  { %634 = vmatpush1.bf16.msra.mxu0 %v2617_v24  ;;  %675 = vmatpush1.bf16.msra.mxu1 %v2619_v25 }
 0x22b   :  { %635 = vmatprep.subr.bf16.mxu0 %v2623_v26  ;;  %676 = vmatprep.subr.bf16.mxu1 %v2625_v27 }
 0x22e   :  { %636 = vmatpush1.bf16.msra.mxu0 %v2635_v30  ;;  %677 = vmatpush1.bf16.msra.mxu1 %v2637_v31 }
 0x22f   :  { %637 = vmatprep.subr.bf16.mxu0 %v2641_v32  ;;  %678 = vmatprep.subr.bf16.mxu1 %v2643_v33 }
 0x232   :  { %638 = vmatpush1.bf16.msra.mxu0 %v2650_v35  ;;  %679 = vmatpush1.bf16.msra.mxu1 %v2652_v36 }
 0x233   :  { %739 = vmatprep.subr.bf16.mxu0 %v2553_v2  ;;  %780 = vmatprep.subr.bf16.mxu1 %v2555_v3 }
 0x2d5   :  { %v541_v55 = vpop.f32.mrf.mxu0  ;;  %v582_v59 = vpop.f32.mrf.mxu1 }
 0x2d6   :  { %v583_v61 = vadd.f32 %v582_v59, %v2719_v50  ;;  %v542_v37 = vadd.f32 %v541_v55, %v2726_v57 }
 0x2d7   :  { %v543_v29 = vpop.f32.mrf.mxu0  ;;  %v584_v34 = vpop.f32.mrf.mxu1 }
 0x2d8   :  { %v602_v48 = vadd.f32 %v598_v56, %v583_v61  ;;  %v544_v60 = vadd.f32 %v543_v29, %v2724_v54  ;;  %v600_v44 = vadd.f32 %v596_v52, %v542_v37  ;;  %v585_v53 = vadd.f32 %v584_v34, %v2735_v45 }
 0x2d9   :  { %v545_v46 = vpop.f32.mrf.mxu0  ;;  %v586_v62 = vpop.f32.mrf.mxu1 }
 0x2da   :  { %v606_v38 = vmul.f32 0.5, %v602_v48  ;;  %v601_v41 = vadd.f32 %v597_v0, %v544_v60  ;;  %v603_v56 = vadd.f32 %v599_v43, %v585_v53 }
 0x2db   :  { %v546_v39 = vpop.f32.mrf.mxu0  ;;  %v587_v42 = vpop.f32.mrf.mxu1 }
 0x2dc   :  { %2278 = vtanh.f32 %v606_v38  ;;  %v605_v63 = vmul.f32 0.5, %v601_v41  ;;  %v607_v59 = vmul.f32 0.5, %v603_v56 }
 0x2de   :  { %2280 = vtanh.f32 %v605_v63 }
 0x2df   :  { %2282 = vtanh.f32 %v600_v44 }
 0x2e0   :  { %2284 = vtanh.f32 %v607_v59 }
 0x2e9   :  { %v2279_v61 = vpop.eup %2278 }
 0x2ea   :  { %v612_v29 = vmul.f32 0.5, %v2279_v61 }
 0x2eb   :  { %v2281_v55 = vpop.eup %2280 }
 0x2ec   :  { %v615_v46 = vadd.f32 0.5, %v612_v29  ;;  %v611_v62 = vmul.f32 0.5, %v2281_v55  ;;  %v2283_v48 = vpop.eup %2282 }
 0x2ed   :  { %v2285_v34 = vpop.eup %2284 }
 0x2ee   :  { %v614_v0 = vadd.f32 0.5, %v611_v62  ;;  %v617_v60 = vmul.f32 %v615_v46, %v2811_v40  ;;  %v613_v28 = vmul.f32 0.5, %v2285_v34  ;;  %v710_v40 = vpop.permute.xlu1 %709 }
 0x2ef   :  { %v714_v43 = vmul.f32 %v710_v40, %v2714_v47  ;;  %v713_v55 = vmul.f32 %v710_v40, %v2721_v51 }
 0x2f0   :  { %v618_v38 = vmul.f32 %v2283_v48, %v614_v0  ;;  %v616_v52 = vadd.f32 0.5, %v613_v28  ;;  %v712_v28 = vmul.f32 %v710_v40, %v2728_v58 }
 0x2f2   :  { %v2857_v37 = vadd.f32 %v618_v38, %v617_v60 }
 0x2f4   :  { %2286 = vtanh.f32 %v2857_v37 }
 0x301   :  { %v2287_v41 = vpop.eup %2286 }
 0x302   :  { %v621_v39 = vmul.f32 %v2287_v41, %v616_v52 }
 0x304   :  { %v622_v42 = vpack.c.bf16 %v621_v39, %v621_v39 }
 0x306   :  { %656 = vmatmul.mubr.bf16.vlgmr.msra.gmra.mxu0 %v622_v42  ;;  %697 = vmatmul.mubr.bf16.vlgmr.msra.gmra.mxu1 %v622_v42  ;;  %v715_v42 = vmul.f32 %v710_v40, %v2737_v49 }
 0x307   :  { %740 = vmatpush1.bf16.msra.mxu0 %v2558_v4  ;;  %781 = vmatpush1.bf16.msra.mxu1 %v2560_v5 }
 0x308   :  { %741 = vmatprep.subr.bf16.mxu0 %v2563_v6  ;;  %782 = vmatprep.subr.bf16.mxu1 %v2567_v7 }
 0x309   :  { %771 = vmatprep.mubr.bf16.mxu0 %v2507_v1  ;;  %812 = vmatprep.mubr.bf16.mxu1 %v2507_v1 }
 0x30b   :  { %742 = vmatpush1.bf16.msra.mxu0 %v2569_v8  ;;  %783 = vmatpush1.bf16.msra.mxu1 %v2572_v9 }
 0x30c   :  { %743 = vmatprep.subr.bf16.mxu0 %v2575_v10  ;;  %784 = vmatprep.subr.bf16.mxu1 %v2577_v11 }
 0x30f   :  { %744 = vmatpush1.bf16.msra.mxu0 %v2579_v12  ;;  %785 = vmatpush1.bf16.msra.mxu1 %v2581_v13 }
 0x310   :  { %745 = vmatprep.subr.bf16.mxu0 %v2585_v14  ;;  %786 = vmatprep.subr.bf16.mxu1 %v2589_v15 }
 0x313   :  { %746 = vmatpush1.bf16.msra.mxu0 %v2591_v16  ;;  %787 = vmatpush1.bf16.msra.mxu1 %v2595_v17 }
 0x314   :  { %747 = vmatprep.subr.bf16.mxu0 %v2597_v18  ;;  %788 = vmatprep.subr.bf16.mxu1 %v2601_v19 }
 0x317   :  { %748 = vmatpush1.bf16.msra.mxu0 %v2603_v20  ;;  %789 = vmatpush1.bf16.msra.mxu1 %v2605_v21 }
 0x318   :  { %749 = vmatprep.subr.bf16.mxu0 %v2609_v22  ;;  %790 = vmatprep.subr.bf16.mxu1 %v2613_v23 }
 0x31b   :  { %750 = vmatpush1.bf16.msra.mxu0 %v2617_v24  ;;  %791 = vmatpush1.bf16.msra.mxu1 %v2619_v25 }
 0x31c   :  { %751 = vmatprep.subr.bf16.mxu0 %v2623_v26  ;;  %792 = vmatprep.subr.bf16.mxu1 %v2625_v27 }
 0x31f   :  { %752 = vmatpush1.bf16.msra.mxu0 %v2635_v30  ;;  %793 = vmatpush1.bf16.msra.mxu1 %v2637_v31 }
 0x320   :  { %753 = vmatprep.subr.bf16.mxu0 %v2641_v32  ;;  %794 = vmatprep.subr.bf16.mxu1 %v2643_v33 }
 0x323   :  { %754 = vmatpush1.bf16.msra.mxu0 %v2650_v35  ;;  %795 = vmatpush1.bf16.msra.mxu1 %v2652_v36 }
 0x324   :  { %855 = vmatprep.subr.bf16.mxu0 %v2553_v2  ;;  %896 = vmatprep.subr.bf16.mxu1 %v2555_v3 }
 0x3c6   :  { %v657_v63 = vpop.f32.mrf.mxu0  ;;  %v698_v44 = vpop.f32.mrf.mxu1 }
 0x3c7   :  { %v699_v53 = vadd.f32 %v698_v44, %v2719_v50  ;;  %v658_v0 = vadd.f32 %v657_v63, %v2726_v57 }
 0x3c8   :  { %v659_v56 = vpop.f32.mrf.mxu0  ;;  %v700_v59 = vpop.f32.mrf.mxu1 }
 0x3c9   :  { %v718_v61 = vadd.f32 %v714_v43, %v699_v53  ;;  %v660_v29 = vadd.f32 %v659_v56, %v2724_v54  ;;  %v716_v41 = vadd.f32 %v712_v28, %v658_v0  ;;  %v701_v39 = vadd.f32 %v700_v59, %v2735_v45 }
 0x3ca   :  { %v661_v46 = vpop.f32.mrf.mxu0  ;;  %v702_v62 = vpop.f32.mrf.mxu1 }
 0x3cb   :  { %v722_v48 = vmul.f32 0.5, %v718_v61  ;;  %v717_v60 = vadd.f32 %v713_v55, %v660_v29  ;;  %v719_v44 = vadd.f32 %v715_v42, %v701_v39 }
 0x3cc   :  { %v662_v38 = vpop.f32.mrf.mxu0  ;;  %v703_v34 = vpop.f32.mrf.mxu1 }
 0x3cd   :  { %2288 = vtanh.f32 %v722_v48  ;;  %v721_v52 = vmul.f32 0.5, %v717_v60  ;;  %v723_v53 = vmul.f32 0.5, %v719_v44 }
 0x3cf   :  { %2290 = vtanh.f32 %v721_v52 }
 0x3d0   :  { %2292 = vtanh.f32 %v716_v41 }
 0x3d1   :  { %2294 = vtanh.f32 %v723_v53 }
 0x3da   :  { %v2289_v43 = vpop.eup %2288 }
 0x3db   :  { %v728_v56 = vmul.f32 0.5, %v2289_v43 }
 0x3dc   :  { %v2291_v63 = vpop.eup %2290 }
 0x3dd   :  { %v731_v61 = vadd.f32 0.5, %v728_v56  ;;  %v727_v29 = vmul.f32 0.5, %v2291_v63  ;;  %v2293_v46 = vpop.eup %2292 }
 0x3de   :  { %v2295_v59 = vpop.eup %2294 }
 0x3df   :  { %v730_v55 = vadd.f32 0.5, %v727_v29  ;;  %v733_v62 = vmul.f32 %v731_v61, %v2857_v37  ;;  %v729_v60 = vmul.f32 0.5, %v2295_v59 }
 0x3e1   :  { %v734_v48 = vmul.f32 %v2293_v46, %v730_v55  ;;  %v732_v40 = vadd.f32 0.5, %v729_v60 }
 0x3e3   :  { %v2903_v0 = vadd.f32 %v734_v48, %v733_v62 }
 0x3e5   :  { %2296 = vtanh.f32 %v2903_v0 }
 0x3f2   :  { %v2297_v38 = vpop.eup %2296 }
 0x3f3   :  { %v737_v34 = vmul.f32 %v2297_v38, %v732_v40  ;;  %v2952_v38 = vld [vmem:[#allocation3 + $0xe0] ss:$16 sps:$4 sm:$0xff]  }
 0x3f5   :  { %v738_v28 = vpack.c.bf16 %v737_v34, %v737_v34  ;;  %v2955_v34 = vld [vmem:[#allocation3 + $0xe8] ss:$16 sps:$4 sm:$0xff]  }
 0x3f7   :  { %772 = vmatmul.mubr.bf16.vlgmr.msra.gmra.mxu0 %v738_v28  ;;  %813 = vmatmul.mubr.bf16.vlgmr.msra.gmra.mxu1 %v738_v28  ;;  %v2961_v28 = vld [vmem:[#allocation3 + $0xcc] ss:$16 sps:$4 sm:$0xff]  }
 0x3f8   :  { %856 = vmatpush1.bf16.msra.mxu0 %v2558_v4  ;;  %897 = vmatpush1.bf16.msra.mxu1 %v2560_v5  ;;  %v826_v4 = vpop.permute.xlu0 %825 }
 0x3f9   :  { %857 = vmatprep.subr.bf16.mxu0 %v2563_v6  ;;  %898 = vmatprep.subr.bf16.mxu1 %v2567_v7  ;;  %v831_v37 = vmul.f32 %v826_v4, %v2737_v49 }
 0x3fa   :  { %887 = vmatprep.mubr.bf16.mxu0 %v2507_v1  ;;  %928 = vmatprep.mubr.bf16.mxu1 %v2507_v1 }
 0x3fc   :  { %858 = vmatpush1.bf16.msra.mxu0 %v2569_v8  ;;  %899 = vmatpush1.bf16.msra.mxu1 %v2572_v9  ;;  %v830_v8 = vmul.f32 %v826_v4, %v2714_v47 }
 0x3fd   :  { %859 = vmatprep.subr.bf16.mxu0 %v2575_v10  ;;  %900 = vmatprep.subr.bf16.mxu1 %v2577_v11 }
 0x400   :  { %860 = vmatpush1.bf16.msra.mxu0 %v2579_v12  ;;  %901 = vmatpush1.bf16.msra.mxu1 %v2581_v13  ;;  %v829_v13 = vmul.f32 %v826_v4, %v2721_v51 }
 0x401   :  { %861 = vmatprep.subr.bf16.mxu0 %v2585_v14  ;;  %902 = vmatprep.subr.bf16.mxu1 %v2589_v15 }
 0x404   :  { %862 = vmatpush1.bf16.msra.mxu0 %v2591_v16  ;;  %903 = vmatpush1.bf16.msra.mxu1 %v2595_v17 }
 0x405   :  { %863 = vmatprep.subr.bf16.mxu0 %v2597_v18  ;;  %904 = vmatprep.subr.bf16.mxu1 %v2601_v19  ;;  %v828_v19 = vmul.f32 %v826_v4, %v2728_v58  ;;  %v2966_v4 = vld [vmem:[#allocation3 + $0xc0] ss:$16 sps:$4 sm:$0xff]  }
 0x408   :  { %864 = vmatpush1.bf16.msra.mxu0 %v2603_v20  ;;  %905 = vmatpush1.bf16.msra.mxu1 %v2605_v21 }
 0x409   :  { %865 = vmatprep.subr.bf16.mxu0 %v2609_v22  ;;  %906 = vmatprep.subr.bf16.mxu1 %v2613_v23 }
 0x40c   :  { %866 = vmatpush1.bf16.msra.mxu0 %v2617_v24  ;;  %907 = vmatpush1.bf16.msra.mxu1 %v2619_v25 }
 0x40d   :  { %867 = vmatprep.subr.bf16.mxu0 %v2623_v26  ;;  %908 = vmatprep.subr.bf16.mxu1 %v2625_v27 }
 0x410   :  { %868 = vmatpush1.bf16.msra.mxu0 %v2635_v30  ;;  %909 = vmatpush1.bf16.msra.mxu1 %v2637_v31 }
 0x411   :  { %869 = vmatprep.subr.bf16.mxu0 %v2641_v32  ;;  %910 = vmatprep.subr.bf16.mxu1 %v2643_v33 }
 0x414   :  { %870 = vmatpush1.bf16.msra.mxu0 %v2650_v35  ;;  %911 = vmatpush1.bf16.msra.mxu1 %v2652_v36 }
 0x415   :  { %971 = vmatprep.subr.bf16.mxu0 %v2553_v2  ;;  %1012 = vmatprep.subr.bf16.mxu1 %v2555_v3 }
 0x4b7   :  { %v773_v5 = vpop.f32.mrf.mxu0  ;;  %v814_v6 = vpop.f32.mrf.mxu1 }
 0x4b8   :  { %v815_v7 = vadd.f32 %v814_v6, %v2719_v50  ;;  %v774_v2 = vadd.f32 %v773_v5, %v2726_v57  ;;  %v2969_v5 = vld [vmem:[#allocation3 + $0xc8] ss:$16 sps:$4 sm:$0xff]   ;;  %v2972_v6 = vld [vmem:[#allocation3 + $0xa4] ss:$16 sps:$4 sm:$0xff]  }
 0x4b9   :  { %v775_v9 = vpop.f32.mrf.mxu0  ;;  %v816_v10 = vpop.f32.mrf.mxu1 }
 0x4ba   :  { %v834_v11 = vadd.f32 %v830_v8, %v815_v7  ;;  %v776_v12 = vadd.f32 %v775_v9, %v2724_v54  ;;  %v832_v21 = vadd.f32 %v828_v19, %v774_v2  ;;  %v817_v22 = vadd.f32 %v816_v10, %v2735_v45  ;;  %v2975_v7 = vld [vmem:[#allocation3 + $0xac] ss:$16 sps:$4 sm:$0xff]   ;;  %v2978_v8 = vld [vmem:[#allocation3 + $0xa0] ss:$16 sps:$4 sm:$0xff]   ;;  %v2981_v9 = vld [vmem:[#allocation3 + $0xa8] ss:$16 sps:$4 sm:$0xff]  }
 0x4bb   :  { %v777_v14 = vpop.f32.mrf.mxu0  ;;  %v818_v15 = vpop.f32.mrf.mxu1  ;;  %v2984_v10 = vld [vmem:[#allocation3 + $0x84] ss:$16 sps:$4 sm:$0xff]   ;;  %v3002_v2 = vld [vmem:[#allocation3 + $0x60] ss:$16 sps:$4 sm:$0xff]  }
 0x4bc   :  { %v838_v16 = vmul.f32 0.5, %v834_v11  ;;  %v833_v3 = vadd.f32 %v829_v13, %v776_v12  ;;  %v835_v52 = vadd.f32 %v831_v37, %v817_v22  ;;  %v2987_v11 = vld [vmem:[#allocation3 + $0x8c] ss:$16 sps:$4 sm:$0xff]   ;;  %v2990_v12 = vld [vmem:[#allocation3 + $0x80] ss:$16 sps:$4 sm:$0xff]  }
 0x4bd   :  { %v778_v17 = vpop.f32.mrf.mxu0  ;;  %v819_v18 = vpop.f32.mrf.mxu1  ;;  %v2993_v13 = vld [vmem:[#allocation3 + $0x88] ss:$16 sps:$4 sm:$0xff]   ;;  %v2996_v14 = vld [vmem:[#allocation3 + $0x64] ss:$16 sps:$4 sm:$0xff]   ;;  %v2999_v15 = vld [vmem:[#allocation3 + $0x6c] ss:$16 sps:$4 sm:$0xff]  }
 0x4be   :  { %2298 = vtanh.f32 %v838_v16  ;;  %v837_v20 = vmul.f32 0.5, %v833_v3  ;;  %v839_v41 = vmul.f32 0.5, %v835_v52  ;;  %v3005_v16 = vld [vmem:[#allocation3 + $0x68] ss:$16 sps:$4 sm:$0xff]   ;;  %v3008_v3 = vld [vmem:[#allocation3 + $0x44] ss:$16 sps:$4 sm:$0xff]  }
 0x4c0   :  { %2300 = vtanh.f32 %v837_v20 }
 0x4c1   :  { %2302 = vtanh.f32 %v832_v21 }
 0x4c2   :  { %2304 = vtanh.f32 %v839_v41 }
 0x4cb   :  { %v2299_v39 = vpop.eup %2298 }
 0x4cc   :  { %v844_v42 = vmul.f32 0.5, %v2299_v39 }
 0x4cd   :  { %v2301_v44 = vpop.eup %2300 }
 0x4ce   :  { %v847_v53 = vadd.f32 0.5, %v844_v42  ;;  %v843_v43 = vmul.f32 0.5, %v2301_v44  ;;  %v2303_v63 = vpop.eup %2302 }
 0x4cf   :  { %v2305_v46 = vpop.eup %2304 }
 0x4d0   :  { %v846_v56 = vadd.f32 0.5, %v843_v43  ;;  %v849_v61 = vmul.f32 %v847_v53, %v2903_v0  ;;  %v845_v62 = vmul.f32 0.5, %v2305_v46  ;;  %v2958_v0 = vld [vmem:[#allocation3 + $0xc4] ss:$16 sps:$4 sm:$0xff]  }
 0x4d2   :  { %v850_v29 = vmul.f32 %v2303_v63, %v846_v56  ;;  %v848_v48 = vadd.f32 0.5, %v845_v62 }
 0x4d4   :  { %v2949_v55 = vadd.f32 %v850_v29, %v849_v61 }
 0x4d6   :  { %2306 = vtanh.f32 %v2949_v55 }
 0x4e3   :  { %v2307_v59 = vpop.eup %2306 }
 0x4e4   :  { %v853_v60 = vmul.f32 %v2307_v59, %v848_v48 }
 0x4e6   :  { %v854_v40 = vpack.c.bf16 %v853_v60, %v853_v60 }
 0x4e8   :  { %888 = vmatmul.mubr.bf16.vlgmr.msra.gmra.mxu0 %v854_v40  ;;  %929 = vmatmul.mubr.bf16.vlgmr.msra.gmra.mxu1 %v854_v40 }
 0x4e9   :  { %972 = vmatpush1.bf16.msra.mxu0 %v2952_v38  ;;  %1013 = vmatpush1.bf16.msra.mxu1 %v2955_v34 }
 0x4ea   :  { %973 = vmatprep.subr.bf16.mxu0 %v2958_v0  ;;  %1014 = vmatprep.subr.bf16.mxu1 %v2961_v28 }
 0x4eb   :  { %1003 = vmatprep.mubr.bf16.mxu0 %v2507_v1  ;;  %1044 = vmatprep.mubr.bf16.mxu1 %v2507_v1 }
 0x4ed   :  { %974 = vmatpush1.bf16.msra.mxu0 %v2966_v4  ;;  %1015 = vmatpush1.bf16.msra.mxu1 %v2969_v5 }
 0x4ee   :  { %975 = vmatprep.subr.bf16.mxu0 %v2972_v6  ;;  %1016 = vmatprep.subr.bf16.mxu1 %v2975_v7 }
 0x4f1   :  { %976 = vmatpush1.bf16.msra.mxu0 %v2978_v8  ;;  %1017 = vmatpush1.bf16.msra.mxu1 %v2981_v9 }
 0x4f2   :  { %977 = vmatprep.subr.bf16.mxu0 %v2984_v10  ;;  %1018 = vmatprep.subr.bf16.mxu1 %v2987_v11 }
 0x4f5   :  { %978 = vmatpush1.bf16.msra.mxu0 %v2990_v12  ;;  %1019 = vmatpush1.bf16.msra.mxu1 %v2993_v13 }
 0x4f6   :  { %979 = vmatprep.subr.bf16.mxu0 %v2996_v14  ;;  %1020 = vmatprep.subr.bf16.mxu1 %v2999_v15 }
 0x4f9   :  { %980 = vmatpush1.bf16.msra.mxu0 %v3002_v2  ;;  %1021 = vmatpush1.bf16.msra.mxu1 %v3005_v16 }
 0x4fa   :  { %981 = vmatprep.subr.bf16.mxu0 %v3008_v3  ;;  %1022 = vmatprep.subr.bf16.mxu1 %v2613_v23  ;;  %v3022_v23 = vld [vmem:[#allocation3 + $0xe4] ss:$16 sps:$4 sm:$0xff]  }
 0x4fd   :  { %982 = vmatpush1.bf16.msra.mxu0 %v2617_v24  ;;  %1023 = vmatpush1.bf16.msra.mxu1 %v2619_v25  ;;  %v3025_v24 = vld [vmem:[#allocation3 + $0xec] ss:$16 sps:$4 sm:$0xff]   ;;  %v942_v25 = vpop.permute.xlu1 %941 }
 0x4fe   :  { %983 = vmatprep.subr.bf16.mxu0 %v2623_v26  ;;  %1024 = vmatprep.subr.bf16.mxu1 %v2625_v27  ;;  %v945_v17 = vmul.f32 %v942_v25, %v2721_v51  ;;  %v944_v41 = vmul.f32 %v942_v25, %v2728_v58  ;;  %v947_v53 = vmul.f32 %v942_v25, %v2737_v49 }
 0x501   :  { %984 = vmatpush1.bf16.msra.mxu0 %v2635_v30  ;;  %1025 = vmatpush1.bf16.msra.mxu1 %v2637_v31  ;;  %v946_v31 = vmul.f32 %v942_v25, %v2714_v47 }
 0x502   :  { %985 = vmatprep.subr.bf16.mxu0 %v2641_v32  ;;  %1026 = vmatprep.subr.bf16.mxu1 %v2643_v33 }
 0x505   :  { %986 = vmatpush1.bf16.msra.mxu0 %v2650_v35  ;;  %1027 = vmatpush1.bf16.msra.mxu1 %v2652_v36 }
 0x506   :  { %1087 = vmatprep.subr.bf16.mxu0 %v3022_v23  ;;  %1128 = vmatprep.subr.bf16.mxu1 %v3025_v24 }
 0x5a8   :  { %v889_v26 = vpop.f32.mrf.mxu0  ;;  %v930_v27 = vpop.f32.mrf.mxu1 }
 0x5a9   :  { %v931_v30 = vadd.f32 %v930_v27, %v2719_v50  ;;  %v890_v20 = vadd.f32 %v889_v26, %v2726_v57 }
 0x5aa   :  { %v891_v32 = vpop.f32.mrf.mxu0  ;;  %v932_v33 = vpop.f32.mrf.mxu1 }
 0x5ab   :  { %v950_v35 = vadd.f32 %v946_v31, %v931_v30  ;;  %v892_v36 = vadd.f32 %v891_v32, %v2724_v54  ;;  %v948_v42 = vadd.f32 %v944_v41, %v890_v20  ;;  %v933_v44 = vadd.f32 %v932_v33, %v2735_v45  ;;  %v3079_v20 = vld [vmem:[#allocation3 + $0x28] ss:$16 sps:$4 sm:$0xff]   ;;  %v1058_v41 = vpop.permute.xlu0 %1057 }
 0x5ac   :  { %v893_v18 = vpop.f32.mrf.mxu0  ;;  %v934_v19 = vpop.f32.mrf.mxu1 }
 0x5ad   :  { %v954_v21 = vmul.f32 0.5, %v950_v35  ;;  %v949_v22 = vadd.f32 %v945_v17, %v892_v36  ;;  %v951_v43 = vadd.f32 %v947_v53, %v933_v44  ;;  %v3064_v35 = vld [vmem:[#allocation3 + $0x40] ss:$16 sps:$4 sm:$0xff]   ;;  %v3067_v36 = vld [vmem:[#allocation3 + $0x48] ss:$16 sps:$4 sm:$0xff]   ;;  %v1062_v53 = vmul.f32 %v1058_v41, %v2714_v47 }
 0x5ae   :  { %v894_v37 = vpop.f32.mrf.mxu0  ;;  %v935_v52 = vpop.f32.mrf.mxu1  ;;  %v3070_v17 = vld [vmem:[#allocation3 + $0x24] ss:$16 sps:$4 sm:$0xff]   ;;  %v3073_v18 = vld [vmem:[#allocation3 + $0x2c] ss:$16 sps:$4 sm:$0xff]   ;;  %v3076_v19 = vld [vmem:[#allocation3 + $0x20] ss:$16 sps:$4 sm:$0xff]  }
 0x5af   :  { %2308 = vtanh.f32 %v954_v21  ;;  %v953_v39 = vmul.f32 0.5, %v949_v22  ;;  %v955_v56 = vmul.f32 0.5, %v951_v43  ;;  %v3082_v21 = vld [vmem:[#allocation3 + $0x4] ss:$16 sps:$4 sm:$0xff]   ;;  %v3085_v22 = vld [vmem:[#allocation3 + $0xc] ss:$16 sps:$4 sm:$0xff]  }
 0x5b0   :  { %v3088_v37 = vld [vmem:[#allocation3] ss:$16 sps:$4 sm:$0xff]   ;;  %v3091_v52 = vld [vmem:[#allocation3 + $0x8] ss:$16 sps:$4 sm:$0xff]  }
 0x5b1   :  { %2310 = vtanh.f32 %v953_v39 }
 0x5b2   :  { %2312 = vtanh.f32 %v948_v42 }
 0x5b3   :  { %2314 = vtanh.f32 %v955_v56 }
 0x5bc   :  { %v2309_v63 = vpop.eup %2308 }
 0x5bd   :  { %v960_v61 = vmul.f32 0.5, %v2309_v63 }
 0x5be   :  { %v2311_v29 = vpop.eup %2310 }
 0x5bf   :  { %v963_v46 = vadd.f32 0.5, %v960_v61  ;;  %v959_v62 = vmul.f32 0.5, %v2311_v29  ;;  %v2313_v59 = vpop.eup %2312  ;;  %v1061_v29 = vmul.f32 %v1058_v41, %v2721_v51 }
 0x5c0   :  { %v2315_v27 = vpop.eup %2314 }
 0x5c1   :  { %v962_v48 = vadd.f32 0.5, %v959_v62  ;;  %v965_v60 = vmul.f32 %v963_v46, %v2949_v55  ;;  %v961_v30 = vmul.f32 0.5, %v2315_v27  ;;  %v3061_v55 = vld [vmem:[#allocation3 + $0x4c] ss:$16 sps:$4 sm:$0xff]  }
 0x5c3   :  { %v966_v40 = vmul.f32 %v2313_v59, %v962_v48  ;;  %v964_v25 = vadd.f32 0.5, %v961_v30  ;;  %v1060_v30 = vmul.f32 %v1058_v41, %v2728_v58 }
 0x5c5   :  { %v3037_v26 = vadd.f32 %v966_v40, %v965_v60 }
 0x5c7   :  { %2316 = vtanh.f32 %v3037_v26 }
 0x5d4   :  { %v2317_v31 = vpop.eup %2316 }
 0x5d5   :  { %v969_v32 = vmul.f32 %v2317_v31, %v964_v25 }
 0x5d7   :  { %v970_v33 = vpack.c.bf16 %v969_v32, %v969_v32 }
 0x5d9   :  { %1004 = vmatmul.mubr.bf16.vlgmr.msra.gmra.mxu0 %v970_v33  ;;  %1045 = vmatmul.mubr.bf16.vlgmr.msra.gmra.mxu1 %v970_v33  ;;  %v1063_v33 = vmul.f32 %v1058_v41, %v2737_v49 }
 0x5da   :  { %1088 = vmatpush1.bf16.msra.mxu0 %v2952_v38  ;;  %1129 = vmatpush1.bf16.msra.mxu1 %v2955_v34 }
 0x5db   :  { %1089 = vmatprep.subr.bf16.mxu0 %v2958_v0  ;;  %1130 = vmatprep.subr.bf16.mxu1 %v2961_v28 }
 0x5dc   :  { %1119 = vmatprep.mubr.bf16.mxu0 %v2507_v1  ;;  %1160 = vmatprep.mubr.bf16.mxu1 %v2507_v1 }
 0x5de   :  { %1090 = vmatpush1.bf16.msra.mxu0 %v2966_v4  ;;  %1131 = vmatpush1.bf16.msra.mxu1 %v2969_v5 }
 0x5df   :  { %1091 = vmatprep.subr.bf16.mxu0 %v2972_v6  ;;  %1132 = vmatprep.subr.bf16.mxu1 %v2975_v7 }
 0x5e2   :  { %1092 = vmatpush1.bf16.msra.mxu0 %v2978_v8  ;;  %1133 = vmatpush1.bf16.msra.mxu1 %v2981_v9 }
 0x5e3   :  { %1093 = vmatprep.subr.bf16.mxu0 %v2984_v10  ;;  %1134 = vmatprep.subr.bf16.mxu1 %v2987_v11 }
 0x5e6   :  { %1094 = vmatpush1.bf16.msra.mxu0 %v2990_v12  ;;  %1135 = vmatpush1.bf16.msra.mxu1 %v2993_v13 }
 0x5e7   :  { %1095 = vmatprep.subr.bf16.mxu0 %v2996_v14  ;;  %1136 = vmatprep.subr.bf16.mxu1 %v2999_v15 }
 0x5ea   :  { %1096 = vmatpush1.bf16.msra.mxu0 %v3002_v2  ;;  %1137 = vmatpush1.bf16.msra.mxu1 %v3005_v16 }
 0x5eb   :  { %1097 = vmatprep.subr.bf16.mxu0 %v3008_v3  ;;  %1138 = vmatprep.subr.bf16.mxu1 %v3061_v55 }
 0x5ee   :  { %1098 = vmatpush1.bf16.msra.mxu0 %v3064_v35  ;;  %1139 = vmatpush1.bf16.msra.mxu1 %v3067_v36 }
 0x5ef   :  { %1099 = vmatprep.subr.bf16.mxu0 %v3070_v17  ;;  %1140 = vmatprep.subr.bf16.mxu1 %v3073_v18 }
 0x5f2   :  { %1100 = vmatpush1.bf16.msra.mxu0 %v3076_v19  ;;  %1141 = vmatpush1.bf16.msra.mxu1 %v3079_v20 }
 0x5f3   :  { %1101 = vmatprep.subr.bf16.mxu0 %v3082_v21  ;;  %1142 = vmatprep.subr.bf16.mxu1 %v3085_v22 }
 0x5f6   :  { %1102 = vmatpush1.bf16.msra.mxu0 %v3088_v37  ;;  %1143 = vmatpush1.bf16.msra.mxu1 %v3091_v52 }
 0x5f7   :  { %1203 = vmatprep.subr.bf16.mxu0 %v3022_v23  ;;  %1244 = vmatprep.subr.bf16.mxu1 %v3025_v24 }
 0x699   :  { %v1005_v39 = vpop.f32.mrf.mxu0  ;;  %v1046_v42 = vpop.f32.mrf.mxu1 }
 0x69a   :  { %v1047_v44 = vadd.f32 %v1046_v42, %v2719_v50  ;;  %v1006_v48 = vadd.f32 %v1005_v39, %v2726_v57 }
 0x69b   :  { %v1007_v43 = vpop.f32.mrf.mxu0  ;;  %v1048_v56 = vpop.f32.mrf.mxu1 }
 0x69c   :  { %v1066_v63 = vadd.f32 %v1062_v53, %v1047_v44  ;;  %v1008_v61 = vadd.f32 %v1007_v43, %v2724_v54  ;;  %v1064_v31 = vadd.f32 %v1060_v30, %v1006_v48  ;;  %v1049_v32 = vadd.f32 %v1048_v56, %v2735_v45 }
 0x69d   :  { %v1009_v46 = vpop.f32.mrf.mxu0  ;;  %v1050_v62 = vpop.f32.mrf.mxu1 }
 0x69e   :  { %v1070_v59 = vmul.f32 0.5, %v1066_v63  ;;  %v1065_v60 = vadd.f32 %v1061_v29, %v1008_v61  ;;  %v1067_v42 = vadd.f32 %v1063_v33, %v1049_v32 }
 0x69f   :  { %v1010_v40 = vpop.f32.mrf.mxu0  ;;  %v1051_v27 = vpop.f32.mrf.mxu1 }
 0x6a0   :  { %2318 = vtanh.f32 %v1070_v59  ;;  %v1069_v25 = vmul.f32 0.5, %v1065_v60  ;;  %v1071_v44 = vmul.f32 0.5, %v1067_v42 }
 0x6a2   :  { %2320 = vtanh.f32 %v1069_v25 }
 0x6a3   :  { %2322 = vtanh.f32 %v1064_v31 }
 0x6a4   :  { %2324 = vtanh.f32 %v1071_v44 }
 0x6ad   :  { %v2319_v53 = vpop.eup %2318 }
 0x6ae   :  { %v1076_v43 = vmul.f32 0.5, %v2319_v53 }
 0x6af   :  { %v2321_v39 = vpop.eup %2320 }
 0x6b0   :  { %v1079_v63 = vadd.f32 0.5, %v1076_v43  ;;  %v1075_v61 = vmul.f32 0.5, %v2321_v39  ;;  %v2323_v46 = vpop.eup %2322 }
 0x6b1   :  { %v2325_v56 = vpop.eup %2324 }
 0x6b2   :  { %v1078_v29 = vadd.f32 0.5, %v1075_v61  ;;  %v1081_v62 = vmul.f32 %v1079_v63, %v3037_v26  ;;  %v1077_v60 = vmul.f32 0.5, %v2325_v56  ;;  %v1174_v26 = vpop.permute.xlu1 %1173 }
 0x6b3   :  { %v1178_v33 = vmul.f32 %v1174_v26, %v2714_v47  ;;  %v1177_v39 = vmul.f32 %v1174_v26, %v2721_v51 }
 0x6b4   :  { %v1082_v59 = vmul.f32 %v2323_v46, %v1078_v29  ;;  %v1080_v41 = vadd.f32 0.5, %v1077_v60  ;;  %v1176_v60 = vmul.f32 %v1174_v26, %v2728_v58 }
 0x6b6   :  { %v3105_v48 = vadd.f32 %v1082_v59, %v1081_v62 }
 0x6b8   :  { %2326 = vtanh.f32 %v3105_v48 }
 0x6c5   :  { %v2327_v40 = vpop.eup %2326 }
 0x6c6   :  { %v1085_v27 = vmul.f32 %v2327_v40, %v1080_v41 }
 0x6c8   :  { %v1086_v30 = vpack.c.bf16 %v1085_v27, %v1085_v27 }
 0x6ca   :  { %1120 = vmatmul.mubr.bf16.vlgmr.msra.gmra.mxu0 %v1086_v30  ;;  %1161 = vmatmul.mubr.bf16.vlgmr.msra.gmra.mxu1 %v1086_v30  ;;  %v1179_v30 = vmul.f32 %v1174_v26, %v2737_v49 }
 0x6cb   :  { %1204 = vmatpush1.bf16.msra.mxu0 %v2952_v38  ;;  %1245 = vmatpush1.bf16.msra.mxu1 %v2955_v34 }
 0x6cc   :  { %1205 = vmatprep.subr.bf16.mxu0 %v2958_v0  ;;  %1246 = vmatprep.subr.bf16.mxu1 %v2961_v28 }
 0x6cd   :  { %1235 = vmatprep.mubr.bf16.mxu0 %v2507_v1  ;;  %1276 = vmatprep.mubr.bf16.mxu1 %v2507_v1 }
 0x6cf   :  { %1206 = vmatpush1.bf16.msra.mxu0 %v2966_v4  ;;  %1247 = vmatpush1.bf16.msra.mxu1 %v2969_v5 }
 0x6d0   :  { %1207 = vmatprep.subr.bf16.mxu0 %v2972_v6  ;;  %1248 = vmatprep.subr.bf16.mxu1 %v2975_v7 }
 0x6d3   :  { %1208 = vmatpush1.bf16.msra.mxu0 %v2978_v8  ;;  %1249 = vmatpush1.bf16.msra.mxu1 %v2981_v9 }
 0x6d4   :  { %1209 = vmatprep.subr.bf16.mxu0 %v2984_v10  ;;  %1250 = vmatprep.subr.bf16.mxu1 %v2987_v11 }
 0x6d7   :  { %1210 = vmatpush1.bf16.msra.mxu0 %v2990_v12  ;;  %1251 = vmatpush1.bf16.msra.mxu1 %v2993_v13 }
 0x6d8   :  { %1211 = vmatprep.subr.bf16.mxu0 %v2996_v14  ;;  %1252 = vmatprep.subr.bf16.mxu1 %v2999_v15 }
 0x6db   :  { %1212 = vmatpush1.bf16.msra.mxu0 %v3002_v2  ;;  %1253 = vmatpush1.bf16.msra.mxu1 %v3005_v16 }
 0x6dc   :  { %1213 = vmatprep.subr.bf16.mxu0 %v3008_v3  ;;  %1254 = vmatprep.subr.bf16.mxu1 %v3061_v55 }
 0x6df   :  { %1214 = vmatpush1.bf16.msra.mxu0 %v3064_v35  ;;  %1255 = vmatpush1.bf16.msra.mxu1 %v3067_v36 }
 0x6e0   :  { %1215 = vmatprep.subr.bf16.mxu0 %v3070_v17  ;;  %1256 = vmatprep.subr.bf16.mxu1 %v3073_v18 }
 0x6e3   :  { %1216 = vmatpush1.bf16.msra.mxu0 %v3076_v19  ;;  %1257 = vmatpush1.bf16.msra.mxu1 %v3079_v20 }
 0x6e4   :  { %1217 = vmatprep.subr.bf16.mxu0 %v3082_v21  ;;  %1258 = vmatprep.subr.bf16.mxu1 %v3085_v22 }
 0x6e7   :  { %1218 = vmatpush1.bf16.msra.mxu0 %v3088_v37  ;;  %1259 = vmatpush1.bf16.msra.mxu1 %v3091_v52 }
 0x6e8   :  { %1319 = vmatprep.subr.bf16.mxu0 %v3022_v23  ;;  %1360 = vmatprep.subr.bf16.mxu1 %v3025_v24 }
 0x78a   :  { %v1121_v25 = vpop.f32.mrf.mxu0  ;;  %v1162_v31 = vpop.f32.mrf.mxu1 }
 0x78b   :  { %v1163_v32 = vadd.f32 %v1162_v31, %v2719_v50  ;;  %v1122_v29 = vadd.f32 %v1121_v25, %v2726_v57 }
 0x78c   :  { %v1123_v42 = vpop.f32.mrf.mxu0  ;;  %v1164_v44 = vpop.f32.mrf.mxu1 }
 0x78d   :  { %v1182_v53 = vadd.f32 %v1178_v33, %v1163_v32  ;;  %v1124_v43 = vadd.f32 %v1123_v42, %v2724_v54  ;;  %v1180_v40 = vadd.f32 %v1176_v60, %v1122_v29  ;;  %v1165_v27 = vadd.f32 %v1164_v44, %v2735_v45 }
 0x78e   :  { %v1125_v63 = vpop.f32.mrf.mxu0  ;;  %v1166_v61 = vpop.f32.mrf.mxu1 }
 0x78f   :  { %v1186_v46 = vmul.f32 0.5, %v1182_v53  ;;  %v1181_v62 = vadd.f32 %v1177_v39, %v1124_v43  ;;  %v1183_v31 = vadd.f32 %v1179_v30, %v1165_v27 }
 0x790   :  { %v1126_v59 = vpop.f32.mrf.mxu0  ;;  %v1167_v56 = vpop.f32.mrf.mxu1 }
 0x791   :  { %2328 = vtanh.f32 %v1186_v46  ;;  %v1185_v41 = vmul.f32 0.5, %v1181_v62  ;;  %v1187_v32 = vmul.f32 0.5, %v1183_v31 }
 0x793   :  { %2330 = vtanh.f32 %v1185_v41 }
 0x794   :  { %2332 = vtanh.f32 %v1180_v40 }
 0x795   :  { %2334 = vtanh.f32 %v1187_v32 }
 0x79e   :  { %v2329_v33 = vpop.eup %2328 }
 0x79f   :  { %v1192_v42 = vmul.f32 0.5, %v2329_v33 }
 0x7a0   :  { %v2331_v25 = vpop.eup %2330 }
 0x7a1   :  { %v1195_v53 = vadd.f32 0.5, %v1192_v42  ;;  %v1191_v43 = vmul.f32 0.5, %v2331_v25  ;;  %v2333_v63 = vpop.eup %2332 }
 0x7a2   :  { %v2335_v44 = vpop.eup %2334 }
 0x7a3   :  { %v1194_v39 = vadd.f32 0.5, %v1191_v43  ;;  %v1197_v61 = vmul.f32 %v1195_v53, %v3105_v48  ;;  %v1193_v62 = vmul.f32 0.5, %v2335_v44  ;;  %v1290_v48 = vpop.permute.xlu0 %1289 }
 0x7a4   :  { %v1294_v30 = vmul.f32 %v1290_v48, %v2714_v47  ;;  %v1293_v25 = vmul.f32 %v1290_v48, %v2721_v51 }
 0x7a5   :  { %v1198_v46 = vmul.f32 %v2333_v63, %v1194_v39  ;;  %v1196_v26 = vadd.f32 0.5, %v1193_v62  ;;  %v1292_v62 = vmul.f32 %v1290_v48, %v2728_v58 }
 0x7a7   :  { %v3151_v29 = vadd.f32 %v1198_v46, %v1197_v61 }
 0x7a9   :  { %2336 = vtanh.f32 %v3151_v29 }
 0x7b6   :  { %v2337_v59 = vpop.eup %2336 }
 0x7b7   :  { %v1201_v56 = vmul.f32 %v2337_v59, %v1196_v26 }
 0x7b9   :  { %v1202_v60 = vpack.c.bf16 %v1201_v56, %v1201_v56 }
 0x7bb   :  { %1236 = vmatmul.mubr.bf16.vlgmr.msra.gmra.mxu0 %v1202_v60  ;;  %1277 = vmatmul.mubr.bf16.vlgmr.msra.gmra.mxu1 %v1202_v60  ;;  %v1295_v60 = vmul.f32 %v1290_v48, %v2737_v49 }
 0x7bc   :  { %1320 = vmatpush1.bf16.msra.mxu0 %v2952_v38  ;;  %1361 = vmatpush1.bf16.msra.mxu1 %v2955_v34 }
 0x7bd   :  { %1321 = vmatprep.subr.bf16.mxu0 %v2958_v0  ;;  %1362 = vmatprep.subr.bf16.mxu1 %v2961_v28 }
 0x7be   :  { %1351 = vmatprep.mubr.bf16.mxu0 %v2507_v1  ;;  %1392 = vmatprep.mubr.bf16.mxu1 %v2507_v1 }
 0x7c0   :  { %1322 = vmatpush1.bf16.msra.mxu0 %v2966_v4  ;;  %1363 = vmatpush1.bf16.msra.mxu1 %v2969_v5 }
 0x7c1   :  { %1323 = vmatprep.subr.bf16.mxu0 %v2972_v6  ;;  %1364 = vmatprep.subr.bf16.mxu1 %v2975_v7 }
 0x7c4   :  { %1324 = vmatpush1.bf16.msra.mxu0 %v2978_v8  ;;  %1365 = vmatpush1.bf16.msra.mxu1 %v2981_v9 }
 0x7c5   :  { %1325 = vmatprep.subr.bf16.mxu0 %v2984_v10  ;;  %1366 = vmatprep.subr.bf16.mxu1 %v2987_v11 }
 0x7c8   :  { %1326 = vmatpush1.bf16.msra.mxu0 %v2990_v12  ;;  %1367 = vmatpush1.bf16.msra.mxu1 %v2993_v13 }
 0x7c9   :  { %1327 = vmatprep.subr.bf16.mxu0 %v2996_v14  ;;  %1368 = vmatprep.subr.bf16.mxu1 %v2999_v15 }
 0x7cc   :  { %1328 = vmatpush1.bf16.msra.mxu0 %v3002_v2  ;;  %1369 = vmatpush1.bf16.msra.mxu1 %v3005_v16 }
 0x7cd   :  { %1329 = vmatprep.subr.bf16.mxu0 %v3008_v3  ;;  %1370 = vmatprep.subr.bf16.mxu1 %v3061_v55 }
 0x7d0   :  { %1330 = vmatpush1.bf16.msra.mxu0 %v3064_v35  ;;  %1371 = vmatpush1.bf16.msra.mxu1 %v3067_v36 }
 0x7d1   :  { %1331 = vmatprep.subr.bf16.mxu0 %v3070_v17  ;;  %1372 = vmatprep.subr.bf16.mxu1 %v3073_v18 }
 0x7d4   :  { %1332 = vmatpush1.bf16.msra.mxu0 %v3076_v19  ;;  %1373 = vmatpush1.bf16.msra.mxu1 %v3079_v20 }
 0x7d5   :  { %1333 = vmatprep.subr.bf16.mxu0 %v3082_v21  ;;  %1374 = vmatprep.subr.bf16.mxu1 %v3085_v22 }
 0x7d8   :  { %1334 = vmatpush1.bf16.msra.mxu0 %v3088_v37  ;;  %1375 = vmatpush1.bf16.msra.mxu1 %v3091_v52 }
 0x7d9   :  { %1435 = vmatprep.subr.bf16.mxu0 %v3022_v23  ;;  %1476 = vmatprep.subr.bf16.mxu1 %v3025_v24 }
 0x87b   :  { %v1237_v41 = vpop.f32.mrf.mxu0  ;;  %v1278_v40 = vpop.f32.mrf.mxu1 }
 0x87c   :  { %v1279_v27 = vadd.f32 %v1278_v40, %v2719_v50  ;;  %v1238_v39 = vadd.f32 %v1237_v41, %v2726_v57 }
 0x87d   :  { %v1239_v31 = vpop.f32.mrf.mxu0  ;;  %v1280_v32 = vpop.f32.mrf.mxu1 }
 0x87e   :  { %v1298_v33 = vadd.f32 %v1294_v30, %v1279_v27  ;;  %v1240_v42 = vadd.f32 %v1239_v31, %v2724_v54  ;;  %v1296_v59 = vadd.f32 %v1292_v62, %v1238_v39  ;;  %v1281_v56 = vadd.f32 %v1280_v32, %v2735_v45 }
 0x87f   :  { %v1241_v53 = vpop.f32.mrf.mxu0  ;;  %v1282_v43 = vpop.f32.mrf.mxu1 }
 0x880   :  { %v1302_v63 = vmul.f32 0.5, %v1298_v33  ;;  %v1297_v61 = vadd.f32 %v1293_v25, %v1240_v42  ;;  %v1299_v40 = vadd.f32 %v1295_v60, %v1281_v56 }
 0x881   :  { %v1242_v46 = vpop.f32.mrf.mxu0  ;;  %v1283_v44 = vpop.f32.mrf.mxu1 }
 0x882   :  { %2338 = vtanh.f32 %v1302_v63  ;;  %v1301_v26 = vmul.f32 0.5, %v1297_v61  ;;  %v1303_v27 = vmul.f32 0.5, %v1299_v40 }
 0x884   :  { %2340 = vtanh.f32 %v1301_v26 }
 0x885   :  { %2342 = vtanh.f32 %v1296_v59 }
 0x886   :  { %2344 = vtanh.f32 %v1303_v27 }
 0x88f   :  { %v2339_v30 = vpop.eup %2338 }
 0x890   :  { %v1308_v31 = vmul.f32 0.5, %v2339_v30 }
 0x891   :  { %v2341_v41 = vpop.eup %2340 }
 0x892   :  { %v1311_v33 = vadd.f32 0.5, %v1308_v31  ;;  %v1307_v42 = vmul.f32 0.5, %v2341_v41  ;;  %v2343_v53 = vpop.eup %2342 }
 0x893   :  { %v2345_v32 = vpop.eup %2344 }
 0x894   :  { %v1310_v25 = vadd.f32 0.5, %v1307_v42  ;;  %v1313_v43 = vmul.f32 %v1311_v33, %v3151_v29  ;;  %v1309_v61 = vmul.f32 0.5, %v2345_v32  ;;  %v1406_v29 = vpop.permute.xlu1 %1405 }
 0x895   :  { %v1410_v60 = vmul.f32 %v1406_v29, %v2714_v47  ;;  %v1409_v41 = vmul.f32 %v1406_v29, %v2721_v51 }
 0x896   :  { %v1314_v63 = vmul.f32 %v2343_v53, %v1310_v25  ;;  %v1312_v48 = vadd.f32 0.5, %v1309_v61  ;;  %v1408_v61 = vmul.f32 %v1406_v29, %v2728_v58 }
 0x898   :  { %v3197_v39 = vadd.f32 %v1314_v63, %v1313_v43 }
 0x89a   :  { %2346 = vtanh.f32 %v3197_v39 }
 0x8a7   :  { %v2347_v46 = vpop.eup %2346 }
 0x8a8   :  { %v1317_v44 = vmul.f32 %v2347_v46, %v1312_v48 }
 0x8aa   :  { %v1318_v62 = vpack.c.bf16 %v1317_v44, %v1317_v44 }
 0x8ac   :  { %1352 = vmatmul.mubr.bf16.vlgmr.msra.gmra.mxu0 %v1318_v62  ;;  %1393 = vmatmul.mubr.bf16.vlgmr.msra.gmra.mxu1 %v1318_v62  ;;  %v1411_v62 = vmul.f32 %v1406_v29, %v2737_v49 }
 0x8ad   :  { %1436 = vmatpush1.bf16.msra.mxu0 %v2952_v38  ;;  %1477 = vmatpush1.bf16.msra.mxu1 %v2955_v34 }
 0x8ae   :  { %1437 = vmatprep.subr.bf16.mxu0 %v2958_v0  ;;  %1478 = vmatprep.subr.bf16.mxu1 %v2961_v28 }
 0x8af   :  { %1467 = vmatprep.mubr.bf16.mxu0 %v2507_v1  ;;  %1508 = vmatprep.mubr.bf16.mxu1 %v2507_v1 }
 0x8b1   :  { %1438 = vmatpush1.bf16.msra.mxu0 %v2966_v4  ;;  %1479 = vmatpush1.bf16.msra.mxu1 %v2969_v5 }
 0x8b2   :  { %1439 = vmatprep.subr.bf16.mxu0 %v2972_v6  ;;  %1480 = vmatprep.subr.bf16.mxu1 %v2975_v7 }
 0x8b5   :  { %1440 = vmatpush1.bf16.msra.mxu0 %v2978_v8  ;;  %1481 = vmatpush1.bf16.msra.mxu1 %v2981_v9 }
 0x8b6   :  { %1441 = vmatprep.subr.bf16.mxu0 %v2984_v10  ;;  %1482 = vmatprep.subr.bf16.mxu1 %v2987_v11 }
 0x8b9   :  { %1442 = vmatpush1.bf16.msra.mxu0 %v2990_v12  ;;  %1483 = vmatpush1.bf16.msra.mxu1 %v2993_v13 }
 0x8ba   :  { %1443 = vmatprep.subr.bf16.mxu0 %v2996_v14  ;;  %1484 = vmatprep.subr.bf16.mxu1 %v2999_v15 }
 0x8bd   :  { %1444 = vmatpush1.bf16.msra.mxu0 %v3002_v2  ;;  %1485 = vmatpush1.bf16.msra.mxu1 %v3005_v16 }
 0x8be   :  { %1445 = vmatprep.subr.bf16.mxu0 %v3008_v3  ;;  %1486 = vmatprep.subr.bf16.mxu1 %v3061_v55 }
 0x8c1   :  { %1446 = vmatpush1.bf16.msra.mxu0 %v3064_v35  ;;  %1487 = vmatpush1.bf16.msra.mxu1 %v3067_v36 }
 0x8c2   :  { %1447 = vmatprep.subr.bf16.mxu0 %v3070_v17  ;;  %1488 = vmatprep.subr.bf16.mxu1 %v3073_v18 }
 0x8c5   :  { %1448 = vmatpush1.bf16.msra.mxu0 %v3076_v19  ;;  %1489 = vmatpush1.bf16.msra.mxu1 %v3079_v20 }
 0x8c6   :  { %1449 = vmatprep.subr.bf16.mxu0 %v3082_v21  ;;  %1490 = vmatprep.subr.bf16.mxu1 %v3085_v22 }
 0x8c9   :  { %1450 = vmatpush1.bf16.msra.mxu0 %v3088_v37  ;;  %1491 = vmatpush1.bf16.msra.mxu1 %v3091_v52 }
 0x8ca   :  { %1551 = vmatprep.subr.bf16.mxu0 %v3022_v23  ;;  %1592 = vmatprep.subr.bf16.mxu1 %v3025_v24 }
 0x96c   :  { %v1353_v26 = vpop.f32.mrf.mxu0  ;;  %v1394_v59 = vpop.f32.mrf.mxu1 }
 0x96d   :  { %v1395_v56 = vadd.f32 %v1394_v59, %v2719_v50  ;;  %v1354_v25 = vadd.f32 %v1353_v26, %v2726_v57 }
 0x96e   :  { %v1355_v40 = vpop.f32.mrf.mxu0  ;;  %v1396_v27 = vpop.f32.mrf.mxu1 }
 0x96f   :  { %v1414_v30 = vadd.f32 %v1410_v60, %v1395_v56  ;;  %v1356_v31 = vadd.f32 %v1355_v40, %v2724_v54  ;;  %v1412_v46 = vadd.f32 %v1408_v61, %v1354_v25  ;;  %v1397_v44 = vadd.f32 %v1396_v27, %v2735_v45 }
 0x970   :  { %v1357_v33 = vpop.f32.mrf.mxu0  ;;  %v1398_v42 = vpop.f32.mrf.mxu1 }
 0x971   :  { %v1418_v53 = vmul.f32 0.5, %v1414_v30  ;;  %v1413_v43 = vadd.f32 %v1409_v41, %v1356_v31  ;;  %v1415_v59 = vadd.f32 %v1411_v62, %v1397_v44 }
 0x972   :  { %v1358_v63 = vpop.f32.mrf.mxu0  ;;  %v1399_v32 = vpop.f32.mrf.mxu1 }
 0x973   :  { %2348 = vtanh.f32 %v1418_v53  ;;  %v1417_v48 = vmul.f32 0.5, %v1413_v43  ;;  %v1419_v56 = vmul.f32 0.5, %v1415_v59 }
 0x975   :  { %2350 = vtanh.f32 %v1417_v48 }
 0x976   :  { %2352 = vtanh.f32 %v1412_v46 }
 0x977   :  { %2354 = vtanh.f32 %v1419_v56 }
 0x980   :  { %v2349_v60 = vpop.eup %2348 }
 0x981   :  { %v1424_v40 = vmul.f32 0.5, %v2349_v60 }
 0x982   :  { %v2351_v26 = vpop.eup %2350 }
 0x983   :  { %v1427_v30 = vadd.f32 0.5, %v1424_v40  ;;  %v1423_v31 = vmul.f32 0.5, %v2351_v26  ;;  %v2353_v33 = vpop.eup %2352 }
 0x984   :  { %v2355_v27 = vpop.eup %2354 }
 0x985   :  { %v1426_v41 = vadd.f32 0.5, %v1423_v31  ;;  %v1429_v42 = vmul.f32 %v1427_v30, %v3197_v39  ;;  %v1425_v43 = vmul.f32 0.5, %v2355_v27  ;;  %v1522_v39 = vpop.permute.xlu0 %1521 }
 0x986   :  { %v1526_v62 = vmul.f32 %v1522_v39, %v2714_v47  ;;  %v1525_v26 = vmul.f32 %v1522_v39, %v2721_v51 }
 0x987   :  { %v1430_v53 = vmul.f32 %v2353_v33, %v1426_v41  ;;  %v1428_v29 = vadd.f32 0.5, %v1425_v43  ;;  %v1524_v43 = vmul.f32 %v1522_v39, %v2728_v58 }
 0x989   :  { %v3243_v25 = vadd.f32 %v1430_v53, %v1429_v42 }
 0x98b   :  { %2356 = vtanh.f32 %v3243_v25 }
 0x998   :  { %v2357_v63 = vpop.eup %2356 }
 0x999   :  { %v1433_v32 = vmul.f32 %v2357_v63, %v1428_v29 }
 0x99b   :  { %v1434_v61 = vpack.c.bf16 %v1433_v32, %v1433_v32 }
 0x99d   :  { %1468 = vmatmul.mubr.bf16.vlgmr.msra.gmra.mxu0 %v1434_v61  ;;  %1509 = vmatmul.mubr.bf16.vlgmr.msra.gmra.mxu1 %v1434_v61  ;;  %v1527_v61 = vmul.f32 %v1522_v39, %v2737_v49 }
 0x99e   :  { %1552 = vmatpush1.bf16.msra.mxu0 %v2952_v38  ;;  %1593 = vmatpush1.bf16.msra.mxu1 %v2955_v34 }
 0x99f   :  { %1553 = vmatprep.subr.bf16.mxu0 %v2958_v0  ;;  %1594 = vmatprep.subr.bf16.mxu1 %v2961_v28 }
 0x9a0   :  { %1583 = vmatprep.mubr.bf16.mxu0 %v2507_v1  ;;  %1624 = vmatprep.mubr.bf16.mxu1 %v2507_v1 }
 0x9a2   :  { %1554 = vmatpush1.bf16.msra.mxu0 %v2966_v4  ;;  %1595 = vmatpush1.bf16.msra.mxu1 %v2969_v5 }
 0x9a3   :  { %1555 = vmatprep.subr.bf16.mxu0 %v2972_v6  ;;  %1596 = vmatprep.subr.bf16.mxu1 %v2975_v7 }
 0x9a6   :  { %1556 = vmatpush1.bf16.msra.mxu0 %v2978_v8  ;;  %1597 = vmatpush1.bf16.msra.mxu1 %v2981_v9 }
 0x9a7   :  { %1557 = vmatprep.subr.bf16.mxu0 %v2984_v10  ;;  %1598 = vmatprep.subr.bf16.mxu1 %v2987_v11 }
 0x9aa   :  { %1558 = vmatpush1.bf16.msra.mxu0 %v2990_v12  ;;  %1599 = vmatpush1.bf16.msra.mxu1 %v2993_v13 }
 0x9ab   :  { %1559 = vmatprep.subr.bf16.mxu0 %v2996_v14  ;;  %1600 = vmatprep.subr.bf16.mxu1 %v2999_v15 }
 0x9ae   :  { %1560 = vmatpush1.bf16.msra.mxu0 %v3002_v2  ;;  %1601 = vmatpush1.bf16.msra.mxu1 %v3005_v16 }
 0x9af   :  { %1561 = vmatprep.subr.bf16.mxu0 %v3008_v3  ;;  %1602 = vmatprep.subr.bf16.mxu1 %v3061_v55 }
 0x9b2   :  { %1562 = vmatpush1.bf16.msra.mxu0 %v3064_v35  ;;  %1603 = vmatpush1.bf16.msra.mxu1 %v3067_v36 }
 0x9b3   :  { %1563 = vmatprep.subr.bf16.mxu0 %v3070_v17  ;;  %1604 = vmatprep.subr.bf16.mxu1 %v3073_v18 }
 0x9b6   :  { %1564 = vmatpush1.bf16.msra.mxu0 %v3076_v19  ;;  %1605 = vmatpush1.bf16.msra.mxu1 %v3079_v20 }
 0x9b7   :  { %1565 = vmatprep.subr.bf16.mxu0 %v3082_v21  ;;  %1606 = vmatprep.subr.bf16.mxu1 %v3085_v22 }
 0x9ba   :  { %1566 = vmatpush1.bf16.msra.mxu0 %v3088_v37  ;;  %1607 = vmatpush1.bf16.msra.mxu1 %v3091_v52 }
 0x9bb   :  { %1667 = vmatprep.subr.bf16.mxu0 %v3022_v23  ;;  %1708 = vmatprep.subr.bf16.mxu1 %v3025_v24 }
 0xa5d   :  { %v1469_v48 = vpop.f32.mrf.mxu0  ;;  %v1510_v46 = vpop.f32.mrf.mxu1 }
 0xa5e   :  { %v1511_v44 = vadd.f32 %v1510_v46, %v2719_v50  ;;  %v1470_v41 = vadd.f32 %v1469_v48, %v2726_v57 }
 0xa5f   :  { %v1471_v59 = vpop.f32.mrf.mxu0  ;;  %v1512_v56 = vpop.f32.mrf.mxu1 }
 0xa60   :  { %v1530_v60 = vadd.f32 %v1526_v62, %v1511_v44  ;;  %v1472_v40 = vadd.f32 %v1471_v59, %v2724_v54  ;;  %v1528_v63 = vadd.f32 %v1524_v43, %v1470_v41  ;;  %v1513_v32 = vadd.f32 %v1512_v56, %v2735_v45 }
 0xa61   :  { %v1473_v30 = vpop.f32.mrf.mxu0  ;;  %v1514_v31 = vpop.f32.mrf.mxu1 }
 0xa62   :  { %v1534_v33 = vmul.f32 0.5, %v1530_v60  ;;  %v1529_v42 = vadd.f32 %v1525_v26, %v1472_v40  ;;  %v1531_v46 = vadd.f32 %v1527_v61, %v1513_v32 }
 0xa63   :  { %v1474_v53 = vpop.f32.mrf.mxu0  ;;  %v1515_v27 = vpop.f32.mrf.mxu1 }
 0xa64   :  { %2358 = vtanh.f32 %v1534_v33  ;;  %v1533_v29 = vmul.f32 0.5, %v1529_v42  ;;  %v1535_v44 = vmul.f32 0.5, %v1531_v46 }
 0xa66   :  { %2360 = vtanh.f32 %v1533_v29 }
 0xa67   :  { %2362 = vtanh.f32 %v1528_v63 }
 0xa68   :  { %2364 = vtanh.f32 %v1535_v44 }
 0xa71   :  { %v2359_v62 = vpop.eup %2358 }
 0xa72   :  { %v1540_v59 = vmul.f32 0.5, %v2359_v62 }
 0xa73   :  { %v2361_v48 = vpop.eup %2360 }
 0xa74   :  { %v1543_v60 = vadd.f32 0.5, %v1540_v59  ;;  %v1539_v40 = vmul.f32 0.5, %v2361_v48  ;;  %v2363_v30 = vpop.eup %2362 }
 0xa75   :  { %v2365_v56 = vpop.eup %2364 }
 0xa76   :  { %v1542_v26 = vadd.f32 0.5, %v1539_v40  ;;  %v1545_v31 = vmul.f32 %v1543_v60, %v3243_v25  ;;  %v1541_v42 = vmul.f32 0.5, %v2365_v56 }
 0xa78   :  { %v1546_v33 = vmul.f32 %v2363_v30, %v1542_v26  ;;  %v1544_v39 = vadd.f32 0.5, %v1541_v42 }
 0xa7a   :  { %v3289_v41 = vadd.f32 %v1546_v33, %v1545_v31 }
 0xa7c   :  { %2366 = vtanh.f32 %v3289_v41 }
 0xa89   :  { %v2367_v53 = vpop.eup %2366 }
 0xa8a   :  { %v1549_v27 = vmul.f32 %v2367_v53, %v1544_v39  ;;  %v3338_v53 = vld [vmem:[#allocation3 + $0xe0] ss:$16 sps:$4 sm:$0xff]  }
 0xa8c   :  { %v1550_v43 = vpack.c.bf16 %v1549_v27, %v1549_v27  ;;  %v3341_v27 = vld [vmem:[#allocation3 + $0xe8] ss:$16 sps:$4 sm:$0xff]  }
 0xa8e   :  { %1584 = vmatmul.mubr.bf16.vlgmr.msra.gmra.mxu0 %v1550_v43  ;;  %1625 = vmatmul.mubr.bf16.vlgmr.msra.gmra.mxu1 %v1550_v43  ;;  %v3347_v43 = vld [vmem:[#allocation3 + $0xcc] ss:$16 sps:$4 sm:$0xff]  }
 0xa8f   :  { %1668 = vmatpush1.bf16.msra.mxu0 %v2952_v38  ;;  %1709 = vmatpush1.bf16.msra.mxu1 %v2955_v34  ;;  %v1638_v38 = vpop.permute.xlu1 %1637 }
 0xa90   :  { %1669 = vmatprep.subr.bf16.mxu0 %v2958_v0  ;;  %1710 = vmatprep.subr.bf16.mxu1 %v2961_v28  ;;  %v1643_v25 = vmul.f32 %v1638_v38, %v2737_v49 }
 0xa91   :  { %1699 = vmatprep.mubr.bf16.mxu0 %v2507_v1  ;;  %1740 = vmatprep.mubr.bf16.mxu1 %v2507_v1 }
 0xa93   :  { %1670 = vmatpush1.bf16.msra.mxu0 %v2966_v4  ;;  %1711 = vmatpush1.bf16.msra.mxu1 %v2969_v5  ;;  %v1642_v4 = vmul.f32 %v1638_v38, %v2714_v47 }
 0xa94   :  { %1671 = vmatprep.subr.bf16.mxu0 %v2972_v6  ;;  %1712 = vmatprep.subr.bf16.mxu1 %v2975_v7 }
 0xa97   :  { %1672 = vmatpush1.bf16.msra.mxu0 %v2978_v8  ;;  %1713 = vmatpush1.bf16.msra.mxu1 %v2981_v9  ;;  %v1641_v9 = vmul.f32 %v1638_v38, %v2721_v51 }
 0xa98   :  { %1673 = vmatprep.subr.bf16.mxu0 %v2984_v10  ;;  %1714 = vmatprep.subr.bf16.mxu1 %v2987_v11 }
 0xa9b   :  { %1674 = vmatpush1.bf16.msra.mxu0 %v2990_v12  ;;  %1715 = vmatpush1.bf16.msra.mxu1 %v2993_v13 }
 0xa9c   :  { %1675 = vmatprep.subr.bf16.mxu0 %v2996_v14  ;;  %1716 = vmatprep.subr.bf16.mxu1 %v2999_v15 }
 0xa9f   :  { %1676 = vmatpush1.bf16.msra.mxu0 %v3002_v2  ;;  %1717 = vmatpush1.bf16.msra.mxu1 %v3005_v16  ;;  %v1640_v16 = vmul.f32 %v1638_v38, %v2728_v58  ;;  %v3352_v38 = vld [vmem:[#allocation3 + $0xc0] ss:$16 sps:$4 sm:$0xff]  }
 0xaa0   :  { %1677 = vmatprep.subr.bf16.mxu0 %v3008_v3  ;;  %1718 = vmatprep.subr.bf16.mxu1 %v3061_v55 }
 0xaa3   :  { %1678 = vmatpush1.bf16.msra.mxu0 %v3064_v35  ;;  %1719 = vmatpush1.bf16.msra.mxu1 %v3067_v36 }
 0xaa4   :  { %1679 = vmatprep.subr.bf16.mxu0 %v3070_v17  ;;  %1720 = vmatprep.subr.bf16.mxu1 %v3073_v18 }
 0xaa7   :  { %1680 = vmatpush1.bf16.msra.mxu0 %v3076_v19  ;;  %1721 = vmatpush1.bf16.msra.mxu1 %v3079_v20 }
 0xaa8   :  { %1681 = vmatprep.subr.bf16.mxu0 %v3082_v21  ;;  %1722 = vmatprep.subr.bf16.mxu1 %v3085_v22 }
 0xaab   :  { %1682 = vmatpush1.bf16.msra.mxu0 %v3088_v37  ;;  %1723 = vmatpush1.bf16.msra.mxu1 %v3091_v52 }
 0xaac   :  { %1783 = vmatprep.subr.bf16.mxu0 %v3022_v23  ;;  %1824 = vmatprep.subr.bf16.mxu1 %v3025_v24 }
 0xb4e   :  { %v1585_v34 = vpop.f32.mrf.mxu0  ;;  %v1626_v0 = vpop.f32.mrf.mxu1 }
 0xb4f   :  { %v1627_v28 = vadd.f32 %v1626_v0, %v2719_v50  ;;  %v1586_v12 = vadd.f32 %v1585_v34, %v2726_v57  ;;  %v3355_v34 = vld [vmem:[#allocation3 + $0xc8] ss:$16 sps:$4 sm:$0xff]   ;;  %v3358_v0 = vld [vmem:[#allocation3 + $0xa4] ss:$16 sps:$4 sm:$0xff]  }
 0xb50   :  { %v1587_v5 = vpop.f32.mrf.mxu0  ;;  %v1628_v6 = vpop.f32.mrf.mxu1 }
 0xb51   :  { %v1646_v7 = vadd.f32 %v1642_v4, %v1627_v28  ;;  %v1588_v8 = vadd.f32 %v1587_v5, %v2724_v54  ;;  %v1644_v23 = vadd.f32 %v1640_v16, %v1586_v12  ;;  %v1629_v24 = vadd.f32 %v1628_v6, %v2735_v45  ;;  %v3361_v28 = vld [vmem:[#allocation3 + $0xac] ss:$16 sps:$4 sm:$0xff]   ;;  %v3364_v4 = vld [vmem:[#allocation3 + $0xa0] ss:$16 sps:$4 sm:$0xff]   ;;  %v3367_v5 = vld [vmem:[#allocation3 + $0xa8] ss:$16 sps:$4 sm:$0xff]  }
 0xb52   :  { %v1589_v10 = vpop.f32.mrf.mxu0  ;;  %v1630_v11 = vpop.f32.mrf.mxu1  ;;  %v3370_v6 = vld [vmem:[#allocation3 + $0x84] ss:$16 sps:$4 sm:$0xff]   ;;  %v3388_v12 = vld [vmem:[#allocation3 + $0x60] ss:$16 sps:$4 sm:$0xff]  }
 0xb53   :  { %v1650_v13 = vmul.f32 0.5, %v1646_v7  ;;  %v1645_v14 = vadd.f32 %v1641_v9, %v1588_v8  ;;  %v1647_v29 = vadd.f32 %v1643_v25, %v1629_v24  ;;  %v3373_v7 = vld [vmem:[#allocation3 + $0x8c] ss:$16 sps:$4 sm:$0xff]   ;;  %v3376_v8 = vld [vmem:[#allocation3 + $0x80] ss:$16 sps:$4 sm:$0xff]  }
 0xb54   :  { %v1590_v15 = vpop.f32.mrf.mxu0  ;;  %v1631_v2 = vpop.f32.mrf.mxu1  ;;  %v3379_v9 = vld [vmem:[#allocation3 + $0x88] ss:$16 sps:$4 sm:$0xff]   ;;  %v3382_v10 = vld [vmem:[#allocation3 + $0x64] ss:$16 sps:$4 sm:$0xff]   ;;  %v3385_v11 = vld [vmem:[#allocation3 + $0x6c] ss:$16 sps:$4 sm:$0xff]  }
 0xb55   :  { %2368 = vtanh.f32 %v1650_v13  ;;  %v1649_v3 = vmul.f32 0.5, %v1645_v14  ;;  %v1651_v63 = vmul.f32 0.5, %v1647_v29  ;;  %v3391_v13 = vld [vmem:[#allocation3 + $0x68] ss:$16 sps:$4 sm:$0xff]   ;;  %v3394_v14 = vld [vmem:[#allocation3 + $0x44] ss:$16 sps:$4 sm:$0xff]  }
 0xb57   :  { %2370 = vtanh.f32 %v1649_v3 }
 0xb58   :  { %2372 = vtanh.f32 %v1644_v23 }
 0xb59   :  { %2374 = vtanh.f32 %v1651_v63 }
 0xb62   :  { %v2369_v32 = vpop.eup %2368 }
 0xb63   :  { %v1656_v61 = vmul.f32 0.5, %v2369_v32 }
 0xb64   :  { %v2371_v46 = vpop.eup %2370 }
 0xb65   :  { %v1659_v44 = vadd.f32 0.5, %v1656_v61  ;;  %v1655_v62 = vmul.f32 0.5, %v2371_v46  ;;  %v2373_v48 = vpop.eup %2372 }
 0xb66   :  { %v2375_v30 = vpop.eup %2374 }
 0xb67   :  { %v1658_v59 = vadd.f32 0.5, %v1655_v62  ;;  %v1661_v60 = vmul.f32 %v1659_v44, %v3289_v41  ;;  %v1657_v31 = vmul.f32 0.5, %v2375_v30  ;;  %v3344_v41 = vld [vmem:[#allocation3 + $0xc4] ss:$16 sps:$4 sm:$0xff]  }
 0xb69   :  { %v1662_v40 = vmul.f32 %v2373_v48, %v1658_v59  ;;  %v1660_v33 = vadd.f32 0.5, %v1657_v31 }
 0xb6b   :  { %v3335_v26 = vadd.f32 %v1662_v40, %v1661_v60 }
 0xb6d   :  { %2376 = vtanh.f32 %v3335_v26 }
 0xb7a   :  { %v2377_v56 = vpop.eup %2376 }
 0xb7b   :  { %v1665_v42 = vmul.f32 %v2377_v56, %v1660_v33 }
 0xb7d   :  { %v1666_v39 = vpack.c.bf16 %v1665_v42, %v1665_v42 }
 0xb7f   :  { %1700 = vmatmul.mubr.bf16.vlgmr.msra.gmra.mxu0 %v1666_v39  ;;  %1741 = vmatmul.mubr.bf16.vlgmr.msra.gmra.mxu1 %v1666_v39 }
 0xb80   :  { %1784 = vmatpush1.bf16.msra.mxu0 %v3338_v53  ;;  %1825 = vmatpush1.bf16.msra.mxu1 %v3341_v27 }
 0xb81   :  { %1785 = vmatprep.subr.bf16.mxu0 %v3344_v41  ;;  %1826 = vmatprep.subr.bf16.mxu1 %v3347_v43 }
 0xb82   :  { %1815 = vmatprep.mubr.bf16.mxu0 %v2507_v1  ;;  %1856 = vmatprep.mubr.bf16.mxu1 %v2507_v1 }
 0xb84   :  { %1786 = vmatpush1.bf16.msra.mxu0 %v3352_v38  ;;  %1827 = vmatpush1.bf16.msra.mxu1 %v3355_v34 }
 0xb85   :  { %1787 = vmatprep.subr.bf16.mxu0 %v3358_v0  ;;  %1828 = vmatprep.subr.bf16.mxu1 %v3361_v28 }
 0xb88   :  { %1788 = vmatpush1.bf16.msra.mxu0 %v3364_v4  ;;  %1829 = vmatpush1.bf16.msra.mxu1 %v3367_v5 }
 0xb89   :  { %1789 = vmatprep.subr.bf16.mxu0 %v3370_v6  ;;  %1830 = vmatprep.subr.bf16.mxu1 %v3373_v7 }
 0xb8c   :  { %1790 = vmatpush1.bf16.msra.mxu0 %v3376_v8  ;;  %1831 = vmatpush1.bf16.msra.mxu1 %v3379_v9 }
 0xb8d   :  { %1791 = vmatprep.subr.bf16.mxu0 %v3382_v10  ;;  %1832 = vmatprep.subr.bf16.mxu1 %v3385_v11 }
 0xb90   :  { %1792 = vmatpush1.bf16.msra.mxu0 %v3388_v12  ;;  %1833 = vmatpush1.bf16.msra.mxu1 %v3391_v13 }
 0xb91   :  { %1793 = vmatprep.subr.bf16.mxu0 %v3394_v14  ;;  %1834 = vmatprep.subr.bf16.mxu1 %v3061_v55  ;;  %v3408_v55 = vld [vmem:[#allocation3 + $0xe4] ss:$16 sps:$4 sm:$0xff]  }
 0xb94   :  { %1794 = vmatpush1.bf16.msra.mxu0 %v3064_v35  ;;  %1835 = vmatpush1.bf16.msra.mxu1 %v3067_v36  ;;  %v3411_v35 = vld [vmem:[#allocation3 + $0xec] ss:$16 sps:$4 sm:$0xff]   ;;  %v1754_v36 = vpop.permute.xlu0 %1753 }
 0xb95   :  { %1795 = vmatprep.subr.bf16.mxu0 %v3070_v17  ;;  %1836 = vmatprep.subr.bf16.mxu1 %v3073_v18  ;;  %v1757_v15 = vmul.f32 %v1754_v36, %v2721_v51  ;;  %v1756_v63 = vmul.f32 %v1754_v36, %v2728_v58  ;;  %v1759_v44 = vmul.f32 %v1754_v36, %v2737_v49 }
 0xb98   :  { %1796 = vmatpush1.bf16.msra.mxu0 %v3076_v19  ;;  %1837 = vmatpush1.bf16.msra.mxu1 %v3079_v20  ;;  %v1758_v20 = vmul.f32 %v1754_v36, %v2714_v47 }
 0xb99   :  { %1797 = vmatprep.subr.bf16.mxu0 %v3082_v21  ;;  %1838 = vmatprep.subr.bf16.mxu1 %v3085_v22 }
 0xb9c   :  { %1798 = vmatpush1.bf16.msra.mxu0 %v3088_v37  ;;  %1839 = vmatpush1.bf16.msra.mxu1 %v3091_v52 }
 0xb9d   :  { %1899 = vmatprep.subr.bf16.mxu0 %v3408_v55  ;;  %1940 = vmatprep.subr.bf16.mxu1 %v3411_v35 }
 0xc3f   :  { %v1701_v17 = vpop.f32.mrf.mxu0  ;;  %v1742_v18 = vpop.f32.mrf.mxu1 }
 0xc40   :  { %v1743_v19 = vadd.f32 %v1742_v18, %v2719_v50  ;;  %v1702_v3 = vadd.f32 %v1701_v17, %v2726_v57 }
 0xc41   :  { %v1703_v21 = vpop.f32.mrf.mxu0  ;;  %v1744_v22 = vpop.f32.mrf.mxu1 }
 0xc42   :  { %v1762_v37 = vadd.f32 %v1758_v20, %v1743_v19  ;;  %v1704_v52 = vadd.f32 %v1703_v21, %v2724_v54  ;;  %v1760_v61 = vadd.f32 %v1756_v63, %v1702_v3  ;;  %v1745_v46 = vadd.f32 %v1744_v22, %v2735_v45  ;;  %v3465_v3 = vld [vmem:[#allocation3 + $0x28] ss:$16 sps:$4 sm:$0xff]   ;;  %v1870_v63 = vpop.permute.xlu1 %1869 }
 0xc43   :  { %v1705_v2 = vpop.f32.mrf.mxu0  ;;  %v1746_v16 = vpop.f32.mrf.mxu1 }
 0xc44   :  { %v1766_v23 = vmul.f32 0.5, %v1762_v37  ;;  %v1761_v24 = vadd.f32 %v1757_v15, %v1704_v52  ;;  %v1763_v62 = vadd.f32 %v1759_v44, %v1745_v46  ;;  %v3450_v37 = vld [vmem:[#allocation3 + $0x40] ss:$16 sps:$4 sm:$0xff]   ;;  %v3453_v52 = vld [vmem:[#allocation3 + $0x48] ss:$16 sps:$4 sm:$0xff]   ;;  %v1874_v44 = vmul.f32 %v1870_v63, %v2714_v47 }
 0xc45   :  { %v1706_v25 = vpop.f32.mrf.mxu0  ;;  %v1747_v29 = vpop.f32.mrf.mxu1  ;;  %v3456_v15 = vld [vmem:[#allocation3 + $0x24] ss:$16 sps:$4 sm:$0xff]   ;;  %v3459_v2 = vld [vmem:[#allocation3 + $0x2c] ss:$16 sps:$4 sm:$0xff]   ;;  %v3462_v16 = vld [vmem:[#allocation3 + $0x20] ss:$16 sps:$4 sm:$0xff]  }
 0xc46   :  { %2378 = vtanh.f32 %v1766_v23  ;;  %v1765_v32 = vmul.f32 0.5, %v1761_v24  ;;  %v1767_v59 = vmul.f32 0.5, %v1763_v62  ;;  %v3468_v23 = vld [vmem:[#allocation3 + $0x4] ss:$16 sps:$4 sm:$0xff]   ;;  %v3471_v24 = vld [vmem:[#allocation3 + $0xc] ss:$16 sps:$4 sm:$0xff]  }
 0xc47   :  { %v3474_v25 = vld [vmem:[#allocation3] ss:$16 sps:$4 sm:$0xff]   ;;  %v3477_v29 = vld [vmem:[#allocation3 + $0x8] ss:$16 sps:$4 sm:$0xff]  }
 0xc48   :  { %2380 = vtanh.f32 %v1765_v32 }
 0xc49   :  { %2382 = vtanh.f32 %v1760_v61 }
 0xc4a   :  { %2384 = vtanh.f32 %v1767_v59 }
 0xc53   :  { %v2379_v48 = vpop.eup %2378 }
 0xc54   :  { %v1772_v60 = vmul.f32 0.5, %v2379_v48 }
 0xc55   :  { %v2381_v40 = vpop.eup %2380 }
 0xc56   :  { %v1775_v30 = vadd.f32 0.5, %v1772_v60  ;;  %v1771_v31 = vmul.f32 0.5, %v2381_v40  ;;  %v2383_v56 = vpop.eup %2382  ;;  %v1873_v40 = vmul.f32 %v1870_v63, %v2721_v51 }
 0xc57   :  { %v2385_v18 = vpop.eup %2384 }
 0xc58   :  { %v1774_v33 = vadd.f32 0.5, %v1771_v31  ;;  %v1777_v42 = vmul.f32 %v1775_v30, %v3335_v26  ;;  %v1773_v19 = vmul.f32 0.5, %v2385_v18  ;;  %v3447_v26 = vld [vmem:[#allocation3 + $0x4c] ss:$16 sps:$4 sm:$0xff]  }
 0xc5a   :  { %v1778_v39 = vmul.f32 %v2383_v56, %v1774_v33  ;;  %v1776_v36 = vadd.f32 0.5, %v1773_v19 }
 0xc5c   :  { %v3423_v17 = vadd.f32 %v1778_v39, %v1777_v42  ;;  %v1872_v39 = vmul.f32 %v1870_v63, %v2728_v58 }
 0xc5e   :  { %2386 = vtanh.f32 %v3423_v17 }
 0xc6b   :  { %v2387_v20 = vpop.eup %2386 }
 0xc6c   :  { %v1781_v21 = vmul.f32 %v2387_v20, %v1776_v36  ;;  %v1875_v20 = vmul.f32 %v1870_v63, %v2737_v49 }
 0xc6e   :  { %v1782_v22 = vpack.c.bf16 %v1781_v21, %v1781_v21 }
 0xc70   :  { %1816 = vmatmul.mubr.bf16.vlgmr.msra.gmra.mxu0 %v1782_v22  ;;  %1857 = vmatmul.mubr.bf16.vlgmr.msra.gmra.mxu1 %v1782_v22 }
 0xc71   :  { %1900 = vmatpush1.bf16.msra.mxu0 %v3338_v53  ;;  %1941 = vmatpush1.bf16.msra.mxu1 %v3341_v27 }
 0xc72   :  { %1901 = vmatprep.subr.bf16.mxu0 %v3344_v41  ;;  %1942 = vmatprep.subr.bf16.mxu1 %v3347_v43 }
 0xc73   :  { %1931 = vmatprep.mubr.bf16.mxu0 %v2507_v1  ;;  %1972 = vmatprep.mubr.bf16.mxu1 %v2507_v1 }
 0xc75   :  { %1902 = vmatpush1.bf16.msra.mxu0 %v3352_v38  ;;  %1943 = vmatpush1.bf16.msra.mxu1 %v3355_v34 }
 0xc76   :  { %1903 = vmatprep.subr.bf16.mxu0 %v3358_v0  ;;  %1944 = vmatprep.subr.bf16.mxu1 %v3361_v28 }
 0xc79   :  { %1904 = vmatpush1.bf16.msra.mxu0 %v3364_v4  ;;  %1945 = vmatpush1.bf16.msra.mxu1 %v3367_v5 }
 0xc7a   :  { %1905 = vmatprep.subr.bf16.mxu0 %v3370_v6  ;;  %1946 = vmatprep.subr.bf16.mxu1 %v3373_v7 }
 0xc7d   :  { %1906 = vmatpush1.bf16.msra.mxu0 %v3376_v8  ;;  %1947 = vmatpush1.bf16.msra.mxu1 %v3379_v9 }
 0xc7e   :  { %1907 = vmatprep.subr.bf16.mxu0 %v3382_v10  ;;  %1948 = vmatprep.subr.bf16.mxu1 %v3385_v11 }
 0xc81   :  { %1908 = vmatpush1.bf16.msra.mxu0 %v3388_v12  ;;  %1949 = vmatpush1.bf16.msra.mxu1 %v3391_v13 }
 0xc82   :  { %1909 = vmatprep.subr.bf16.mxu0 %v3394_v14  ;;  %1950 = vmatprep.subr.bf16.mxu1 %v3447_v26 }
 0xc85   :  { %1910 = vmatpush1.bf16.msra.mxu0 %v3450_v37  ;;  %1951 = vmatpush1.bf16.msra.mxu1 %v3453_v52 }
 0xc86   :  { %1911 = vmatprep.subr.bf16.mxu0 %v3456_v15  ;;  %1952 = vmatprep.subr.bf16.mxu1 %v3459_v2 }
 0xc89   :  { %1912 = vmatpush1.bf16.msra.mxu0 %v3462_v16  ;;  %1953 = vmatpush1.bf16.msra.mxu1 %v3465_v3 }
 0xc8a   :  { %1913 = vmatprep.subr.bf16.mxu0 %v3468_v23  ;;  %1954 = vmatprep.subr.bf16.mxu1 %v3471_v24 }
 0xc8d   :  { %1914 = vmatpush1.bf16.msra.mxu0 %v3474_v25  ;;  %1955 = vmatpush1.bf16.msra.mxu1 %v3477_v29 }
 0xc8e   :  { %2015 = vmatprep.subr.bf16.mxu0 %v3408_v55  ;;  %2056 = vmatprep.subr.bf16.mxu1 %v3411_v35 }
 0xd30   :  { %v1817_v32 = vpop.f32.mrf.mxu0  ;;  %v1858_v61 = vpop.f32.mrf.mxu1 }
 0xd31   :  { %v1859_v46 = vadd.f32 %v1858_v61, %v2719_v50  ;;  %v1818_v55 = vadd.f32 %v1817_v32, %v2726_v57 }
 0xd32   :  { %v1819_v62 = vpop.f32.mrf.mxu0  ;;  %v1860_v59 = vpop.f32.mrf.mxu1 }
 0xd33   :  { %v1878_v48 = vadd.f32 %v1874_v44, %v1859_v46  ;;  %v1820_v60 = vadd.f32 %v1819_v62, %v2724_v54  ;;  %v1876_v19 = vadd.f32 %v1872_v39, %v1818_v55  ;;  %v1861_v36 = vadd.f32 %v1860_v59, %v2735_v45 }
 0xd34   :  { %v1821_v30 = vpop.f32.mrf.mxu0  ;;  %v1862_v31 = vpop.f32.mrf.mxu1 }
 0xd35   :  { %v1882_v33 = vmul.f32 0.5, %v1878_v48  ;;  %v1877_v35 = vadd.f32 %v1873_v40, %v1820_v60  ;;  %v1879_v21 = vadd.f32 %v1875_v20, %v1861_v36 }
 0xd36   :  { %v1822_v56 = vpop.f32.mrf.mxu0  ;;  %v1863_v42 = vpop.f32.mrf.mxu1 }
 0xd37   :  { %2388 = vtanh.f32 %v1882_v33  ;;  %v1881_v18 = vmul.f32 0.5, %v1877_v35  ;;  %v1883_v22 = vmul.f32 0.5, %v1879_v21 }
 0xd39   :  { %2390 = vtanh.f32 %v1881_v18 }
 0xd3a   :  { %2392 = vtanh.f32 %v1876_v19 }
 0xd3b   :  { %2394 = vtanh.f32 %v1883_v22 }
 0xd44   :  { %v2389_v61 = vpop.eup %2388 }
 0xd45   :  { %v1888_v46 = vmul.f32 0.5, %v2389_v61  ;;  %v2102_v61 = vpop.permute.xlu1 %2101 }
 0xd46   :  { %v2391_v32 = vpop.eup %2390 }
 0xd47   :  { %v1891_v44 = vadd.f32 0.5, %v1888_v46  ;;  %v1887_v62 = vmul.f32 0.5, %v2391_v32  ;;  %v2393_v60 = vpop.eup %2392 }
 0xd48   :  { %v2395_v59 = vpop.eup %2394 }
 0xd49   :  { %v1890_v48 = vadd.f32 0.5, %v1887_v62  ;;  %v1893_v40 = vmul.f32 %v1891_v44, %v3423_v17  ;;  %v1889_v55 = vmul.f32 0.5, %v2395_v59  ;;  %v2106_v44 = vmul.f32 %v2102_v61, %v2714_v47 }
 0xd4b   :  { %v1894_v30 = vmul.f32 %v2393_v60, %v1890_v48  ;;  %v1892_v63 = vadd.f32 0.5, %v1889_v55 }
 0xd4d   :  { %v3491_v31 = vadd.f32 %v1894_v30, %v1893_v40  ;;  %v2105_v40 = vmul.f32 %v2102_v61, %v2721_v51 }
 0xd4f   :  { %2396 = vtanh.f32 %v3491_v31 }
 0xd5c   :  { %v2397_v33 = vpop.eup %2396 }
 0xd5d   :  { %v1897_v35 = vmul.f32 %v2397_v33, %v1892_v63 }
 0xd5f   :  { %v1898_v56 = vpack.c.bf16 %v1897_v35, %v1897_v35 }
 0xd61   :  { %1932 = vmatmul.mubr.bf16.vlgmr.msra.gmra.mxu0 %v1898_v56  ;;  %1973 = vmatmul.mubr.bf16.vlgmr.msra.gmra.mxu1 %v1898_v56 }
 0xd62   :  { %2016 = vmatpush1.bf16.msra.mxu0 %v3338_v53  ;;  %2057 = vmatpush1.bf16.msra.mxu1 %v3341_v27 }
 0xd63   :  { %2017 = vmatprep.subr.bf16.mxu0 %v3344_v41  ;;  %2058 = vmatprep.subr.bf16.mxu1 %v3347_v43 }
 0xd64   :  { %2047 = vmatprep.mubr.bf16.mxu0 %v2507_v1  ;;  %2088 = vmatprep.mubr.bf16.mxu1 %v2507_v1  ;;  %v1986_v1 = vpop.permute.xlu0 %1985 }
 0xd65   :  { %v1990_v43 = vmul.f32 %v1986_v1, %v2714_v47 }
 0xd66   :  { %2018 = vmatpush1.bf16.msra.mxu0 %v3352_v38  ;;  %2059 = vmatpush1.bf16.msra.mxu1 %v3355_v34 }
 0xd67   :  { %2019 = vmatprep.subr.bf16.mxu0 %v3358_v0  ;;  %2060 = vmatprep.subr.bf16.mxu1 %v3361_v28 }
 0xd6a   :  { %2020 = vmatpush1.bf16.msra.mxu0 %v3364_v4  ;;  %2061 = vmatpush1.bf16.msra.mxu1 %v3367_v5  ;;  %v1989_v4 = vmul.f32 %v1986_v1, %v2721_v51  ;;  %v2107_v51 = vmul.f32 %v2102_v61, %v2737_v49 }
 0xd6b   :  { %2021 = vmatprep.subr.bf16.mxu0 %v3370_v6  ;;  %2062 = vmatprep.subr.bf16.mxu1 %v3373_v7 }
 0xd6e   :  { %2022 = vmatpush1.bf16.msra.mxu0 %v3376_v8  ;;  %2063 = vmatpush1.bf16.msra.mxu1 %v3379_v9 }
 0xd6f   :  { %2023 = vmatprep.subr.bf16.mxu0 %v3382_v10  ;;  %2064 = vmatprep.subr.bf16.mxu1 %v3385_v11 }
 0xd72   :  { %2024 = vmatpush1.bf16.msra.mxu0 %v3388_v12  ;;  %2065 = vmatpush1.bf16.msra.mxu1 %v3391_v13  ;;  %v1988_v12 = vmul.f32 %v1986_v1, %v2728_v58 }
 0xd73   :  { %2025 = vmatprep.subr.bf16.mxu0 %v3394_v14  ;;  %2066 = vmatprep.subr.bf16.mxu1 %v3447_v26  ;;  %v1991_v26 = vmul.f32 %v1986_v1, %v2737_v49  ;;  %v2202_v49 = vld [vmem:[%s3553_s4] ss:$0 sm:$0xff] }
 0xd76   :  { %2026 = vmatpush1.bf16.msra.mxu0 %v3450_v37  ;;  %2067 = vmatpush1.bf16.msra.mxu1 %v3453_v52 }
 0xd77   :  { %2027 = vmatprep.subr.bf16.mxu0 %v3456_v15  ;;  %2068 = vmatprep.subr.bf16.mxu1 %v3459_v2 }
 0xd7a   :  { %2028 = vmatpush1.bf16.msra.mxu0 %v3462_v16  ;;  %2069 = vmatpush1.bf16.msra.mxu1 %v3465_v3 }
 0xd7b   :  { %2029 = vmatprep.subr.bf16.mxu0 %v3468_v23  ;;  %2070 = vmatprep.subr.bf16.mxu1 %v3471_v24 }
 0xd7e   :  { %2030 = vmatpush1.bf16.msra.mxu0 %v3474_v25  ;;  %2071 = vmatpush1.bf16.msra.mxu1 %v3477_v29 }
 0xe21   :  { %v1933_v53 = vpop.f32.mrf.mxu0  ;;  %v1974_v27 = vpop.f32.mrf.mxu1 }
 0xe22   :  { %v1975_v41 = vadd.f32 %v1974_v27, %v2719_v50  ;;  %v1934_v7 = vadd.f32 %v1933_v53, %v2726_v57  ;;  %v2104_v53 = vmul.f32 %v2102_v61, %v2728_v58 }
 0xe23   :  { %v1935_v38 = vpop.f32.mrf.mxu0  ;;  %v1976_v34 = vpop.f32.mrf.mxu1 }
 0xe24   :  { %v1994_v0 = vadd.f32 %v1990_v43, %v1975_v41  ;;  %v1936_v28 = vadd.f32 %v1935_v38, %v2724_v54  ;;  %v1992_v14 = vadd.f32 %v1988_v12, %v1934_v7  ;;  %v1977_v17 = vadd.f32 %v1976_v34, %v2735_v45  ;;  %v2203_v12 = vld [vmem:[#allocation2] ss:$0 sm:$0xff] }
 0xe25   :  { %v1937_v5 = vpop.f32.mrf.mxu0  ;;  %v1978_v6 = vpop.f32.mrf.mxu1 }
 0xe26   :  { %v1998_v8 = vmul.f32 0.5, %v1994_v0  ;;  %v1993_v9 = vadd.f32 %v1989_v4, %v1936_v28  ;;  %v1995_v37 = vadd.f32 %v1991_v26, %v1977_v17 }
 0xe27   :  { %v1938_v10 = vpop.f32.mrf.mxu0  ;;  %v1979_v11 = vpop.f32.mrf.mxu1 }
 0xe28   :  { %2398 = vtanh.f32 %v1998_v8  ;;  %v1997_v13 = vmul.f32 0.5, %v1993_v9  ;;  %v1999_v52 = vmul.f32 0.5, %v1995_v37 }
 0xe2a   :  { %2400 = vtanh.f32 %v1997_v13 }
 0xe2b   :  { %2402 = vtanh.f32 %v1992_v14 }
 0xe2c   :  { %2404 = vtanh.f32 %v1999_v52 }
 0xe35   :  { %v2399_v15 = vpop.eup %2398 }
 0xe36   :  { %v2004_v2 = vmul.f32 0.5, %v2399_v15 }
 0xe37   :  { %v2401_v16 = vpop.eup %2400 }
 0xe38   :  { %v2007_v3 = vadd.f32 0.5, %v2004_v2  ;;  %v2003_v23 = vmul.f32 0.5, %v2401_v16  ;;  %v2403_v25 = vpop.eup %2402 }
 0xe39   :  { %v2405_v18 = vpop.eup %2404 }
 0xe3a   :  { %v2006_v24 = vadd.f32 0.5, %v2003_v23  ;;  %v2009_v29 = vmul.f32 %v2007_v3, %v3491_v31  ;;  %v2005_v19 = vmul.f32 0.5, %v2405_v18 }
 0xe3c   :  { %v2010_v42 = vmul.f32 %v2403_v25, %v2006_v24  ;;  %v2008_v36 = vadd.f32 0.5, %v2005_v19 }
 0xe3e   :  { %v2011_v39 = vadd.f32 %v2010_v42, %v2009_v29 }
 0xe40   :  { %2406 = vtanh.f32 %v2011_v39 }
 0xe4d   :  { %v2407_v20 = vpop.eup %2406 }
 0xe4e   :  { %v2013_v21 = vmul.f32 %v2407_v20, %v2008_v36 }
 0xe50   :  { %v2014_v22 = vpack.c.bf16 %v2013_v21, %v2013_v21 }
 0xe52   :  { %2048 = vmatmul.mubr.bf16.vlgmr.msra.gmra.mxu0 %v2014_v22  ;;  %2089 = vmatmul.mubr.bf16.vlgmr.msra.gmra.mxu1 %v2014_v22 }
 0xf12   :  { %v2049_v46 = vpop.f32.mrf.mxu0  ;;  %v2090_v32 = vpop.f32.mrf.mxu1 }
 0xf13   :  { %v2091_v62 = vadd.f32 %v2090_v32, %v2719_v50  ;;  %v2050_v63 = vadd.f32 %v2049_v46, %v2726_v57 }
 0xf14   :  { %v2051_v48 = vpop.f32.mrf.mxu0  ;;  %v2092_v60 = vpop.f32.mrf.mxu1 }
 0xf15   :  { %v2110_v30 = vadd.f32 %v2106_v44, %v2091_v62  ;;  %v2052_v31 = vadd.f32 %v2051_v48, %v2724_v54  ;;  %v2108_v50 = vadd.f32 %v2104_v53, %v2050_v63  ;;  %v2093_v27 = vadd.f32 %v2092_v60, %v2735_v45 }
 0xf16   :  { %v2053_v59 = vpop.f32.mrf.mxu0  ;;  %v2094_v55 = vpop.f32.mrf.mxu1 }
 0xf17   :  { %v2114_v33 = vmul.f32 0.5, %v2110_v30  ;;  %v2109_v35 = vadd.f32 %v2105_v40, %v2052_v31  ;;  %v2111_v54 = vadd.f32 %v2107_v51, %v2093_v27 }
 0xf18   :  { %v2054_v56 = vpop.f32.mrf.mxu0  ;;  %v2095_v1 = vpop.f32.mrf.mxu1 }
 0xf19   :  { %2408 = vtanh.f32 %v2114_v33  ;;  %v2113_v47 = vmul.f32 0.5, %v2109_v35  ;;  %v2115_v41 = vmul.f32 0.5, %v2111_v54 }
 0xf1b   :  { %2410 = vtanh.f32 %v2113_v47 }
 0xf1c   :  { %2412 = vtanh.f32 %v2108_v50 }
 0xf1d   :  { %2414 = vtanh.f32 %v2115_v41 }
 0xf26   :  { %v2409_v43 = vpop.eup %2408 }
 0xf27   :  { %v2120_v38 = vmul.f32 0.5, %v2409_v43 }
 0xf28   :  { %v2411_v57 = vpop.eup %2410 }
 0xf29   :  { %v2123_v34 = vadd.f32 0.5, %v2120_v38  ;;  %v2119_v0 = vmul.f32 0.5, %v2411_v57  ;;  %v2413_v4 = vpop.eup %2412 }
 0xf2a   :  { %v2415_v7 = vpop.eup %2414 }
 0xf2b   :  { %v2122_v28 = vadd.f32 0.5, %v2119_v0  ;;  %v2125_v58 = vmul.f32 %v2123_v34, %v2011_v39  ;;  %v2121_v8 = vmul.f32 0.5, %v2415_v7 }
 0xf2d   :  { %v2126_v5 = vmul.f32 %v2413_v4, %v2122_v28  ;;  %v2124_v45 = vadd.f32 0.5, %v2121_v8 }
 0xf2f   :  { %v2127_v6 = vadd.f32 %v2126_v5, %v2125_v58 }
 0xf31   :  { %2416 = vtanh.f32 %v2127_v6 }
 0xf3e   :  { %v2417_v9 = vpop.eup %2416 }
 0xf3f   :  { %v2129_v10 = vmul.f32 %v2417_v9, %v2124_v45 }
 0xf41   :  { %v2137_v11 = vmul.f32 %v2202_v49, %v2129_v10 }
 0xf43   :  { %2138 = vadd.xlane.f32.xlu0 %v2137_v11 }
 0xfcc   :  { %v2139_v13 = vpop.xlane.xlu0 %2138 }
 0xfcd   :  { %v2147_v14 = vadd.f32 %v2203_v12, %v2139_v13 }
 0xfcf   :  { %2149 = vst.msk [vmem:[%s3555_s6] sm:$0xff] %vm2148_vm0, %v2147_v14 }
 0xfd0   :  { %2154 = vsyncpa [#allocation4], 1 }

</bundles_post_ra>
